<compile_context>
chip_gen: v7x
topology: tpu7x:2x2x1
jax: 0.10.0
libtpu: 0.0.40
codegen_flags: <defaults>
</compile_context>

<pallas_src>
import jax
import jax.numpy as jnp
from jax.experimental import pallas as pl
from jax.experimental.pallas import tpu as pltpu

# ---------------- small, module-consistent shapes ----------------
SEQ = 8
BATCH = 128        # sequences per call (review: fill the MXU M dimension)
BATCH_TILE = 64    # per-grid-step tile; grid of 2 shards across v7x's 2 TensorCores
EMBED = 32         # stands in for embedding_dim=300
HIDDEN = 32        # stands in for hidden_dim=200  (4*HIDDEN = 128 -> one lane tile)
OUT = 2            # output_size
PAD_OUT = 128      # lane-padded head width (unmasked output store)


# ---------------- fused forward kernel (grid = batch tiles) ----------------
def bilstm_fused_kernel(x2d_ref, wih_f_ref, b_f_ref, wih_b_ref, b_b_ref,
                        whh_f_ref, wout_f_ref, wout_b_ref, bout_ref, out_ref):
    S, BT, H = SEQ, BATCH_TILE, HIDDEN

    x2d = x2d_ref[...].astype(jnp.bfloat16)                       # (S*BT, E), row = t*BT + b

    # Hoisted FORWARD input projection for all timesteps at once (biases folded).
    xg_f = jnp.dot(x2d, wih_f_ref[...],
                   preferred_element_type=jnp.float32) + b_f_ref[...]   # (S*BT, 4H)

    def gate_update(gates, c_prev):
        # Packed gate-column order is (i, f, o | g): one sigmoid over the contiguous
        # (i,f,o) slice, tanh only over the g slice.
        sg = jax.nn.sigmoid(gates[:, 0:3 * H])
        g = jnp.tanh(gates[:, 3 * H:4 * H])
        i = sg[:, 0:H]
        f = sg[:, H:2 * H]
        o = sg[:, 2 * H:3 * H]
        c = f * c_prev + i * g
        h = o * jnp.tanh(c)
        return h, c

    # Forward recurrence, fully unrolled; h/c stay vreg-resident the whole time.
    whh_f = whh_f_ref[...]
    h_f, c_f = gate_update(xg_f[0:BT], jnp.zeros((BT, H), jnp.float32))   # h0 = c0 = 0
    for t in range(1, S):
        gates = xg_f[t * BT:(t + 1) * BT] + jnp.dot(
            h_f.astype(jnp.bfloat16), whh_f, preferred_element_type=jnp.float32)
        h_f, c_f = gate_update(gates, c_f)

    # Reverse direction: r_out[-1]'s reverse half is the reverse LSTM's output at
    # t = S-1, i.e. its FIRST step (processing x[S-1] from the zero initial state).
    # Only this single projection + gate evaluation contributes to the module output,
    # and the recurrent term vanishes (h0 = 0), so W_hh_reverse is not needed.
    xg_b = jnp.dot(x2d[(S - 1) * BT:S * BT], wih_b_ref[...],
                   preferred_element_type=jnp.float32) + b_b_ref[...]     # (BT, 4H)
    h_b, _ = gate_update(xg_b, jnp.zeros((BT, H), jnp.float32))

    # Fused Linear + LogSoftmax head (dropout p=0.0 -> identity). W_out is split per
    # direction (no lane concat of h_f/h_b); output is lane-padded to 128 with padded
    # logits driven to -1e30 via the bias so the store is unmasked and lane-dense.
    logits = (jnp.dot(h_f.astype(jnp.bfloat16), wout_f_ref[...],
                      preferred_element_type=jnp.float32)
              + jnp.dot(h_b.astype(jnp.bfloat16), wout_b_ref[...],
                        preferred_element_type=jnp.float32)
              + bout_ref[...])                                            # (BT, 128)
    m = jnp.max(logits, axis=-1, keepdims=True)
    lse = jnp.log(jnp.sum(jnp.exp(logits - m), axis=-1, keepdims=True)) + m
    out_ref[...] = (logits - lse).astype(out_ref.dtype)


def bilstm_forward(x, kp):
    """x: (S, B, E) f32; kp: packed kernel params -> (B, OUT) log-probabilities."""
    S, B, E = x.shape
    BT = BATCH_TILE
    n_tiles = B // BT
    H = HIDDEN

    # Tile-major, seq-major-within-tile 2D slab so each grid step gets a contiguous
    # (S*BT, E) block with row index t*BT + b (all relayout done outside the kernel).
    x_tiles = (x.reshape(S, n_tiles, BT, E)
                 .transpose(1, 0, 2, 3)
                 .reshape(n_tiles * S * BT, E))

    const2d = lambda arr: pl.BlockSpec(arr.shape, lambda i: (0, 0))  # weights stay resident

    out_pad = pl.pallas_call(
        bilstm_fused_kernel,
        out_shape=jax.ShapeDtypeStruct((B, PAD_OUT), jnp.float32),
        grid_spec=pltpu.PrefetchScalarGridSpec(
            num_scalar_prefetch=0,
            grid=(n_tiles,),
            in_specs=[
                pl.BlockSpec((S * BT, E), lambda i: (i, 0)),   # x tile
                const2d(kp["wih_f"]),
                const2d(kp["b_f"]),
                const2d(kp["wih_b"]),
                const2d(kp["b_b"]),
                const2d(kp["whh_f"]),
                const2d(kp["wout_f"]),
                const2d(kp["wout_b"]),
                const2d(kp["bout_pad"]),
            ],
            out_specs=pl.BlockSpec((BT, PAD_OUT), lambda i: (i, 0)),
        ),
        compiler_params=pltpu.CompilerParams(
            dimension_semantics=("parallel",)),                 # v7x: shard tiles over 2 TCs
    )(x_tiles, kp["wih_f"], kp["b_f"], kp["wih_b"], kp["b_b"],
      kp["whh_f"], kp["wout_f"], kp["wout_b"], kp["bout_pad"])
    return out_pad[:, :OUT]


# ---------------- parameters ----------------
def init_torch_style_params(key):
    """PyTorch-shaped parameters: w_ih (4H,E), w_hh (4H,H), biases (4H,), head (O,2H)+(O,)."""
    ks = jax.random.split(key, 10)
    H, E, O = HIDDEN, EMBED, OUT
    s = 0.1
    return {
        "w_ih_f": s * jax.random.normal(ks[0], (4 * H, E), jnp.float32),
        "w_hh_f": s * jax.random.normal(ks[1], (4 * H, H), jnp.float32),
        "b_ih_f": s * jax.random.normal(ks[2], (4 * H,), jnp.float32),
        "b_hh_f": s * jax.random.normal(ks[3], (4 * H,), jnp.float32),
        "w_ih_b": s * jax.random.normal(ks[4], (4 * H, E), jnp.float32),
        "w_hh_b": s * jax.random.normal(ks[5], (4 * H, H), jnp.float32),
        "b_ih_b": s * jax.random.normal(ks[6], (4 * H,), jnp.float32),
        "b_hh_b": s * jax.random.normal(ks[7], (4 * H,), jnp.float32),
        "w_out": s * jax.random.normal(ks[8], (O, 2 * H), jnp.float32),
        "b_out": s * jax.random.normal(ks[9], (O,), jnp.float32),
    }


def _reorder_gates(arr_4h_leading):
    """Permute PyTorch gate blocks (i, f, g, o) -> kernel order (i, f, o, g) on axis 0."""
    H = HIDDEN
    i = arr_4h_leading[0 * H:1 * H]
    f = arr_4h_leading[1 * H:2 * H]
    g = arr_4h_leading[2 * H:3 * H]
    o = arr_4h_leading[3 * H:4 * H]
    return jnp.concatenate([i, f, o, g], axis=0)


def pack_kernel_params(p):
    """Kernel layout: gate columns reordered (i,f,o,g), pre-transposed bf16 MXU operands,
    b_ih+b_hh folded, head lane-padded to 128.
    Note: w_hh_b is intentionally not packed — it cannot affect r_out[-1] (see kernel)."""
    H, O = HIDDEN, OUT
    w_out_t = p["w_out"].T                                                     # (2H, O)
    wout_f = jnp.zeros((H, PAD_OUT), jnp.float32).at[:, :O].set(w_out_t[:H])
    wout_b = jnp.zeros((H, PAD_OUT), jnp.float32).at[:, :O].set(w_out_t[H:])
    bout_pad = jnp.full((1, PAD_OUT), -1e30, jnp.float32).at[0, :O].set(p["b_out"])
    return {
        "wih_f": _reorder_gates(p["w_ih_f"]).T.astype(jnp.bfloat16),           # (E, 4H)
        "b_f": _reorder_gates(p["b_ih_f"] + p["b_hh_f"])[None, :],             # (1, 4H)
        "wih_b": _reorder_gates(p["w_ih_b"]).T.astype(jnp.bfloat16),           # (E, 4H)
        "b_b": _reorder_gates(p["b_ih_b"] + p["b_hh_b"])[None, :],             # (1, 4H)
        "whh_f": _reorder_gates(p["w_hh_f"]).T.astype(jnp.bfloat16),           # (H, 4H)
        "wout_f": wout_f.astype(jnp.bfloat16),
        "wout_b": wout_b.astype(jnp.bfloat16),
        "bout_pad": bout_pad,
    }


# ---------------- pure-JAX reference (full PyTorch semantics, f32) ----------------
def ref_forward(x, p):
    H = HIDDEN

    def cell(carry, xt, w_ih, w_hh, b):
        h, c = carry
        gates = xt @ w_ih.T + h @ w_hh.T + b
        i = jax.nn.sigmoid(gates[:, 0 * H:1 * H])
        f = jax.nn.sigmoid(gates[:, 1 * H:2 * H])
        g = jnp.tanh(gates[:, 2 * H:3 * H])
        o = jax.nn.sigmoid(gates[:, 3 * H:4 * H])
        c = f * c + i * g
        h = o * jnp.tanh(c)
        return (h, c), h

    S, B, _ = x.shape
    zeros = (jnp.zeros((B, H), jnp.float32), jnp.zeros((B, H), jnp.float32))
    b_f = p["b_ih_f"] + p["b_hh_f"]
    b_b = p["b_ih_b"] + p["b_hh_b"]

    carry, hf = zeros, None
    for t in range(S):
        carry, hf = cell(carry, x[t], p["w_ih_f"], p["w_hh_f"], b_f)

    carry, hb_last = zeros, None
    for t in range(S - 1, -1, -1):                   # full reverse recurrence
        carry, hb = cell(carry, x[t], p["w_ih_b"], p["w_hh_b"], b_b)
        if t == S - 1:
            hb_last = hb                             # reverse output aligned with t=S-1

    r_last = jnp.concatenate([hf, hb_last], axis=-1)  # r_out[-1]
    logits = r_last @ p["w_out"].T + p["b_out"]       # dropout p=0.0 -> identity
    return jax.nn.log_softmax(logits, axis=-1)


if __name__ == "__main__":
    key = jax.random.PRNGKey(0)
    k_x, k_p = jax.random.split(key)
    x = jax.random.normal(k_x, (SEQ, BATCH, EMBED), jnp.float32)

    tparams = init_torch_style_params(k_p)
    kparams = pack_kernel_params(tparams)

    out = bilstm_forward(x, kparams)
    out = jax.block_until_ready(out)

    assert out.shape == (BATCH, OUT)
    assert bool(jnp.all(jnp.isfinite(out)))
    # rows of log-softmax should exp-sum to 1
    assert bool(jnp.allclose(jnp.sum(jnp.exp(out), axis=-1), 1.0, atol=1e-5))
    # match the pure-JAX f32 reference (loose tol: kernel uses bf16 MXU operands)
    ref = ref_forward(x, tparams)
    assert bool(jnp.allclose(out, ref, atol=1e-1)), (out, ref)
    print("KERNEL_OK")
</pallas_src>

<mosaic_0001>
module attributes {stable_mosaic.version = 11 : i64} {
  func.func @bilstm_fused_kernel(%arg0: i32, %arg1: memref<512x32xf32, #tpu.memory_space<vmem>>, %arg2: memref<32x128xbf16, #tpu.memory_space<vmem>>, %arg3: memref<1x128xf32, #tpu.memory_space<vmem>>, %arg4: memref<32x128xbf16, #tpu.memory_space<vmem>>, %arg5: memref<1x128xf32, #tpu.memory_space<vmem>>, %arg6: memref<32x128xbf16, #tpu.memory_space<vmem>>, %arg7: memref<32x128xbf16, #tpu.memory_space<vmem>>, %arg8: memref<32x128xbf16, #tpu.memory_space<vmem>>, %arg9: memref<1x128xf32, #tpu.memory_space<vmem>>, %arg10: memref<64x128xf32, #tpu.memory_space<vmem>>) attributes {dimension_semantics = [#tpu.dimension_semantics<parallel>], iteration_bounds = array<i64: 2>, scalar_prefetch = 0 : i64, scratch_operands = 0 : i64, tpu.core_type = #tpu.core_type<tc>, window_params = [{transform_indices = @transform_0, window_bounds = array<i64: 512, 32>}, {pipeline_mode = #tpu.pipeline_mode<synchronous>, transform_indices = @transform_1, window_bounds = array<i64: 32, 128>}, {pipeline_mode = #tpu.pipeline_mode<synchronous>, transform_indices = @transform_2, window_bounds = array<i64: 1, 128>}, {pipeline_mode = #tpu.pipeline_mode<synchronous>, transform_indices = @transform_3, window_bounds = array<i64: 32, 128>}, {pipeline_mode = #tpu.pipeline_mode<synchronous>, transform_indices = @transform_4, window_bounds = array<i64: 1, 128>}, {pipeline_mode = #tpu.pipeline_mode<synchronous>, transform_indices = @transform_5, window_bounds = array<i64: 32, 128>}, {pipeline_mode = #tpu.pipeline_mode<synchronous>, transform_indices = @transform_6, window_bounds = array<i64: 32, 128>}, {pipeline_mode = #tpu.pipeline_mode<synchronous>, transform_indices = @transform_7, window_bounds = array<i64: 32, 128>}, {pipeline_mode = #tpu.pipeline_mode<synchronous>, transform_indices = @transform_8, window_bounds = array<i64: 1, 128>}, {transform_indices = @transform_9, window_bounds = array<i64: 64, 128>}]} {
    %c0 = arith.constant 0 : index
    %c0_0 = arith.constant 0 : index
    %0 = vector.load %arg1[%c0, %c0_0] : memref<512x32xf32, #tpu.memory_space<vmem>>, vector<512x32xf32>
    %1 = arith.truncf %0 : vector<512x32xf32> to vector<512x32xbf16>
    %c0_1 = arith.constant 0 : index
    %c0_2 = arith.constant 0 : index
    %2 = vector.load %arg2[%c0_1, %c0_2] : memref<32x128xbf16, #tpu.memory_space<vmem>>, vector<32x128xbf16>
    %cst = arith.constant dense<0.000000e+00> : vector<512x128xf32>
    %3 = tpu.matmul %1, %2, %cst {dimension_numbers = #tpu.dot_dimension_numbers<[1], [0], [0], [1], [0, 0, 1, 1], [], []>} : vector<512x32xbf16>, vector<32x128xbf16>, vector<512x128xf32> -> vector<512x128xf32>
    %c0_3 = arith.constant 0 : index
    %c0_4 = arith.constant 0 : index
    %4 = vector.load %arg3[%c0_3, %c0_4] : memref<1x128xf32, #tpu.memory_space<vmem>>, vector<1x128xf32>
    %5 = vector.broadcast %4 : vector<1x128xf32> to vector<512x128xf32>
    %6 = arith.addf %3, %5 : vector<512x128xf32>
    %c0_5 = arith.constant 0 : index
    %c0_6 = arith.constant 0 : index
    %7 = vector.load %arg6[%c0_5, %c0_6] : memref<32x128xbf16, #tpu.memory_space<vmem>>, vector<32x128xbf16>
    %8 = vector.extract_strided_slice %6 {offsets = [0, 0], sizes = [64, 128], strides = [1, 1]} : vector<512x128xf32> to vector<64x128xf32>
    %cst_7 = arith.constant 0.000000e+00 : f32
    %9 = vector.broadcast %cst_7 : f32 to vector<64x32xf32>
    %10 = vector.extract_strided_slice %8 {offsets = [0, 0], sizes = [64, 96], strides = [1, 1]} : vector<64x128xf32> to vector<64x96xf32>
    %11 = arith.negf %10 : vector<64x96xf32>
    %12 = math.exp %11 : vector<64x96xf32>
    %cst_8 = arith.constant 1.000000e+00 : f32
    %13 = vector.broadcast %cst_8 : f32 to vector<64x96xf32>
    %14 = arith.addf %13, %12 : vector<64x96xf32>
    %15 = arith.divf %13, %14 : vector<64x96xf32>
    %16 = vector.extract_strided_slice %8 {offsets = [0, 96], sizes = [64, 32], strides = [1, 1]} : vector<64x128xf32> to vector<64x32xf32>
    %17 = math.tanh %16 : vector<64x32xf32>
    %18 = vector.extract_strided_slice %15 {offsets = [0, 0], sizes = [64, 32], strides = [1, 1]} : vector<64x96xf32> to vector<64x32xf32>
    %19 = vector.extract_strided_slice %15 {offsets = [0, 32], sizes = [64, 32], strides = [1, 1]} : vector<64x96xf32> to vector<64x32xf32>
    %20 = vector.extract_strided_slice %15 {offsets = [0, 64], sizes = [64, 32], strides = [1, 1]} : vector<64x96xf32> to vector<64x32xf32>
    %21 = arith.mulf %19, %9 : vector<64x32xf32>
    %22 = arith.mulf %18, %17 : vector<64x32xf32>
    %23 = arith.addf %21, %22 : vector<64x32xf32>
    %24 = math.tanh %23 : vector<64x32xf32>
    %25 = arith.mulf %20, %24 : vector<64x32xf32>
    %26 = vector.extract_strided_slice %6 {offsets = [64, 0], sizes = [64, 128], strides = [1, 1]} : vector<512x128xf32> to vector<64x128xf32>
    %27 = arith.truncf %25 : vector<64x32xf32> to vector<64x32xbf16>
    %cst_9 = arith.constant dense<0.000000e+00> : vector<64x128xf32>
    %28 = tpu.matmul %27, %7, %cst_9 {dimension_numbers = #tpu.dot_dimension_numbers<[1], [0], [0], [1], [0, 0, 1, 1], [], []>} : vector<64x32xbf16>, vector<32x128xbf16>, vector<64x128xf32> -> vector<64x128xf32>
    %29 = arith.addf %26, %28 : vector<64x128xf32>
    %30 = vector.extract_strided_slice %29 {offsets = [0, 0], sizes = [64, 96], strides = [1, 1]} : vector<64x128xf32> to vector<64x96xf32>
    %31 = arith.negf %30 : vector<64x96xf32>
    %32 = math.exp %31 : vector<64x96xf32>
    %cst_10 = arith.constant 1.000000e+00 : f32
    %33 = vector.broadcast %cst_10 : f32 to vector<64x96xf32>
    %34 = arith.addf %33, %32 : vector<64x96xf32>
    %35 = arith.divf %33, %34 : vector<64x96xf32>
    %36 = vector.extract_strided_slice %29 {offsets = [0, 96], sizes = [64, 32], strides = [1, 1]} : vector<64x128xf32> to vector<64x32xf32>
    %37 = math.tanh %36 : vector<64x32xf32>
    %38 = vector.extract_strided_slice %35 {offsets = [0, 0], sizes = [64, 32], strides = [1, 1]} : vector<64x96xf32> to vector<64x32xf32>
    %39 = vector.extract_strided_slice %35 {offsets = [0, 32], sizes = [64, 32], strides = [1, 1]} : vector<64x96xf32> to vector<64x32xf32>
    %40 = vector.extract_strided_slice %35 {offsets = [0, 64], sizes = [64, 32], strides = [1, 1]} : vector<64x96xf32> to vector<64x32xf32>
    %41 = arith.mulf %39, %23 : vector<64x32xf32>
    %42 = arith.mulf %38, %37 : vector<64x32xf32>
    %43 = arith.addf %41, %42 : vector<64x32xf32>
    %44 = math.tanh %43 : vector<64x32xf32>
    %45 = arith.mulf %40, %44 : vector<64x32xf32>
    %46 = vector.extract_strided_slice %6 {offsets = [128, 0], sizes = [64, 128], strides = [1, 1]} : vector<512x128xf32> to vector<64x128xf32>
    %47 = arith.truncf %45 : vector<64x32xf32> to vector<64x32xbf16>
    %cst_11 = arith.constant dense<0.000000e+00> : vector<64x128xf32>
    %48 = tpu.matmul %47, %7, %cst_11 {dimension_numbers = #tpu.dot_dimension_numbers<[1], [0], [0], [1], [0, 0, 1, 1], [], []>} : vector<64x32xbf16>, vector<32x128xbf16>, vector<64x128xf32> -> vector<64x128xf32>
    %49 = arith.addf %46, %48 : vector<64x128xf32>
    %50 = vector.extract_strided_slice %49 {offsets = [0, 0], sizes = [64, 96], strides = [1, 1]} : vector<64x128xf32> to vector<64x96xf32>
    %51 = arith.negf %50 : vector<64x96xf32>
    %52 = math.exp %51 : vector<64x96xf32>
    %cst_12 = arith.constant 1.000000e+00 : f32
    %53 = vector.broadcast %cst_12 : f32 to vector<64x96xf32>
    %54 = arith.addf %53, %52 : vector<64x96xf32>
    %55 = arith.divf %53, %54 : vector<64x96xf32>
    %56 = vector.extract_strided_slice %49 {offsets = [0, 96], sizes = [64, 32], strides = [1, 1]} : vector<64x128xf32> to vector<64x32xf32>
    %57 = math.tanh %56 : vector<64x32xf32>
    %58 = vector.extract_strided_slice %55 {offsets = [0, 0], sizes = [64, 32], strides = [1, 1]} : vector<64x96xf32> to vector<64x32xf32>
    %59 = vector.extract_strided_slice %55 {offsets = [0, 32], sizes = [64, 32], strides = [1, 1]} : vector<64x96xf32> to vector<64x32xf32>
    %60 = vector.extract_strided_slice %55 {offsets = [0, 64], sizes = [64, 32], strides = [1, 1]} : vector<64x96xf32> to vector<64x32xf32>
    %61 = arith.mulf %59, %43 : vector<64x32xf32>
    %62 = arith.mulf %58, %57 : vector<64x32xf32>
    %63 = arith.addf %61, %62 : vector<64x32xf32>
    %64 = math.tanh %63 : vector<64x32xf32>
    %65 = arith.mulf %60, %64 : vector<64x32xf32>
    %66 = vector.extract_strided_slice %6 {offsets = [192, 0], sizes = [64, 128], strides = [1, 1]} : vector<512x128xf32> to vector<64x128xf32>
    %67 = arith.truncf %65 : vector<64x32xf32> to vector<64x32xbf16>
    %cst_13 = arith.constant dense<0.000000e+00> : vector<64x128xf32>
    %68 = tpu.matmul %67, %7, %cst_13 {dimension_numbers = #tpu.dot_dimension_numbers<[1], [0], [0], [1], [0, 0, 1, 1], [], []>} : vector<64x32xbf16>, vector<32x128xbf16>, vector<64x128xf32> -> vector<64x128xf32>
    %69 = arith.addf %66, %68 : vector<64x128xf32>
    %70 = vector.extract_strided_slice %69 {offsets = [0, 0], sizes = [64, 96], strides = [1, 1]} : vector<64x128xf32> to vector<64x96xf32>
    %71 = arith.negf %70 : vector<64x96xf32>
    %72 = math.exp %71 : vector<64x96xf32>
    %cst_14 = arith.constant 1.000000e+00 : f32
    %73 = vector.broadcast %cst_14 : f32 to vector<64x96xf32>
    %74 = arith.addf %73, %72 : vector<64x96xf32>
    %75 = arith.divf %73, %74 : vector<64x96xf32>
    %76 = vector.extract_strided_slice %69 {offsets = [0, 96], sizes = [64, 32], strides = [1, 1]} : vector<64x128xf32> to vector<64x32xf32>
    %77 = math.tanh %76 : vector<64x32xf32>
    %78 = vector.extract_strided_slice %75 {offsets = [0, 0], sizes = [64, 32], strides = [1, 1]} : vector<64x96xf32> to vector<64x32xf32>
    %79 = vector.extract_strided_slice %75 {offsets = [0, 32], sizes = [64, 32], strides = [1, 1]} : vector<64x96xf32> to vector<64x32xf32>
    %80 = vector.extract_strided_slice %75 {offsets = [0, 64], sizes = [64, 32], strides = [1, 1]} : vector<64x96xf32> to vector<64x32xf32>
    %81 = arith.mulf %79, %63 : vector<64x32xf32>
    %82 = arith.mulf %78, %77 : vector<64x32xf32>
    %83 = arith.addf %81, %82 : vector<64x32xf32>
    %84 = math.tanh %83 : vector<64x32xf32>
    %85 = arith.mulf %80, %84 : vector<64x32xf32>
    %86 = vector.extract_strided_slice %6 {offsets = [256, 0], sizes = [64, 128], strides = [1, 1]} : vector<512x128xf32> to vector<64x128xf32>
    %87 = arith.truncf %85 : vector<64x32xf32> to vector<64x32xbf16>
    %cst_15 = arith.constant dense<0.000000e+00> : vector<64x128xf32>
    %88 = tpu.matmul %87, %7, %cst_15 {dimension_numbers = #tpu.dot_dimension_numbers<[1], [0], [0], [1], [0, 0, 1, 1], [], []>} : vector<64x32xbf16>, vector<32x128xbf16>, vector<64x128xf32> -> vector<64x128xf32>
    %89 = arith.addf %86, %88 : vector<64x128xf32>
    %90 = vector.extract_strided_slice %89 {offsets = [0, 0], sizes = [64, 96], strides = [1, 1]} : vector<64x128xf32> to vector<64x96xf32>
    %91 = arith.negf %90 : vector<64x96xf32>
    %92 = math.exp %91 : vector<64x96xf32>
    %cst_16 = arith.constant 1.000000e+00 : f32
    %93 = vector.broadcast %cst_16 : f32 to vector<64x96xf32>
    %94 = arith.addf %93, %92 : vector<64x96xf32>
    %95 = arith.divf %93, %94 : vector<64x96xf32>
    %96 = vector.extract_strided_slice %89 {offsets = [0, 96], sizes = [64, 32], strides = [1, 1]} : vector<64x128xf32> to vector<64x32xf32>
    %97 = math.tanh %96 : vector<64x32xf32>
    %98 = vector.extract_strided_slice %95 {offsets = [0, 0], sizes = [64, 32], strides = [1, 1]} : vector<64x96xf32> to vector<64x32xf32>
    %99 = vector.extract_strided_slice %95 {offsets = [0, 32], sizes = [64, 32], strides = [1, 1]} : vector<64x96xf32> to vector<64x32xf32>
    %100 = vector.extract_strided_slice %95 {offsets = [0, 64], sizes = [64, 32], strides = [1, 1]} : vector<64x96xf32> to vector<64x32xf32>
    %101 = arith.mulf %99, %83 : vector<64x32xf32>
    %102 = arith.mulf %98, %97 : vector<64x32xf32>
    %103 = arith.addf %101, %102 : vector<64x32xf32>
    %104 = math.tanh %103 : vector<64x32xf32>
    %105 = arith.mulf %100, %104 : vector<64x32xf32>
    %106 = vector.extract_strided_slice %6 {offsets = [320, 0], sizes = [64, 128], strides = [1, 1]} : vector<512x128xf32> to vector<64x128xf32>
    %107 = arith.truncf %105 : vector<64x32xf32> to vector<64x32xbf16>
    %cst_17 = arith.constant dense<0.000000e+00> : vector<64x128xf32>
    %108 = tpu.matmul %107, %7, %cst_17 {dimension_numbers = #tpu.dot_dimension_numbers<[1], [0], [0], [1], [0, 0, 1, 1], [], []>} : vector<64x32xbf16>, vector<32x128xbf16>, vector<64x128xf32> -> vector<64x128xf32>
    %109 = arith.addf %106, %108 : vector<64x128xf32>
    %110 = vector.extract_strided_slice %109 {offsets = [0, 0], sizes = [64, 96], strides = [1, 1]} : vector<64x128xf32> to vector<64x96xf32>
    %111 = arith.negf %110 : vector<64x96xf32>
    %112 = math.exp %111 : vector<64x96xf32>
    %cst_18 = arith.constant 1.000000e+00 : f32
    %113 = vector.broadcast %cst_18 : f32 to vector<64x96xf32>
    %114 = arith.addf %113, %112 : vector<64x96xf32>
    %115 = arith.divf %113, %114 : vector<64x96xf32>
    %116 = vector.extract_strided_slice %109 {offsets = [0, 96], sizes = [64, 32], strides = [1, 1]} : vector<64x128xf32> to vector<64x32xf32>
    %117 = math.tanh %116 : vector<64x32xf32>
    %118 = vector.extract_strided_slice %115 {offsets = [0, 0], sizes = [64, 32], strides = [1, 1]} : vector<64x96xf32> to vector<64x32xf32>
    %119 = vector.extract_strided_slice %115 {offsets = [0, 32], sizes = [64, 32], strides = [1, 1]} : vector<64x96xf32> to vector<64x32xf32>
    %120 = vector.extract_strided_slice %115 {offsets = [0, 64], sizes = [64, 32], strides = [1, 1]} : vector<64x96xf32> to vector<64x32xf32>
    %121 = arith.mulf %119, %103 : vector<64x32xf32>
    %122 = arith.mulf %118, %117 : vector<64x32xf32>
    %123 = arith.addf %121, %122 : vector<64x32xf32>
    %124 = math.tanh %123 : vector<64x32xf32>
    %125 = arith.mulf %120, %124 : vector<64x32xf32>
    %126 = vector.extract_strided_slice %6 {offsets = [384, 0], sizes = [64, 128], strides = [1, 1]} : vector<512x128xf32> to vector<64x128xf32>
    %127 = arith.truncf %125 : vector<64x32xf32> to vector<64x32xbf16>
    %cst_19 = arith.constant dense<0.000000e+00> : vector<64x128xf32>
    %128 = tpu.matmul %127, %7, %cst_19 {dimension_numbers = #tpu.dot_dimension_numbers<[1], [0], [0], [1], [0, 0, 1, 1], [], []>} : vector<64x32xbf16>, vector<32x128xbf16>, vector<64x128xf32> -> vector<64x128xf32>
    %129 = arith.addf %126, %128 : vector<64x128xf32>
    %130 = vector.extract_strided_slice %129 {offsets = [0, 0], sizes = [64, 96], strides = [1, 1]} : vector<64x128xf32> to vector<64x96xf32>
    %131 = arith.negf %130 : vector<64x96xf32>
    %132 = math.exp %131 : vector<64x96xf32>
    %cst_20 = arith.constant 1.000000e+00 : f32
    %133 = vector.broadcast %cst_20 : f32 to vector<64x96xf32>
    %134 = arith.addf %133, %132 : vector<64x96xf32>
    %135 = arith.divf %133, %134 : vector<64x96xf32>
    %136 = vector.extract_strided_slice %129 {offsets = [0, 96], sizes = [64, 32], strides = [1, 1]} : vector<64x128xf32> to vector<64x32xf32>
    %137 = math.tanh %136 : vector<64x32xf32>
    %138 = vector.extract_strided_slice %135 {offsets = [0, 0], sizes = [64, 32], strides = [1, 1]} : vector<64x96xf32> to vector<64x32xf32>
    %139 = vector.extract_strided_slice %135 {offsets = [0, 32], sizes = [64, 32], strides = [1, 1]} : vector<64x96xf32> to vector<64x32xf32>
    %140 = vector.extract_strided_slice %135 {offsets = [0, 64], sizes = [64, 32], strides = [1, 1]} : vector<64x96xf32> to vector<64x32xf32>
    %141 = arith.mulf %139, %123 : vector<64x32xf32>
    %142 = arith.mulf %138, %137 : vector<64x32xf32>
    %143 = arith.addf %141, %142 : vector<64x32xf32>
    %144 = math.tanh %143 : vector<64x32xf32>
    %145 = arith.mulf %140, %144 : vector<64x32xf32>
    %146 = vector.extract_strided_slice %6 {offsets = [448, 0], sizes = [64, 128], strides = [1, 1]} : vector<512x128xf32> to vector<64x128xf32>
    %147 = arith.truncf %145 : vector<64x32xf32> to vector<64x32xbf16>
    %cst_21 = arith.constant dense<0.000000e+00> : vector<64x128xf32>
    %148 = tpu.matmul %147, %7, %cst_21 {dimension_numbers = #tpu.dot_dimension_numbers<[1], [0], [0], [1], [0, 0, 1, 1], [], []>} : vector<64x32xbf16>, vector<32x128xbf16>, vector<64x128xf32> -> vector<64x128xf32>
    %149 = arith.addf %146, %148 : vector<64x128xf32>
    %150 = vector.extract_strided_slice %149 {offsets = [0, 0], sizes = [64, 96], strides = [1, 1]} : vector<64x128xf32> to vector<64x96xf32>
    %151 = arith.negf %150 : vector<64x96xf32>
    %152 = math.exp %151 : vector<64x96xf32>
    %cst_22 = arith.constant 1.000000e+00 : f32
    %153 = vector.broadcast %cst_22 : f32 to vector<64x96xf32>
    %154 = arith.addf %153, %152 : vector<64x96xf32>
    %155 = arith.divf %153, %154 : vector<64x96xf32>
    %156 = vector.extract_strided_slice %149 {offsets = [0, 96], sizes = [64, 32], strides = [1, 1]} : vector<64x128xf32> to vector<64x32xf32>
    %157 = math.tanh %156 : vector<64x32xf32>
    %158 = vector.extract_strided_slice %155 {offsets = [0, 0], sizes = [64, 32], strides = [1, 1]} : vector<64x96xf32> to vector<64x32xf32>
    %159 = vector.extract_strided_slice %155 {offsets = [0, 32], sizes = [64, 32], strides = [1, 1]} : vector<64x96xf32> to vector<64x32xf32>
    %160 = vector.extract_strided_slice %155 {offsets = [0, 64], sizes = [64, 32], strides = [1, 1]} : vector<64x96xf32> to vector<64x32xf32>
    %161 = arith.mulf %159, %143 : vector<64x32xf32>
    %162 = arith.mulf %158, %157 : vector<64x32xf32>
    %163 = arith.addf %161, %162 : vector<64x32xf32>
    %164 = math.tanh %163 : vector<64x32xf32>
    %165 = arith.mulf %160, %164 : vector<64x32xf32>
    %166 = vector.extract_strided_slice %1 {offsets = [448, 0], sizes = [64, 32], strides = [1, 1]} : vector<512x32xbf16> to vector<64x32xbf16>
    %c0_23 = arith.constant 0 : index
    %c0_24 = arith.constant 0 : index
    %167 = vector.load %arg4[%c0_23, %c0_24] : memref<32x128xbf16, #tpu.memory_space<vmem>>, vector<32x128xbf16>
    %cst_25 = arith.constant dense<0.000000e+00> : vector<64x128xf32>
    %168 = tpu.matmul %166, %167, %cst_25 {dimension_numbers = #tpu.dot_dimension_numbers<[1], [0], [0], [1], [0, 0, 1, 1], [], []>} : vector<64x32xbf16>, vector<32x128xbf16>, vector<64x128xf32> -> vector<64x128xf32>
    %c0_26 = arith.constant 0 : index
    %c0_27 = arith.constant 0 : index
    %169 = vector.load %arg5[%c0_26, %c0_27] : memref<1x128xf32, #tpu.memory_space<vmem>>, vector<1x128xf32>
    %170 = vector.broadcast %169 : vector<1x128xf32> to vector<64x128xf32>
    %171 = arith.addf %168, %170 : vector<64x128xf32>
    %cst_28 = arith.constant 0.000000e+00 : f32
    %172 = vector.broadcast %cst_28 : f32 to vector<64x32xf32>
    %173 = vector.extract_strided_slice %171 {offsets = [0, 0], sizes = [64, 96], strides = [1, 1]} : vector<64x128xf32> to vector<64x96xf32>
    %174 = arith.negf %173 : vector<64x96xf32>
    %175 = math.exp %174 : vector<64x96xf32>
    %cst_29 = arith.constant 1.000000e+00 : f32
    %176 = vector.broadcast %cst_29 : f32 to vector<64x96xf32>
    %177 = arith.addf %176, %175 : vector<64x96xf32>
    %178 = arith.divf %176, %177 : vector<64x96xf32>
    %179 = vector.extract_strided_slice %171 {offsets = [0, 96], sizes = [64, 32], strides = [1, 1]} : vector<64x128xf32> to vector<64x32xf32>
    %180 = math.tanh %179 : vector<64x32xf32>
    %181 = vector.extract_strided_slice %178 {offsets = [0, 0], sizes = [64, 32], strides = [1, 1]} : vector<64x96xf32> to vector<64x32xf32>
    %182 = vector.extract_strided_slice %178 {offsets = [0, 32], sizes = [64, 32], strides = [1, 1]} : vector<64x96xf32> to vector<64x32xf32>
    %183 = vector.extract_strided_slice %178 {offsets = [0, 64], sizes = [64, 32], strides = [1, 1]} : vector<64x96xf32> to vector<64x32xf32>
    %184 = arith.mulf %182, %172 : vector<64x32xf32>
    %185 = arith.mulf %181, %180 : vector<64x32xf32>
    %186 = arith.addf %184, %185 : vector<64x32xf32>
    %187 = math.tanh %186 : vector<64x32xf32>
    %188 = arith.mulf %183, %187 : vector<64x32xf32>
    %189 = arith.truncf %165 : vector<64x32xf32> to vector<64x32xbf16>
    %c0_30 = arith.constant 0 : index
    %c0_31 = arith.constant 0 : index
    %190 = vector.load %arg7[%c0_30, %c0_31] : memref<32x128xbf16, #tpu.memory_space<vmem>>, vector<32x128xbf16>
    %cst_32 = arith.constant dense<0.000000e+00> : vector<64x128xf32>
    %191 = tpu.matmul %189, %190, %cst_32 {dimension_numbers = #tpu.dot_dimension_numbers<[1], [0], [0], [1], [0, 0, 1, 1], [], []>} : vector<64x32xbf16>, vector<32x128xbf16>, vector<64x128xf32> -> vector<64x128xf32>
    %192 = arith.truncf %188 : vector<64x32xf32> to vector<64x32xbf16>
    %c0_33 = arith.constant 0 : index
    %c0_34 = arith.constant 0 : index
    %193 = vector.load %arg8[%c0_33, %c0_34] : memref<32x128xbf16, #tpu.memory_space<vmem>>, vector<32x128xbf16>
    %cst_35 = arith.constant dense<0.000000e+00> : vector<64x128xf32>
    %194 = tpu.matmul %192, %193, %cst_35 {dimension_numbers = #tpu.dot_dimension_numbers<[1], [0], [0], [1], [0, 0, 1, 1], [], []>} : vector<64x32xbf16>, vector<32x128xbf16>, vector<64x128xf32> -> vector<64x128xf32>
    %195 = arith.addf %191, %194 : vector<64x128xf32>
    %c0_36 = arith.constant 0 : index
    %c0_37 = arith.constant 0 : index
    %196 = vector.load %arg9[%c0_36, %c0_37] : memref<1x128xf32, #tpu.memory_space<vmem>>, vector<1x128xf32>
    %197 = vector.broadcast %196 : vector<1x128xf32> to vector<64x128xf32>
    %198 = arith.addf %195, %197 : vector<64x128xf32>
    %cst_38 = arith.constant dense<0xFF800000> : vector<64xf32>
    %199 = vector.multi_reduction <maximumf>, %198, %cst_38 [1] : vector<64x128xf32> to vector<64xf32>
    %200 = vector.shape_cast %199 : vector<64xf32> to vector<64x1xf32>
    %201 = vector.broadcast %200 : vector<64x1xf32> to vector<64x128xf32>
    %202 = arith.subf %198, %201 : vector<64x128xf32>
    %203 = math.exp %202 : vector<64x128xf32>
    %cst_39 = arith.constant dense<0.000000e+00> : vector<64xf32>
    %204 = vector.multi_reduction <add>, %203, %cst_39 [1] : vector<64x128xf32> to vector<64xf32>
    %205 = vector.shape_cast %204 : vector<64xf32> to vector<64x1xf32>
    %206 = math.log %205 : vector<64x1xf32>
    %207 = arith.addf %206, %200 : vector<64x1xf32>
    %208 = vector.broadcast %207 : vector<64x1xf32> to vector<64x128xf32>
    %209 = arith.subf %198, %208 : vector<64x128xf32>
    %c0_40 = arith.constant 0 : index
    %c0_41 = arith.constant 0 : index
    %210 = vector.load %arg10[%c0_40, %c0_41] : memref<64x128xf32, #tpu.memory_space<vmem>>, vector<64x128xf32>
    tpu.vector_store %arg10[%c0_40, %c0_41], %209 {strides = array<i32>} : memref<64x128xf32, #tpu.memory_space<vmem>>, vector<64x128xf32>,
    return
  }
  func.func @transform_0(%arg0: i32) -> (i32, i32) {
    %c0_i32 = arith.constant 0 : i32
    %c0_i32_0 = arith.constant 0 : i32
    return %arg0, %c0_i32 : i32, i32
  }
  func.func @transform_1(%arg0: i32) -> (i32, i32) {
    %c0_i32 = arith.constant 0 : i32
    %c0_i32_0 = arith.constant 0 : i32
    %c0_i32_1 = arith.constant 0 : i32
    return %c0_i32, %c0_i32_0 : i32, i32
  }
  func.func @transform_2(%arg0: i32) -> (i32, i32) {
    %c0_i32 = arith.constant 0 : i32
    %c0_i32_0 = arith.constant 0 : i32
    %c0_i32_1 = arith.constant 0 : i32
    return %c0_i32, %c0_i32_0 : i32, i32
  }
  func.func @transform_3(%arg0: i32) -> (i32, i32) {
    %c0_i32 = arith.constant 0 : i32
    %c0_i32_0 = arith.constant 0 : i32
    %c0_i32_1 = arith.constant 0 : i32
    return %c0_i32, %c0_i32_0 : i32, i32
  }
  func.func @transform_4(%arg0: i32) -> (i32, i32) {
    %c0_i32 = arith.constant 0 : i32
    %c0_i32_0 = arith.constant 0 : i32
    %c0_i32_1 = arith.constant 0 : i32
    return %c0_i32, %c0_i32_0 : i32, i32
  }
  func.func @transform_5(%arg0: i32) -> (i32, i32) {
    %c0_i32 = arith.constant 0 : i32
    %c0_i32_0 = arith.constant 0 : i32
    %c0_i32_1 = arith.constant 0 : i32
    return %c0_i32, %c0_i32_0 : i32, i32
  }
  func.func @transform_6(%arg0: i32) -> (i32, i32) {
    %c0_i32 = arith.constant 0 : i32
    %c0_i32_0 = arith.constant 0 : i32
    %c0_i32_1 = arith.constant 0 : i32
    return %c0_i32, %c0_i32_0 : i32, i32
  }
  func.func @transform_7(%arg0: i32) -> (i32, i32) {
    %c0_i32 = arith.constant 0 : i32
    %c0_i32_0 = arith.constant 0 : i32
    %c0_i32_1 = arith.constant 0 : i32
    return %c0_i32, %c0_i32_0 : i32, i32
  }
  func.func @transform_8(%arg0: i32) -> (i32, i32) {
    %c0_i32 = arith.constant 0 : i32
    %c0_i32_0 = arith.constant 0 : i32
    %c0_i32_1 = arith.constant 0 : i32
    return %c0_i32, %c0_i32_0 : i32, i32
  }
  func.func @transform_9(%arg0: i32) -> (i32, i32) {
    %c0_i32 = arith.constant 0 : i32
    %c0_i32_0 = arith.constant 0 : i32
    return %arg0, %c0_i32 : i32, i32
  }
}

</mosaic_0001>

<bundles_post_ra>
// kernel: tpu_custom_call.1
= control target key start
LH: loop header
LB: loop body
LE: loop exit
PB: predicated region body
PF: predicated region fallthrough
CT: control target
= control target key end

     0   :  { %14 = vsyncpa [#allocation3], 0  ;;  %s6524_s0 = inlined_call_operand.vmem [shape: f32[1024,32], index: 0, kind: input, shape index: {}]   ;;  %s6525_s1 = inlined_call_operand.vmem [shape: bf16[32,128], index: 1, kind: input, shape index: {}]   ;;  %s6526_s2 = inlined_call_operand.vmem [shape: f32[1,128], index: 2, kind: input, shape index: {}]   ;;  %s6527_s3 = inlined_call_operand.vmem [shape: bf16[32,128], index: 3, kind: input, shape index: {}]   ;;  %s6528_s4 = inlined_call_operand.vmem [shape: f32[1,128], index: 4, kind: input, shape index: {}]   ;;  %s6529_s5 = inlined_call_operand.vmem [shape: bf16[32,128], index: 5, kind: input, shape index: {}]   ;;  %s6530_s6 = inlined_call_operand.vmem [shape: bf16[32,128], index: 6, kind: input, shape index: {}]   ;;  %s6531_s7 = inlined_call_operand.vmem [shape: bf16[32,128], index: 7, kind: input, shape index: {}]   ;;  %s6532_s8 = inlined_call_operand.vmem [shape: f32[1,128], index: 8, kind: input, shape index: {}]   ;;  %s6533_s9 = inlined_call_operand.hbm [shape: f32[128,128], index: 9, kind: output, shape index: {}]  }
   0x1   :  { %16 = vsyncpa [#allocation3 + $0x1], 0  ;;  %s5144_s30 = smov 0   ;;  %s5146_s10 = smov 0  }
   0x2   :  { %s5148_s11 = smov 0   ;;  %s5150_s12 = smov 0  }
   0x3 LB: > { %s5165_s13 = sadd.s32 4294967295, %s5087_s12   ;;  %s3784_s14 = sadd.s32 4294967294, %s5087_s12   ;;  %s5087_s12 = sphi %s5150_s12, %s6539_s12   ;;  %s5083_s11 = sphi %s5148_s11, %s6538_s11   ;;  %s5079_s10 = sphi %s5146_s10, %s6537_s10   ;;  %s5075_s30 = sphi %s5144_s30, %s6536_s30  }
   0x4   : > { %s5169_s15 = sadd.s32 1, %s5087_s12   ;;  %s223_s16 = sadd.s32 1, %s5083_s11 }
   0x5   : > { %s220_s17 = ssub.s32 %s5087_s12, %s5169_s15  ;;  %p233_p0 = scmp.ne.s32.totalorder %s5083_s11, %s5079_s10 }
   0x6   : > { %p221_p1 = scmp.eq.s32.totalorder %s220_s17, 0  ;;  %p234_p2 = scmp.eq.s32.totalorder %s5165_s13, 1 }
   0x7   : > { %p239_p3 = scmp.ne.s32.totalorder %s5079_s10, %s5075_s30  ;;  %p240_p4 = scmp.eq.s32.totalorder %s3784_s14, 1 }
   0x8   : > { %s5180_s18 = scalar_select %p221_p1, %s5083_s11, %s223_s16  }
   0x9   : > { %p5182_p5 = por %p234_p2, %p233_p0  ;;  %p5186_p6 = por %p240_p4, %p239_p3 }
   0xa   : > { %p3787_p7 = scmp.ge.s32.totalorder %s5087_s12, 1  ;;  %p291_p8 = scmp.lt.s32.totalorder %s5087_s12, 3 }
   0xc   : > { %p292_p9 = pnand %p3787_p7, %p291_p8 }
   0xd   : > { %v4403_v0 = vld [vmem:[%s6525_s1] sm:$0xff] (!%p292_p9)   ;;  %s3789_s23 = sshll.u32 (!%p292_p9), %s5165_s13, 6  ;;  %v4404_v1 = vld [vmem:[%s6525_s1 + $0x8] sm:$0xff] (!%p292_p9)   ;;  %vm454_vm0 = vcmask (!%p292_p9), 261120   ;;  %s5089_s17 = smov (!%p292_p9), 32  }
   0xe   : > { %295 = sbr.rel (%p292_p9) target bundleno = 6305 (0x18a1), region = 56  ;;  %p328_p10 = scmp.lt.s32.totalorder (!%p292_p9), %s3789_s23, 127  ;;  %4048 = vmatprep.subr.bf16.mxu0 (!%p292_p9), %v4403_v0  ;;  %4236 = vmatprep.subr.bf16.mxu1 (!%p292_p9), %v4403_v0  ;;  %v5219_v14 = vld [vmem:[%s6526_s2] ss:$0 sm:$0xff] (!%p292_p9) }
   0xf   : > { %4049 = vmatpush3.bf16.msra.mxu0 (!%p292_p9), %v4403_v0  ;;  %4238 = vmatpush3.bf16.msra.mxu1 (!%p292_p9), %v4403_v0  ;;  %s5090_s25 = smov (!%p292_p9), 64   ;;  %s3953_s21 = sshll.u32 (!%p292_p9), %s5165_s13, 10 }
  0x10   : > { %4050 = vmatprep.subr.bf16.mxu0 (!%p292_p9), %v4404_v1  ;;  %4237 = vmatprep.subr.bf16.mxu1 (!%p292_p9), %v4404_v1  ;;  %s5091_s27 = smov (!%p292_p9), [#allocation2]  }
  0x13   : > { %4051 = vmatpush3.bf16.msra.mxu0 (!%p292_p9), %v4404_v1  ;;  %4239 = vmatpush3.bf16.msra.mxu1 (!%p292_p9), %v4404_v1 }
  0x15   : > { %s6541_s23 = smov (!%p328_p10, %s3789_s23), 127 }
  0x16   : > { %s3790_s26 = sshll.u32 %s6541_s23, 3 }
  0x17   : > { %s5202_s29 = scalar_lea.vmem %s6524_s0, %s3790_s26  ;;  %s6474_s26 = scalar_lea.hbm %s6533_s9, %s3953_s21 }
  0x18   : > { %v335_v2 = vld [vmem:[%s5202_s29] sm:$0xff]  ;;  %v336_v3 = vld [vmem:[%s5202_s29 + $0x8] sm:$0xff]  ;;  %v337_v4 = vld [vmem:[%s5202_s29 + $0x10] sm:$0xff] }
  0x19   : > { %v399_v5 = vpack.c.bf16 %v336_v3, %v335_v2  ;;  %v338_v6 = vld [vmem:[%s5202_s29 + $0x18] sm:$0xff]  ;;  %v339_v7 = vld [vmem:[%s5202_s29 + $0x20] sm:$0xff]  ;;  %v340_v8 = vld [vmem:[%s5202_s29 + $0x28] sm:$0xff] }
  0x1a   : > { %v400_v9 = vpack.c.bf16 %v338_v6, %v337_v4  ;;  %v401_v10 = vpack.c.bf16 %v340_v8, %v339_v7  ;;  %v341_v11 = vld [vmem:[%s5202_s29 + $0x30] sm:$0xff]  ;;  %v342_v12 = vld [vmem:[%s5202_s29 + $0x38] sm:$0xff] }
  0x1b   : > { %4052 = vmatprep.mubr.msk.bf16.mxu0 %vm454_vm0, %v399_v5  ;;  %v402_v13 = vpack.c.bf16 %v342_v12, %v341_v11 }
  0x1c   : > { %4053 = vmatmul.mubr.msk.bf16.vlgmr.msra.gmra.mrb[0].mxu0 %vm454_vm0, %v400_v9 }
  0x1d   : > { %4056 = vmatprep.mubr.msk.bf16.mxu0 %vm454_vm0, %v401_v10 }
  0x24   : > { %4057 = vmatmul.mubr.msk.bf16.gmra.mrb[4].mxu0 %vm454_vm0, %v402_v13 }
  0xef   : > { %v4054_v15 = vpop.f32.mrb[0].mxu0 }
  0xf0   : > { %v594_v16 = vadd.f32 %v4054_v15, %v5219_v14  ;;  %v585_v17 = vpop.f32.mrb[1].mxu0 }
  0xf1   : > { %v586_v18 = vadd.f32 %v5219_v14, %v585_v17  ;;  %v4055_v19 = vpop.f32.mrb[2].mxu0 }
  0xf2   : > { %4413 = vtanh.f32 %v594_v16  ;;  %v588_v20 = vpop.f32.mrb[3].mxu0  ;;  %v597_v21 = vadd.f32 %v4055_v19, %v5219_v14  ;;  %v3828_v40 = vmul.f32 -1.442695, %v594_v16 }
  0xf3   : > { %4415 = vtanh.f32 %v586_v18  ;;  %v589_v22 = vadd.f32 %v5219_v14, %v588_v20  ;;  %v3826_v39 = vmul.f32 -1.442695, %v586_v18 }
  0xf4   : > { %4417 = vtanh.f32 %v597_v21  ;;  %v3829_v42 = vmul.f32 -1.442695, %v597_v21 }
  0xf5   : > { %4419 = vtanh.f32 %v589_v22  ;;  %v3827_v41 = vmul.f32 -1.442695, %v589_v22 }
  0xf7   : > { %v4058_v23 = vpop.f32.mrb[4].mxu0 }
  0xf8   : > { %v601_v24 = vpop.f32.mrb[5].mxu0  ;;  %v610_v28 = vadd.f32 %v4058_v23, %v5219_v14 }
  0xf9   : > { %v602_v25 = vadd.f32 %v5219_v14, %v601_v24  ;;  %v4059_v26 = vpop.f32.mrb[6].mxu0 }
  0xfa   : > { %v604_v27 = vpop.f32.mrb[7].mxu0  ;;  %v613_v33 = vadd.f32 %v4059_v26, %v5219_v14  ;;  %v3832_v45 = vmul.f32 -1.442695, %v610_v28 }
  0xfb   : > { %4421 = vtanh.f32 %v602_v25  ;;  %v605_v31 = vadd.f32 %v5219_v14, %v604_v27  ;;  %v3830_v43 = vmul.f32 -1.442695, %v602_v25 }
  0xfc   : > { %v4414_v29 = vpop.eup %4413  ;;  %4423 = vtanh.f32 %v610_v28  ;;  %v3833_v50 = vmul.f32 -1.442695, %v613_v33 }
  0xfd   : > { %v4416_v30 = vpop.eup %4415  ;;  %920 = vrot.lane.b32.xlu1 %v4414_v29, %s5089_s17  ;;  %4425 = vtanh.f32 %v605_v31  ;;  %v3831_v46 = vmul.f32 -1.442695, %v605_v31 }
  0xfe   : > { %916 = vrot.lane.b32.xlu0 %v4416_v30, %s5089_s17  ;;  %v4418_v32 = vpop.eup %4417  ;;  %4427 = vtanh.f32 %v613_v33 }
  0xff   : > { %v4420_v34 = vpop.eup %4419  ;;  %4429 = vpow2.f32 %v3826_v39 }
 0x100   : > { %4431 = vpow2.f32 %v3828_v40 }
 0x101   : > { %922 = vrot.lane.b32.xlu1 %v4418_v32, %s5089_s17  ;;  %4433 = vpow2.f32 %v3827_v41 }
 0x102   : > { %918 = vrot.lane.b32.xlu0 %v4420_v34, %s5089_s17  ;;  %4435 = vpow2.f32 %v3829_v42 }
 0x103   : > { %4437 = vpow2.f32 %v3830_v43 }
 0x104   : > { %4439 = vpow2.f32 %v3832_v45 }
 0x105   : > { %v4422_v35 = vpop.eup %4421  ;;  %4441 = vpow2.f32 %v3831_v46 }
 0x106   : > { %924 = vrot.lane.b32.xlu0 %v4422_v35, %s5089_s17  ;;  %v4424_v36 = vpop.eup %4423 }
 0x107   : > { %v4426_v37 = vpop.eup %4425 }
 0x108   : > { %926 = vrot.lane.b32.xlu1 %v4426_v37, %s5089_s17  ;;  %v4428_v38 = vpop.eup %4427 }
 0x109   : > { %v4430_v44 = vpop.eup %4429 }
 0x10a   : > { %928 = vrot.lane.b32.xlu0 %v4424_v36, %s5089_s17  ;;  %v868_v47 = vadd.f32 1.0, %v4430_v44  ;;  %v4432_v48 = vpop.eup %4431 }
 0x10b   : > { %v4434_v49 = vpop.eup %4433  ;;  %v870_v51 = vadd.f32 1.0, %v4432_v48 }
 0x10c   : > { %930 = vrot.lane.b32.xlu1 %v4428_v38, %s5089_s17  ;;  %4443 = vrcp.f32 %v868_v47  ;;  %v4436_v52 = vpop.eup %4435  ;;  %v869_v53 = vadd.f32 1.0, %v4434_v49 }
 0x10d   : > { %v4438_v54 = vpop.eup %4437  ;;  %4445 = vpow2.f32 %v3833_v50  ;;  %v871_v55 = vadd.f32 1.0, %v4436_v52 }
 0x10e   : > { %4447 = vrcp.f32 %v870_v51  ;;  %v872_v56 = vadd.f32 1.0, %v4438_v54  ;;  %v4440_v57 = vpop.eup %4439  ;;  %v343_v54 = vld [vmem:[%s5202_s29 + $0x40] sm:$0xff] }
 0x10f   : > { %4449 = vrcp.f32 %v869_v53  ;;  %v4442_v58 = vpop.eup %4441  ;;  %v874_v60 = vadd.f32 1.0, %v4440_v57  ;;  %v5309_v53 = vld [vmem:[%s6529_s5] sm:$0xff]  }
 0x110   : > { %4451 = vrcp.f32 %v871_v55  ;;  %v873_v1 = vadd.f32 1.0, %v4442_v58  ;;  %v344_v55 = vld [vmem:[%s5202_s29 + $0x48] sm:$0xff]  ;;  %4116 = vmatprep.subr.bf16.mxu0 %v5309_v53 }
 0x111   : > { %4453 = vrcp.f32 %v872_v56  ;;  %v403_v57 = vpack.c.bf16 %v344_v55, %v343_v54  ;;  %v5316_v58 = vld [vmem:[%s6529_s5 + $0x8] sm:$0xff]   ;;  %4117 = vmatpush3.bf16.msra.mxu0 %v5309_v53 }
 0x112   : > { %4455 = vrcp.f32 %v874_v60  ;;  %v345_v60 = vld [vmem:[%s5202_s29 + $0x50] sm:$0xff]  ;;  %4118 = vmatprep.subr.bf16.mxu0 %v5316_v58 }
 0x113   : > { %4457 = vrcp.f32 %v873_v1  ;;  %4060 = vmatprep.mubr.msk.bf16.mxu0 %vm454_vm0, %v403_v57 }
 0x115   : > { %4119 = vmatpush3.bf16.msra.mxu0 %v5316_v58 }
 0x116   : > { %v5237_v59 = vpop.eup %4443  ;;  %4128 = vmatprep.subr.bf16.mxu0 %v5309_v53 }
 0x117   : > { %v4446_v0 = vpop.eup %4445  ;;  %v900_v24 = vmul.f32 0.0, %v5237_v59 }
 0x118   : > { %v5241_v2 = vpop.eup %4447  ;;  %v875_v6 = vadd.f32 1.0, %v4446_v0  ;;  %v348_v0 = vld [vmem:[%s5202_s29 + $0x68] sm:$0xff] }
 0x119   : > { %v5244_v4 = vpop.eup %4449  ;;  %v902_v27 = vmul.f32 0.0, %v5241_v2 }
 0x11a   : > { %v5248_v9 = vpop.eup %4451  ;;  %4459 = vrcp.f32 %v875_v6  ;;  %v901_v29 = vmul.f32 0.0, %v5244_v4  ;;  %v350_v6 = vld [vmem:[%s5202_s29 + $0x78] sm:$0xff] }
 0x11b   : > { %v5251_v10 = vpop.eup %4453  ;;  %v903_v33 = vmul.f32 0.0, %v5248_v9 }
 0x11c   : > { %v5257_v15 = vpop.eup %4455  ;;  %v904_v34 = vmul.f32 0.0, %v5251_v10 }
 0x11d   : > { %v5260_v18 = vpop.eup %4457  ;;  %v906_v40 = vmul.f32 0.0, %v5257_v15 }
 0x11e   : > { %v905_v43 = vmul.f32 0.0, %v5260_v18 }
 0x124   : > { %v5265_v21 = vpop.eup %4459 }
 0x125   : > { %v907_v48 = vmul.f32 0.0, %v5265_v21 }
 0x16f   : > { %v921_v63 = vpop.permute.xlu1 %920 }
 0x170   : > { %v917_v61 = vpop.permute.xlu0 %916  ;;  %v942_v3 = vmul.f32 %v5241_v2, %v921_v63  ;;  %v347_v63 = vld [vmem:[%s5202_s29 + $0x60] sm:$0xff] }
 0x171   : > { %v940_v62 = vmul.f32 %v5237_v59, %v917_v61  ;;  %v346_v61 = vld [vmem:[%s5202_s29 + $0x58] sm:$0xff]  ;;  %v405_v1 = vpack.c.bf16 %v348_v0, %v347_v63 }
 0x173   : > { %956 = vrot.lane.b32.xlu0 %v940_v62, %s5089_s17  ;;  %v923_v8 = vpop.permute.xlu1 %922  ;;  %v404_v62 = vpack.c.bf16 %v346_v61, %v345_v60 }
 0x174   : > { %v919_v5 = vpop.permute.xlu0 %918  ;;  %v943_v12 = vmul.f32 %v5248_v9, %v923_v8 }
 0x175   : > { %v941_v7 = vmul.f32 %v5244_v4, %v919_v5  ;;  %4061 = vmatmul.mubr.msk.bf16.gmra.mrb[8].mxu0 %vm454_vm0, %v404_v62  ;;  %v349_v5 = vld [vmem:[%s5202_s29 + $0x70] sm:$0xff] }
 0x176   : > { %4064 = vmatprep.mubr.msk.bf16.mxu0 %vm454_vm0, %v405_v1  ;;  %v406_v8 = vpack.c.bf16 %v350_v6, %v349_v5 }
 0x177   : > { %960 = vrot.lane.b32.xlu0 %v942_v3, %s5089_s17  ;;  %958 = vrot.lane.b32.xlu1 %v941_v7, %s5089_s17 }
 0x178   : > { %v925_v11 = vpop.permute.xlu0 %924 }
 0x179   : > { %v944_v13 = vmul.f32 %v5251_v10, %v925_v11 }
 0x17a   : > { %v927_v19 = vpop.permute.xlu1 %926 }
 0x17b   : > { %962 = vrot.lane.b32.xlu1 %v943_v12, %s5089_s17  ;;  %964 = vrot.lane.b32.xlu0 %v944_v13, %s5089_s17  ;;  %v945_v20 = vmul.f32 %v5260_v18, %v927_v19 }
 0x17c   : > { %v929_v16 = vpop.permute.xlu0 %928 }
 0x17d   : > { %v946_v17 = vmul.f32 %v5257_v15, %v929_v16  ;;  %4065 = vmatmul.mubr.msk.bf16.gmra.mrb[12].mxu0 %vm454_vm0, %v406_v8 }
 0x17e   : > { %v931_v22 = vpop.permute.xlu1 %930 }
 0x17f   : > { %968 = vrot.lane.b32.xlu0 %v946_v17, %s5089_s17  ;;  %966 = vrot.lane.b32.xlu1 %v945_v20, %s5089_s17  ;;  %v947_v23 = vmul.f32 %v5265_v21, %v931_v22 }
 0x183   : > { %970 = vrot.lane.b32.xlu1 %v947_v23, %s5089_s17 }
 0x1e5   : > { %v957_v25 = vpop.permute.xlu0 %956 }
 0x1e6   : > { %v5270_v26 = vadd.f32 %v957_v25, %v900_v24 }
 0x1e8   : > { %4461 = vtanh.f32 %v5270_v26 }
 0x1e9   : > { %v961_v28 = vpop.permute.xlu0 %960  ;;  %v959_v31 = vpop.permute.xlu1 %958 }
 0x1ea   : > { %v5275_v30 = vadd.f32 %v961_v28, %v902_v27  ;;  %v5277_v32 = vadd.f32 %v959_v31, %v901_v29 }
 0x1ec   : > { %4463 = vtanh.f32 %v5275_v30 }
 0x1ed   : > { %4465 = vtanh.f32 %v5277_v32  ;;  %v963_v35 = vpop.permute.xlu1 %962  ;;  %v965_v36 = vpop.permute.xlu0 %964 }
 0x1ee   : > { %v5283_v37 = vadd.f32 %v963_v35, %v903_v33  ;;  %v5285_v38 = vadd.f32 %v965_v36, %v904_v34 }
 0x1f0   : > { %4467 = vtanh.f32 %v5283_v37 }
 0x1f1   : > { %4469 = vtanh.f32 %v5285_v38  ;;  %v969_v41 = vpop.permute.xlu0 %968  ;;  %v967_v45 = vpop.permute.xlu1 %966 }
 0x1f2   : > { %v4462_v39 = vpop.eup %4461  ;;  %v5291_v42 = vadd.f32 %v969_v41, %v906_v40  ;;  %v5295_v46 = vadd.f32 %v967_v45, %v905_v43 }
 0x1f3   : > { %1004 = vrot.lane.b32.xlu0 %v4462_v39, %s5089_s17 }
 0x1f4   : > { %4471 = vtanh.f32 %v5291_v42 }
 0x1f5   : > { %4473 = vtanh.f32 %v5295_v46  ;;  %v971_v49 = vpop.permute.xlu1 %970 }
 0x1f6   : > { %v4464_v44 = vpop.eup %4463  ;;  %v5301_v50 = vadd.f32 %v971_v49, %v907_v48 }
 0x1f7   : > { %1008 = vrot.lane.b32.xlu0 %v4464_v44, %s5089_s17  ;;  %v4466_v47 = vpop.eup %4465 }
 0x1f8   : > { %1006 = vrot.lane.b32.xlu1 %v4466_v47, %s5089_s17  ;;  %4475 = vtanh.f32 %v5301_v50 }
 0x1fa   : > { %v4468_v51 = vpop.eup %4467 }
 0x1fb   : > { %v4470_v52 = vpop.eup %4469 }
 0x1fc   : > { %1010 = vrot.lane.b32.xlu1 %v4468_v51, %s5089_s17  ;;  %1012 = vrot.lane.b32.xlu0 %v4470_v52, %s5089_s17 }
 0x1fe   : > { %v4472_v56 = vpop.eup %4471 }
 0x1ff   : > { %v4474_v3 = vpop.eup %4473 }
 0x200   : > { %1016 = vrot.lane.b32.xlu0 %v4472_v56, %s5089_s17  ;;  %1014 = vrot.lane.b32.xlu1 %v4474_v3, %s5089_s17 }
 0x202   : > { %v4476_v7 = vpop.eup %4475 }
 0x204   : > { %1018 = vrot.lane.b32.xlu1 %v4476_v7, %s5089_s17 }
 0x265   : > { %v1005_v11 = vpop.permute.xlu0 %1004 }
 0x266   : > { %v1028_v13 = vmul.f32 %v5237_v59, %v1005_v11 }
 0x269   : > { %v1009_v17 = vpop.permute.xlu0 %1008 }
 0x26a   : > { %v1007_v12 = vpop.permute.xlu1 %1006  ;;  %v1030_v22 = vmul.f32 %v5241_v2, %v1009_v17 }
 0x26b   : > { %v1029_v16 = vmul.f32 %v5244_v4, %v1007_v12 }
 0x26d   : > { %v1036_v19 = vpack.c.bf16 %v1029_v16, %v1028_v13 }
 0x26e   : > { %v1011_v20 = vpop.permute.xlu1 %1010  ;;  %v1013_v25 = vpop.permute.xlu0 %1012 }
 0x26f   : > { %v1031_v23 = vmul.f32 %v5248_v9, %v1011_v20  ;;  %1044 = vrot.lane.b32.xlu0 %v1036_v19, %s5090_s25  ;;  %v1032_v28 = vmul.f32 %v5251_v10, %v1013_v25 }
 0x271   : > { %v1037_v24 = vpack.c.bf16 %v1031_v23, %v1030_v22 }
 0x272   : > { %v1015_v27 = vpop.permute.xlu1 %1014  ;;  %v1017_v4 = vpop.permute.xlu0 %1016 }
 0x273   : > { %1046 = vrot.lane.b32.xlu1 %v1037_v24, %s5090_s25  ;;  %v1033_v59 = vmul.f32 %v5260_v18, %v1015_v27  ;;  %v1034_v33 = vmul.f32 %v5257_v15, %v1017_v4 }
 0x275   : > { %v1038_v29 = vpack.c.bf16 %v1033_v59, %v1032_v28 }
 0x276   : > { %v1019_v31 = vpop.permute.xlu1 %1018 }
 0x277   : > { %v1035_v2 = vmul.f32 %v5265_v21, %v1019_v31  ;;  %1048 = vrot.lane.b32.xlu0 %v1038_v29, %s5090_s25 }
 0x279   : > { %v1039_v9 = vpack.c.bf16 %v1035_v2, %v1034_v33 }
 0x27b   : > { %1050 = vrot.lane.b32.xlu1 %v1039_v9, %s5090_s25 }
 0x2e1   : > { %v1045_v34 = vpop.permute.xlu0 %1044 }
 0x2e2   : > { %4120 = vmatprep.mubr.msk.bf16.mxu0 %vm454_vm0, %v1045_v34 }
 0x2e5   : > { %v1047_v35 = vpop.permute.xlu1 %1046 }
 0x2e6   : > { %4121 = vmatmul.mubr.msk.bf16.vlgmr.msra.gmra.mrb[8].mxu0 %vm454_vm0, %v1047_v35 }
 0x2e7   : > { %4129 = vmatpush3.bf16.msra.mxu0 %v5309_v53 }
 0x2e8   : > { %4130 = vmatprep.subr.bf16.mxu0 %v5316_v58 }
 0x2e9   : > { %v1049_v10 = vpop.permute.xlu0 %1048 }
 0x2ea   : > { %4124 = vmatprep.mubr.msk.bf16.mxu0 %vm454_vm0, %v1049_v10 }
 0x2eb   : > { %4131 = vmatpush3.bf16.msra.mxu0 %v5316_v58 }
 0x2ec   : > { %4140 = vmatprep.subr.bf16.mxu0 %v5309_v53 }
 0x2ed   : > { %v1051_v15 = vpop.permute.xlu1 %1050 }
 0x2ee   : > { %4125 = vmatmul.mubr.msk.bf16.gmra.mrb[12].mxu0 %vm454_vm0, %v1051_v15 }
 0x3b9   : > { %v4122_v18 = vpop.f32.mrb[8].mxu0 }
 0x3ba   : > { %v1110_v21 = vpop.f32.mrb[9].mxu0  ;;  %v4240_v41 = vadd.f32 %v4122_v18, %v5219_v14 }
 0x3bb   : > { %v4241_v36 = vadd.f32 %v5219_v14, %v1110_v21  ;;  %v4123_v39 = vpop.f32.mrb[10].mxu0 }
 0x3bc   : > { %v1113_v40 = vpop.f32.mrb[11].mxu0  ;;  %v4242_v44 = vadd.f32 %v4123_v39, %v5219_v14  ;;  %v3842_v5 = vmul.f32 -1.442695, %v4240_v41 }
 0x3bd   : > { %4477 = vtanh.f32 %v4241_v36  ;;  %v4243_v43 = vadd.f32 %v5219_v14, %v1113_v40  ;;  %v3840_v3 = vmul.f32 -1.442695, %v4241_v36 }
 0x3be   : > { %4479 = vtanh.f32 %v4240_v41  ;;  %v3843_v7 = vmul.f32 -1.442695, %v4242_v44 }
 0x3bf   : > { %4481 = vtanh.f32 %v4243_v43  ;;  %v3841_v6 = vmul.f32 -1.442695, %v4243_v43 }
 0x3c0   : > { %4483 = vtanh.f32 %v4242_v44 }
 0x3c1   : > { %v4126_v45 = vpop.f32.mrb[12].mxu0 }
 0x3c2   : > { %v1126_v47 = vpop.f32.mrb[13].mxu0  ;;  %v4244_v54 = vadd.f32 %v4126_v45, %v5219_v14 }
 0x3c3   : > { %v4245_v48 = vadd.f32 %v5219_v14, %v1126_v47  ;;  %v4127_v49 = vpop.f32.mrb[14].mxu0 }
 0x3c4   : > { %v1129_v52 = vpop.f32.mrb[15].mxu0  ;;  %v4246_v62 = vadd.f32 %v4127_v49, %v5219_v14  ;;  %v3846_v12 = vmul.f32 -1.442695, %v4244_v54 }
 0x3c5   : > { %4485 = vtanh.f32 %v4245_v48  ;;  %v4247_v57 = vadd.f32 %v5219_v14, %v1129_v52  ;;  %v3844_v8 = vmul.f32 -1.442695, %v4245_v48 }
 0x3c6   : > { %4487 = vtanh.f32 %v4244_v54  ;;  %v3847_v25 = vmul.f32 -1.442695, %v4246_v62 }
 0x3c7   : > { %v4478_v51 = vpop.eup %4477  ;;  %4489 = vtanh.f32 %v4247_v57  ;;  %v3845_v20 = vmul.f32 -1.442695, %v4247_v57 }
 0x3c8   : > { %1221 = vrot.lane.b32.xlu0 %v4478_v51, %s5089_s17  ;;  %v4480_v55 = vpop.eup %4479  ;;  %4491 = vtanh.f32 %v4246_v62 }
 0x3c9   : > { %v4482_v56 = vpop.eup %4481  ;;  %4493 = vpow2.f32 %v3840_v3 }
 0x3ca   : > { %1223 = vrot.lane.b32.xlu1 %v4482_v56, %s5089_s17  ;;  %v4484_v60 = vpop.eup %4483  ;;  %4495 = vpow2.f32 %v3842_v5 }
 0x3cb   : > { %4497 = vpow2.f32 %v3841_v6 }
 0x3cc   : > { %1225 = vrot.lane.b32.xlu0 %v4480_v55, %s5089_s17  ;;  %4499 = vpow2.f32 %v3843_v7 }
 0x3cd   : > { %4501 = vpow2.f32 %v3844_v8 }
 0x3ce   : > { %1227 = vrot.lane.b32.xlu1 %v4484_v60, %s5089_s17  ;;  %4503 = vpow2.f32 %v3846_v12 }
 0x3cf   : > { %v4486_v61 = vpop.eup %4485 }
 0x3d0   : > { %1229 = vrot.lane.b32.xlu0 %v4486_v61, %s5089_s17  ;;  %v4488_v63 = vpop.eup %4487 }
 0x3d1   : > { %v4490_v0 = vpop.eup %4489 }
 0x3d2   : > { %1231 = vrot.lane.b32.xlu1 %v4490_v0, %s5089_s17  ;;  %v4492_v1 = vpop.eup %4491 }
 0x3d3   : > { %v4494_v11 = vpop.eup %4493 }
 0x3d4   : > { %1233 = vrot.lane.b32.xlu0 %v4488_v63, %s5089_s17  ;;  %v4496_v13 = vpop.eup %4495  ;;  %v1173_v16 = vadd.f32 1.0, %v4494_v11 }
 0x3d5   : > { %v4498_v17 = vpop.eup %4497  ;;  %v1175_v19 = vadd.f32 1.0, %v4496_v13 }
 0x3d6   : > { %1235 = vrot.lane.b32.xlu1 %v4492_v1, %s5089_s17  ;;  %4505 = vrcp.f32 %v1173_v16  ;;  %v1174_v22 = vadd.f32 1.0, %v4498_v17  ;;  %v4500_v23 = vpop.eup %4499 }
 0x3d7   : > { %4507 = vrcp.f32 %v1175_v19  ;;  %v4502_v24 = vpop.eup %4501  ;;  %v1176_v27 = vadd.f32 1.0, %v4500_v23 }
 0x3d8   : > { %4509 = vpow2.f32 %v3845_v20  ;;  %v1177_v28 = vadd.f32 1.0, %v4502_v24  ;;  %v4504_v59 = vpop.eup %4503 }
 0x3d9   : > { %4511 = vrcp.f32 %v1174_v22  ;;  %v1179_v31 = vadd.f32 1.0, %v4504_v59  ;;  %v351_v59 = vld [vmem:[%s5202_s29 + $0x80] sm:$0xff] }
 0x3da   : > { %4513 = vpow2.f32 %v3847_v25 }
 0x3db   : > { %4515 = vrcp.f32 %v1176_v27 }
 0x3dc   : > { %4517 = vrcp.f32 %v1177_v28 }
 0x3dd   : > { %4519 = vrcp.f32 %v1179_v31  ;;  %v353_v31 = vld [vmem:[%s5202_s29 + $0x90] sm:$0xff] }
 0x3e0   : > { %v5372_v4 = vpop.eup %4505 }
 0x3e1   : > { %v5375_v2 = vpop.eup %4507  ;;  %v1205_v61 = vmul.f32 %v5372_v4, %v5270_v26 }
 0x3e2   : > { %v4510_v9 = vpop.eup %4509  ;;  %v1207_v0 = vmul.f32 %v5375_v2, %v5275_v30 }
 0x3e3   : > { %v5379_v10 = vpop.eup %4511  ;;  %v1178_v18 = vadd.f32 1.0, %v4510_v9  ;;  %v354_v9 = vld [vmem:[%s5202_s29 + $0x98] sm:$0xff] }
 0x3e4   : > { %v4514_v36 = vpop.eup %4513  ;;  %v1206_v3 = vmul.f32 %v5379_v10, %v5277_v32 }
 0x3e5   : > { %v5384_v39 = vpop.eup %4515  ;;  %v1180_v43 = vadd.f32 1.0, %v4514_v36  ;;  %4521 = vrcp.f32 %v1178_v18 }
 0x3e6   : > { %v5386_v41 = vpop.eup %4517  ;;  %v1208_v26 = vmul.f32 %v5384_v39, %v5283_v37 }
 0x3e7   : > { %v5392_v48 = vpop.eup %4519  ;;  %4523 = vrcp.f32 %v1180_v43  ;;  %v1209_v30 = vmul.f32 %v5386_v41, %v5285_v38 }
 0x3e8   : > { %v1211_v16 = vmul.f32 %v5392_v48, %v5291_v42 }
 0x3ef   : > { %v5396_v52 = vpop.eup %4521 }
 0x3f0   : > { %v1210_v20 = vmul.f32 %v5396_v52, %v5295_v46 }
 0x3f1   : > { %v5400_v56 = vpop.eup %4523 }
 0x3f2   : > { %v1212_v25 = vmul.f32 %v5400_v56, %v5301_v50 }
 0x43a   : > { %v1222_v29 = vpop.permute.xlu0 %1221 }
 0x43b   : > { %v1245_v33 = vmul.f32 %v5372_v4, %v1222_v29  ;;  %v352_v29 = vld [vmem:[%s5202_s29 + $0x88] sm:$0xff] }
 0x43c   : > { %v1224_v15 = vpop.permute.xlu1 %1223 }
 0x43d   : > { %1261 = vrot.lane.b32.xlu0 %v1245_v33, %s5089_s17  ;;  %v1246_v21 = vmul.f32 %v5379_v10, %v1224_v15  ;;  %v407_v33 = vpack.c.bf16 %v352_v29, %v351_v59 }
 0x43e   : > { %v1226_v34 = vpop.permute.xlu0 %1225 }
 0x43f   : > { %v1247_v35 = vmul.f32 %v5375_v2, %v1226_v34  ;;  %1263 = vrot.lane.b32.xlu1 %v1246_v21, %s5089_s17  ;;  %v408_v34 = vpack.c.bf16 %v354_v9, %v353_v31  ;;  %4068 = vmatprep.mubr.msk.bf16.mxu1 %vm454_vm0, %v407_v33 }
 0x440   : > { %v1228_v40 = vpop.permute.xlu1 %1227 }
 0x441   : > { %1265 = vrot.lane.b32.xlu0 %v1247_v35, %s5089_s17  ;;  %v1248_v44 = vmul.f32 %v5384_v39, %v1228_v40  ;;  %4069 = vmatmul.mubr.msk.bf16.vlgmr.msra.gmra.mrb[0].mxu1 %vm454_vm0, %v408_v34 }
 0x442   : > { %v1230_v45 = vpop.permute.xlu0 %1229 }
 0x443   : > { %v1249_v47 = vmul.f32 %v5386_v41, %v1230_v45  ;;  %1267 = vrot.lane.b32.xlu1 %v1248_v44, %s5089_s17 }
 0x444   : > { %v1232_v54 = vpop.permute.xlu1 %1231 }
 0x445   : > { %1269 = vrot.lane.b32.xlu0 %v1249_v47, %s5089_s17  ;;  %v1250_v55 = vmul.f32 %v5396_v52, %v1232_v54 }
 0x446   : > { %v1234_v49 = vpop.permute.xlu0 %1233 }
 0x447   : > { %v1251_v51 = vmul.f32 %v5392_v48, %v1234_v49  ;;  %1271 = vrot.lane.b32.xlu1 %v1250_v55, %s5089_s17  ;;  %v355_v49 = vld [vmem:[%s5202_s29 + $0xa0] sm:$0xff]  ;;  %v357_v55 = vld [vmem:[%s5202_s29 + $0xb0] sm:$0xff] }
 0x448   : > { %v1236_v57 = vpop.permute.xlu1 %1235 }
 0x449   : > { %1273 = vrot.lane.b32.xlu0 %v1251_v51, %s5089_s17  ;;  %v1252_v60 = vmul.f32 %v5400_v56, %v1236_v57  ;;  %v356_v51 = vld [vmem:[%s5202_s29 + $0xa8] sm:$0xff]  ;;  %v358_v57 = vld [vmem:[%s5202_s29 + $0xb8] sm:$0xff] }
 0x44a   : > { %v409_v54 = vpack.c.bf16 %v356_v51, %v355_v49 }
 0x44b   : > { %1275 = vrot.lane.b32.xlu1 %v1252_v60, %s5089_s17 }
 0x44c   : > { %4072 = vmatprep.mubr.msk.bf16.mxu1 %vm454_vm0, %v409_v54 }
 0x4af   : > { %v1262_v62 = vpop.permute.xlu0 %1261 }
 0x4b0   : > { %v5406_v63 = vadd.f32 %v1262_v62, %v1205_v61  ;;  %v410_v61 = vpack.c.bf16 %v358_v57, %v357_v55 }
 0x4b1   : > { %v1264_v6 = vpop.permute.xlu1 %1263 }
 0x4b2   : > { %4525 = vtanh.f32 %v5406_v63  ;;  %v5415_v7 = vadd.f32 %v1264_v6, %v1206_v3  ;;  %4073 = vmatmul.mubr.msk.bf16.gmra.mrb[4].mxu1 %vm454_vm0, %v410_v61 }
 0x4b3   : > { %v1266_v1 = vpop.permute.xlu0 %1265 }
 0x4b4   : > { %v5413_v5 = vadd.f32 %v1266_v1, %v1207_v0 }
 0x4b5   : > { %v1268_v8 = vpop.permute.xlu1 %1267 }
 0x4b6   : > { %4527 = vtanh.f32 %v5413_v5  ;;  %v5423_v11 = vadd.f32 %v1268_v8, %v1208_v26 }
 0x4b7   : > { %4529 = vtanh.f32 %v5415_v7  ;;  %v1270_v12 = vpop.permute.xlu0 %1269 }
 0x4b8   : > { %v5425_v32 = vadd.f32 %v1270_v12, %v1209_v30  ;;  %4531 = vtanh.f32 %v5423_v11 }
 0x4b9   : > { %v1272_v42 = vpop.permute.xlu1 %1271 }
 0x4ba   : > { %4533 = vtanh.f32 %v5425_v32  ;;  %v5439_v22 = vadd.f32 %v1272_v42, %v1210_v20 }
 0x4bb   : > { %v1274_v37 = vpop.permute.xlu0 %1273 }
 0x4bc   : > { %v4526_v13 = vpop.eup %4525  ;;  %v5432_v17 = vadd.f32 %v1274_v37, %v1211_v16 }
 0x4bd   : > { %1309 = vrot.lane.b32.xlu0 %v4526_v13, %s5089_s17  ;;  %v1276_v27 = vpop.permute.xlu1 %1275 }
 0x4be   : > { %4535 = vtanh.f32 %v5432_v17  ;;  %v5446_v46 = vadd.f32 %v1276_v27, %v1212_v25 }
 0x4bf   : > { %4537 = vtanh.f32 %v5439_v22 }
 0x4c0   : > { %v4528_v19 = vpop.eup %4527  ;;  %4539 = vtanh.f32 %v5446_v46 }
 0x4c1   : > { %1313 = vrot.lane.b32.xlu0 %v4528_v19, %s5089_s17  ;;  %v4530_v38 = vpop.eup %4529 }
 0x4c2   : > { %1311 = vrot.lane.b32.xlu1 %v4530_v38, %s5089_s17  ;;  %v4532_v23 = vpop.eup %4531 }
 0x4c4   : > { %v4534_v24 = vpop.eup %4533 }
 0x4c5   : > { %1317 = vrot.lane.b32.xlu0 %v4534_v24, %s5089_s17 }
 0x4c6   : > { %1315 = vrot.lane.b32.xlu1 %v4532_v23, %s5089_s17 }
 0x4c8   : > { %v4536_v28 = vpop.eup %4535 }
 0x4c9   : > { %1321 = vrot.lane.b32.xlu0 %v4536_v28, %s5089_s17  ;;  %v4538_v50 = vpop.eup %4537 }
 0x4ca   : > { %1319 = vrot.lane.b32.xlu1 %v4538_v50, %s5089_s17  ;;  %v4540_v35 = vpop.eup %4539 }
 0x4ce   : > { %1323 = vrot.lane.b32.xlu1 %v4540_v35, %s5089_s17 }
 0x514   : > { %v4070_v8 = vpop.f32.mrb[0].mxu1 }
 0x515   : > { %v649_v30 = vpop.f32.mrb[1].mxu1  ;;  %v658_v20 = vadd.f32 %v4070_v8, %v5219_v14 }
 0x516   : > { %v4071_v12 = vpop.f32.mrb[2].mxu1  ;;  %v650_v42 = vadd.f32 %v5219_v14, %v649_v30 }
 0x517   : > { %v652_v13 = vpop.f32.mrb[3].mxu1  ;;  %v661_v24 = vadd.f32 %v4071_v12, %v5219_v14 }
 0x518   : > { %v653_v28 = vadd.f32 %v5219_v14, %v652_v13 }
 0x52f   : > { %v1310_v15 = vpop.permute.xlu0 %1309 }
 0x530   : > { %v1333_v21 = vmul.f32 %v5372_v4, %v1310_v15 }
 0x533   : > { %v1314_v40 = vpop.permute.xlu0 %1313 }
 0x534   : > { %v1312_v18 = vpop.permute.xlu1 %1311  ;;  %v1335_v45 = vmul.f32 %v5375_v2, %v1314_v40 }
 0x535   : > { %v1334_v36 = vmul.f32 %v5379_v10, %v1312_v18 }
 0x537   : > { %v1341_v43 = vpack.c.bf16 %v1334_v36, %v1333_v21  ;;  %v1318_v4 = vpop.permute.xlu0 %1317 }
 0x538   : > { %v1316_v44 = vpop.permute.xlu1 %1315  ;;  %v1337_v2 = vmul.f32 %v5386_v41, %v1318_v4 }
 0x539   : > { %v1336_v47 = vmul.f32 %v5384_v39, %v1316_v44  ;;  %1349 = vrot.lane.b32.xlu0 %v1341_v43, %s5090_s25 }
 0x53b   : > { %v1342_v60 = vpack.c.bf16 %v1336_v47, %v1335_v45  ;;  %v1322_v62 = vpop.permute.xlu0 %1321 }
 0x53c   : > { %v1320_v10 = vpop.permute.xlu1 %1319  ;;  %v1339_v3 = vmul.f32 %v5392_v48, %v1322_v62 }
 0x53d   : > { %1351 = vrot.lane.b32.xlu1 %v1342_v60, %s5090_s25  ;;  %v1338_v39 = vmul.f32 %v5396_v52, %v1320_v10 }
 0x53f   : > { %v1343_v0 = vpack.c.bf16 %v1338_v39, %v1337_v2 }
 0x540   : > { %v1324_v1 = vpop.permute.xlu1 %1323 }
 0x541   : > { %v1340_v6 = vmul.f32 %v5400_v56, %v1324_v1  ;;  %1353 = vrot.lane.b32.xlu0 %v1343_v0, %s5090_s25 }
 0x543   : > { %v1344_v26 = vpack.c.bf16 %v1340_v6, %v1339_v3 }
 0x545   : > { %1355 = vrot.lane.b32.xlu1 %v1344_v26, %s5090_s25 }
 0x585   : > { %v4074_v56 = vpop.f32.mrb[4].mxu1 }
 0x586   : > { %v665_v37 = vpop.f32.mrb[5].mxu1  ;;  %v674_v34 = vadd.f32 %v4074_v56, %v5219_v14 }
 0x587   : > { %v4075_v19 = vpop.f32.mrb[6].mxu1  ;;  %v666_v50 = vadd.f32 %v5219_v14, %v665_v37 }
 0x588   : > { %v668_v38 = vpop.f32.mrb[7].mxu1  ;;  %v677_v15 = vadd.f32 %v4075_v19, %v5219_v14 }
 0x589   : > { %v669_v21 = vadd.f32 %v5219_v14, %v668_v38 }
 0x5ab   : > { %v1350_v16 = vpop.permute.xlu0 %1349 }
 0x5ac   : > { %4132 = vmatprep.mubr.msk.bf16.mxu0 %vm454_vm0, %v1350_v16 }
 0x5af   : > { %v1352_v41 = vpop.permute.xlu1 %1351 }
 0x5b0   : > { %4133 = vmatmul.mubr.msk.bf16.vlgmr.msra.gmra.mrb[16].mxu0 %vm454_vm0, %v1352_v41 }
 0x5b1   : > { %4141 = vmatpush3.bf16.msra.mxu0 %v5309_v53 }
 0x5b2   : > { %4142 = vmatprep.subr.bf16.mxu0 %v5316_v58 }
 0x5b3   : > { %v1354_v48 = vpop.permute.xlu0 %1353 }
 0x5b4   : > { %4136 = vmatprep.mubr.msk.bf16.mxu0 %vm454_vm0, %v1354_v48 }
 0x5b5   : > { %4143 = vmatpush3.bf16.msra.mxu0 %v5316_v58 }
 0x5b6   : > { %4152 = vmatprep.subr.bf16.mxu0 %v5309_v53 }
 0x5b7   : > { %v1356_v52 = vpop.permute.xlu1 %1355 }
 0x5b8   : > { %4137 = vmatmul.mubr.msk.bf16.gmra.mrb[20].mxu0 %vm454_vm0, %v1356_v52 }
 0x683   : > { %v4134_v23 = vpop.f32.mrb[16].mxu0 }
 0x684   : > { %v1436_v25 = vadd.f32 %v4134_v23, %v658_v20  ;;  %v1403_v27 = vpop.f32.mrb[17].mxu0 }
 0x685   : > { %v1434_v59 = vadd.f32 %v1403_v27, %v650_v42  ;;  %v4135_v29 = vpop.f32.mrb[18].mxu0 }
 0x686   : > { %v1437_v31 = vadd.f32 %v4135_v29, %v661_v24  ;;  %v1406_v33 = vpop.f32.mrb[19].mxu0  ;;  %v3854_v10 = vmul.f32 -1.442695, %v1436_v25 }
 0x687   : > { %4541 = vtanh.f32 %v1434_v59  ;;  %v1435_v9 = vadd.f32 %v1406_v33, %v653_v28  ;;  %v3852_v4 = vmul.f32 -1.442695, %v1434_v59 }
 0x688   : > { %4543 = vtanh.f32 %v1436_v25  ;;  %v3855_v39 = vmul.f32 -1.442695, %v1437_v31 }
 0x689   : > { %4545 = vtanh.f32 %v1435_v9  ;;  %v3853_v2 = vmul.f32 -1.442695, %v1435_v9 }
 0x68a   : > { %4547 = vtanh.f32 %v1437_v31 }
 0x68b   : > { %v4138_v18 = vpop.f32.mrb[20].mxu0 }
 0x68c   : > { %v1440_v36 = vadd.f32 %v4138_v18, %v674_v34  ;;  %v1419_v40 = vpop.f32.mrb[21].mxu0 }
 0x68d   : > { %v1438_v43 = vadd.f32 %v1419_v40, %v666_v50  ;;  %v4139_v44 = vpop.f32.mrb[22].mxu0 }
 0x68e   : > { %v1441_v47 = vadd.f32 %v4139_v44, %v677_v15  ;;  %v1422_v49 = vpop.f32.mrb[23].mxu0  ;;  %v3858_v12 = vmul.f32 -1.442695, %v1440_v36 }
 0x68f   : > { %v1439_v51 = vadd.f32 %v1422_v49, %v669_v21  ;;  %4549 = vtanh.f32 %v1438_v43  ;;  %v3856_v26 = vmul.f32 -1.442695, %v1438_v43 }
 0x690   : > { %4551 = vtanh.f32 %v1440_v36  ;;  %v3859_v41 = vmul.f32 -1.442695, %v1441_v47 }
 0x691   : > { %v4542_v35 = vpop.eup %4541  ;;  %4553 = vtanh.f32 %v1439_v51  ;;  %v3857_v13 = vmul.f32 -1.442695, %v1439_v51 }
 0x692   : > { %1514 = vrot.lane.b32.xlu0 %v4542_v35, %s5089_s17  ;;  %v4544_v45 = vpop.eup %4543  ;;  %4555 = vtanh.f32 %v1441_v47 }
 0x693   : > { %v4546_v54 = vpop.eup %4545  ;;  %4557 = vpow2.f32 %v3852_v4 }
 0x694   : > { %1516 = vrot.lane.b32.xlu1 %v4546_v54, %s5089_s17  ;;  %v4548_v55 = vpop.eup %4547  ;;  %4559 = vpow2.f32 %v3854_v10 }
 0x695   : > { %4561 = vpow2.f32 %v3853_v2 }
 0x696   : > { %1518 = vrot.lane.b32.xlu0 %v4544_v45, %s5089_s17  ;;  %4563 = vpow2.f32 %v3855_v39 }
 0x698   : > { %1520 = vrot.lane.b32.xlu1 %v4548_v55, %s5089_s17 }
 0x699   : > { %v4550_v14 = vpop.eup %4549 }
 0x69a   : > { %1522 = vrot.lane.b32.xlu0 %v4550_v14, %s5089_s17  ;;  %v4552_v57 = vpop.eup %4551 }
 0x69b   : > { %v4554_v60 = vpop.eup %4553 }
 0x69c   : > { %1524 = vrot.lane.b32.xlu1 %v4554_v60, %s5089_s17  ;;  %v4556_v61 = vpop.eup %4555 }
 0x69d   : > { %v4558_v62 = vpop.eup %4557 }
 0x69e   : > { %1526 = vrot.lane.b32.xlu0 %v4552_v57, %s5089_s17  ;;  %v4560_v0 = vpop.eup %4559  ;;  %v1466_v1 = vadd.f32 1.0, %v4558_v62 }
 0x69f   : > { %v4562_v3 = vpop.eup %4561  ;;  %v1468_v6 = vadd.f32 1.0, %v4560_v0 }
 0x6a0   : > { %1528 = vrot.lane.b32.xlu1 %v4556_v61, %s5089_s17  ;;  %4565 = vrcp.f32 %v1466_v1  ;;  %v1467_v8 = vadd.f32 1.0, %v4562_v3  ;;  %v4564_v30 = vpop.eup %4563 }
 0x6a1   : > { %4567 = vrcp.f32 %v1468_v6  ;;  %v1469_v16 = vadd.f32 1.0, %v4564_v30 }
 0x6a2   : > { %4569 = vpow2.f32 %v3856_v26 }
 0x6a3   : > { %4571 = vrcp.f32 %v1467_v8 }
 0x6a4   : > { %4573 = vpow2.f32 %v3858_v12 }
 0x6a5   : > { %4575 = vpow2.f32 %v3857_v13 }
 0x6a6   : > { %4577 = vrcp.f32 %v1469_v16 }
 0x6a7   : > { %4579 = vpow2.f32 %v3859_v41 }
 0x6aa   : > { %v5500_v48 = vpop.eup %4565 }
 0x6ab   : > { %v5503_v37 = vpop.eup %4567  ;;  %v1498_v54 = vmul.f32 %v5500_v48, %v5406_v63 }
 0x6ac   : > { %v4570_v19 = vpop.eup %4569  ;;  %v1500_v57 = vmul.f32 %v5503_v37, %v5413_v5 }
 0x6ad   : > { %v5507_v42 = vpop.eup %4571  ;;  %v1470_v25 = vadd.f32 1.0, %v4570_v19  ;;  %v361_v19 = vld [vmem:[%s5202_s29 + $0xd0] sm:$0xff] }
 0x6ae   : > { %v4574_v24 = vpop.eup %4573  ;;  %v1499_v61 = vmul.f32 %v5507_v42, %v5415_v7 }
 0x6af   : > { %v4576_v28 = vpop.eup %4575  ;;  %v1472_v29 = vadd.f32 1.0, %v4574_v24  ;;  %4581 = vrcp.f32 %v1470_v25 }
 0x6b0   : > { %v5512_v59 = vpop.eup %4577  ;;  %v1471_v33 = vadd.f32 1.0, %v4576_v28 }
 0x6b1   : > { %v4580_v34 = vpop.eup %4579  ;;  %4583 = vrcp.f32 %v1472_v29  ;;  %v1501_v63 = vmul.f32 %v5512_v59, %v5423_v11 }
 0x6b2   : > { %v1473_v50 = vadd.f32 1.0, %v4580_v34  ;;  %4585 = vrcp.f32 %v1471_v33 }
 0x6b4   : > { %4587 = vrcp.f32 %v1473_v50 }
 0x6b9   : > { %v5516_v35 = vpop.eup %4581 }
 0x6ba   : > { %v1502_v1 = vmul.f32 %v5516_v35, %v5425_v32 }
 0x6bb   : > { %v5519_v21 = vpop.eup %4583 }
 0x6bc   : > { %v5522_v36 = vpop.eup %4585  ;;  %v1504_v8 = vmul.f32 %v5519_v21, %v5432_v17 }
 0x6bd   : > { %v1503_v26 = vmul.f32 %v5522_v36, %v5439_v22 }
 0x6be   : > { %v5528_v47 = vpop.eup %4587 }
 0x6bf   : > { %v1505_v16 = vmul.f32 %v5528_v47, %v5446_v46 }
 0x704   : > { %v1515_v52 = vpop.permute.xlu0 %1514 }
 0x705   : > { %v1538_v56 = vmul.f32 %v5500_v48, %v1515_v52  ;;  %v359_v52 = vld [vmem:[%s5202_s29 + $0xc0] sm:$0xff] }
 0x706   : > { %v1517_v23 = vpop.permute.xlu1 %1516 }
 0x707   : > { %1554 = vrot.lane.b32.xlu0 %v1538_v56, %s5089_s17  ;;  %v1539_v27 = vmul.f32 %v5507_v42, %v1517_v23  ;;  %v360_v56 = vld [vmem:[%s5202_s29 + $0xc8] sm:$0xff] }
 0x708   : > { %v1519_v38 = vpop.permute.xlu0 %1518 }
 0x709   : > { %v1540_v20 = vmul.f32 %v5503_v37, %v1519_v38  ;;  %1556 = vrot.lane.b32.xlu1 %v1539_v27, %s5089_s17  ;;  %v411_v38 = vpack.c.bf16 %v360_v56, %v359_v52 }
 0x70a   : > { %v1521_v31 = vpop.permute.xlu1 %1520 }
 0x70b   : > { %1558 = vrot.lane.b32.xlu0 %v1540_v20, %s5089_s17  ;;  %v1541_v9 = vmul.f32 %v5512_v59, %v1521_v31  ;;  %v362_v20 = vld [vmem:[%s5202_s29 + $0xd8] sm:$0xff]  ;;  %4076 = vmatprep.mubr.msk.bf16.mxu1 %vm454_vm0, %v411_v38 }
 0x70c   : > { %v1523_v15 = vpop.permute.xlu0 %1522  ;;  %v412_v23 = vpack.c.bf16 %v362_v20, %v361_v19 }
 0x70d   : > { %1560 = vrot.lane.b32.xlu1 %v1541_v9, %s5089_s17  ;;  %v1542_v18 = vmul.f32 %v5516_v35, %v1523_v15 }
 0x70e   : > { %v1525_v40 = vpop.permute.xlu1 %1524  ;;  %4077 = vmatmul.mubr.msk.bf16.gmra.mrb[8].mxu1 %vm454_vm0, %v412_v23 }
 0x70f   : > { %1562 = vrot.lane.b32.xlu0 %v1542_v18, %s5089_s17  ;;  %v1543_v44 = vmul.f32 %v5522_v36, %v1525_v40  ;;  %v363_v40 = vld [vmem:[%s5202_s29 + $0xe0] sm:$0xff] }
 0x710   : > { %v1527_v43 = vpop.permute.xlu0 %1526 }
 0x711   : > { %v1544_v45 = vmul.f32 %v5519_v21, %v1527_v43  ;;  %1564 = vrot.lane.b32.xlu1 %v1543_v44, %s5089_s17  ;;  %v364_v43 = vld [vmem:[%s5202_s29 + $0xe8] sm:$0xff] }
 0x712   : > { %v1529_v49 = vpop.permute.xlu1 %1528  ;;  %v413_v44 = vpack.c.bf16 %v364_v43, %v363_v40 }
 0x713   : > { %1566 = vrot.lane.b32.xlu0 %v1544_v45, %s5089_s17  ;;  %v1545_v51 = vmul.f32 %v5528_v47, %v1529_v49  ;;  %v365_v45 = vld [vmem:[%s5202_s29 + $0xf0] sm:$0xff]  ;;  %v366_v49 = vld [vmem:[%s5202_s29 + $0xf8] sm:$0xff] }
 0x714   : > { %4080 = vmatprep.mubr.msk.bf16.mxu1 %vm454_vm0, %v413_v44 }
 0x715   : > { %1568 = vrot.lane.b32.xlu1 %v1545_v51, %s5089_s17 }
 0x779   : > { %v1555_v55 = vpop.permute.xlu0 %1554 }
 0x77a   : > { %v5534_v14 = vadd.f32 %v1555_v55, %v1498_v54 }
 0x77b   : > { %v1557_v10 = vpop.permute.xlu1 %1556 }
 0x77c   : > { %4589 = vtanh.f32 %v5534_v14  ;;  %v5543_v2 = vadd.f32 %v1557_v10, %v1499_v61 }
 0x77d   : > { %v1559_v60 = vpop.permute.xlu0 %1558 }
 0x77e   : > { %v5541_v4 = vadd.f32 %v1559_v60, %v1500_v57 }
 0x77f   : > { %v1561_v39 = vpop.permute.xlu1 %1560 }
 0x780   : > { %4591 = vtanh.f32 %v5541_v4  ;;  %v5549_v62 = vadd.f32 %v1561_v39, %v1501_v63 }
 0x781   : > { %4593 = vtanh.f32 %v5543_v2  ;;  %v1563_v3 = vpop.permute.xlu0 %1562 }
 0x782   : > { %4595 = vtanh.f32 %v5549_v62  ;;  %v5557_v6 = vadd.f32 %v1563_v3, %v1502_v1 }
 0x783   : > { %v1565_v32 = vpop.permute.xlu1 %1564 }
 0x784   : > { %4597 = vtanh.f32 %v5557_v6  ;;  %v5565_v12 = vadd.f32 %v1565_v32, %v1503_v26  ;;  %v5615_v26 = vld [vmem:[%s6526_s2] ss:$0 sm:$0xff] }
 0x785   : > { %v1567_v30 = vpop.permute.xlu0 %1566 }
 0x786   : > { %v4590_v5 = vpop.eup %4589  ;;  %v5567_v13 = vadd.f32 %v1567_v30, %v1504_v8  ;;  %4599 = vtanh.f32 %v5565_v12 }
 0x787   : > { %1602 = vrot.lane.b32.xlu0 %v4590_v5, %s5089_s17  ;;  %v1569_v22 = vpop.permute.xlu1 %1568 }
 0x788   : > { %4601 = vtanh.f32 %v5567_v13  ;;  %v5573_v41 = vadd.f32 %v1569_v22, %v1505_v16 }
 0x78a   : > { %v4592_v7 = vpop.eup %4591  ;;  %4603 = vtanh.f32 %v5573_v41 }
 0x78b   : > { %1606 = vrot.lane.b32.xlu0 %v4592_v7, %s5089_s17  ;;  %v4594_v0 = vpop.eup %4593 }
 0x78c   : > { %1604 = vrot.lane.b32.xlu1 %v4594_v0, %s5089_s17  ;;  %v4596_v11 = vpop.eup %4595 }
 0x78e   : > { %v4598_v17 = vpop.eup %4597 }
 0x78f   : > { %1610 = vrot.lane.b32.xlu0 %v4598_v17, %s5089_s17 }
 0x790   : > { %1608 = vrot.lane.b32.xlu1 %v4596_v11, %s5089_s17  ;;  %v4600_v24 = vpop.eup %4599 }
 0x792   : > { %v4602_v46 = vpop.eup %4601 }
 0x793   : > { %1614 = vrot.lane.b32.xlu0 %v4602_v46, %s5089_s17 }
 0x794   : > { %1612 = vrot.lane.b32.xlu1 %v4600_v24, %s5089_s17  ;;  %v4604_v25 = vpop.eup %4603 }
 0x798   : > { %1616 = vrot.lane.b32.xlu1 %v4604_v25, %s5089_s17 }
 0x7e1   : > { %v4078_v63 = vpop.f32.mrb[8].mxu1 }
 0x7e2   : > { %v681_v39 = vpop.f32.mrb[9].mxu1  ;;  %v690_v8 = vadd.f32 %v5615_v26, %v4078_v63 }
 0x7e3   : > { %v4079_v5 = vpop.f32.mrb[10].mxu1 }
 0x7e4   : > { %v684_v7 = vpop.f32.mrb[11].mxu1  ;;  %v693_v32 = vadd.f32 %v5615_v26, %v4079_v5 }
 0x7e5   : > { %v685_v22 = vadd.f32 %v5615_v26, %v684_v7 }
 0x7f9   : > { %v1603_v27 = vpop.permute.xlu0 %1602 }
 0x7fa   : > { %v1626_v29 = vmul.f32 %v5500_v48, %v1603_v27  ;;  %v414_v48 = vpack.c.bf16 %v366_v49, %v365_v45 }
 0x7fc   : > { %4081 = vmatmul.mubr.msk.bf16.gmra.mrb[12].mxu1 %vm454_vm0, %v414_v48 }
 0x7fd   : > { %v1607_v33 = vpop.permute.xlu0 %1606 }
 0x7fe   : > { %v1605_v28 = vpop.permute.xlu1 %1604  ;;  %v1628_v50 = vmul.f32 %v5503_v37, %v1607_v33 }
 0x7ff   : > { %v1627_v31 = vmul.f32 %v5507_v42, %v1605_v28 }
 0x801   : > { %v1634_v9 = vpack.c.bf16 %v1627_v31, %v1626_v29  ;;  %v1611_v42 = vpop.permute.xlu0 %1610 }
 0x802   : > { %v1609_v34 = vpop.permute.xlu1 %1608  ;;  %v1630_v37 = vmul.f32 %v5516_v35, %v1611_v42 }
 0x803   : > { %v1629_v15 = vmul.f32 %v5512_v59, %v1609_v34  ;;  %1642 = vrot.lane.b32.xlu0 %v1634_v9, %s5090_s25 }
 0x805   : > { %v1635_v18 = vpack.c.bf16 %v1629_v15, %v1628_v50  ;;  %v1615_v54 = vpop.permute.xlu0 %1614 }
 0x806   : > { %v1613_v51 = vpop.permute.xlu1 %1612  ;;  %v1632_v60 = vmul.f32 %v5519_v21, %v1615_v54 }
 0x807   : > { %1644 = vrot.lane.b32.xlu1 %v1635_v18, %s5090_s25  ;;  %v1631_v59 = vmul.f32 %v5522_v36, %v1613_v51 }
 0x809   : > { %v1636_v55 = vpack.c.bf16 %v1631_v59, %v1630_v37 }
 0x80a   : > { %v1617_v57 = vpop.permute.xlu1 %1616 }
 0x80b   : > { %v1633_v61 = vmul.f32 %v5528_v47, %v1617_v57  ;;  %1646 = vrot.lane.b32.xlu0 %v1636_v55, %s5090_s25 }
 0x80d   : > { %v1637_v10 = vpack.c.bf16 %v1633_v61, %v1632_v60 }
 0x80f   : > { %1648 = vrot.lane.b32.xlu1 %v1637_v10, %s5090_s25 }
 0x875   : > { %v1643_v0 = vpop.permute.xlu0 %1642 }
 0x876   : > { %4144 = vmatprep.mubr.msk.bf16.mxu0 %vm454_vm0, %v1643_v0 }
 0x879   : > { %v1645_v35 = vpop.permute.xlu1 %1644 }
 0x87a   : > { %4145 = vmatmul.mubr.msk.bf16.vlgmr.msra.gmra.mrb[24].mxu0 %vm454_vm0, %v1645_v35 }
 0x87b   : > { %4153 = vmatpush3.bf16.msra.mxu0 %v5309_v53 }
 0x87c   : > { %4154 = vmatprep.subr.bf16.mxu0 %v5316_v58 }
 0x87d   : > { %v1647_v21 = vpop.permute.xlu0 %1646 }
 0x87e   : > { %4148 = vmatprep.mubr.msk.bf16.mxu0 %vm454_vm0, %v1647_v21 }
 0x87f   : > { %4155 = vmatpush3.bf16.msra.mxu0 %v5316_v58  ;;  %v682_v58 = vadd.f32 %v5615_v26, %v681_v39 }
 0x880   : > { %4164 = vmatprep.subr.bf16.mxu0 %v5309_v53 }
 0x881   : > { %v1649_v36 = vpop.permute.xlu1 %1648 }
 0x882   : > { %4149 = vmatmul.mubr.msk.bf16.gmra.mrb[28].mxu0 %vm454_vm0, %v1649_v36 }
 0x8cf   : > { %v4082_v47 = vpop.f32.mrb[12].mxu1 }
 0x8d0   : > { %v697_v1 = vpop.f32.mrb[13].mxu1  ;;  %v706_v23 = vadd.f32 %v5615_v26, %v4082_v47 }
 0x8d1   : > { %v4083_v3 = vpop.f32.mrb[14].mxu1  ;;  %v698_v24 = vadd.f32 %v5615_v26, %v697_v1 }
 0x8d2   : > { %v700_v11 = vpop.f32.mrb[15].mxu1  ;;  %v709_v25 = vadd.f32 %v5615_v26, %v4083_v3 }
 0x8d3   : > { %v701_v28 = vadd.f32 %v5615_v26, %v700_v11 }
 0x94d   : > { %v4146_v53 = vpop.f32.mrb[24].mxu0 }
 0x94e   : > { %v1729_v30 = vadd.f32 %v4146_v53, %v690_v8  ;;  %v1696_v16 = vpop.f32.mrb[25].mxu0 }
 0x94f   : > { %v1727_v17 = vadd.f32 %v1696_v16, %v682_v58  ;;  %v4147_v52 = vpop.f32.mrb[26].mxu0 }
 0x950   : > { %v1730_v56 = vadd.f32 %v4147_v52, %v693_v32  ;;  %v1699_v19 = vpop.f32.mrb[27].mxu0  ;;  %v3866_v42 = vmul.f32 -1.442695, %v1729_v30 }
 0x951   : > { %4605 = vtanh.f32 %v1727_v17  ;;  %v1728_v38 = vadd.f32 %v1699_v19, %v685_v22  ;;  %v3864_v48 = vmul.f32 -1.442695, %v1727_v17 }
 0x952   : > { %4607 = vtanh.f32 %v1729_v30  ;;  %v3867_v37 = vmul.f32 -1.442695, %v1730_v56 }
 0x953   : > { %4609 = vtanh.f32 %v1728_v38  ;;  %v3865_v51 = vmul.f32 -1.442695, %v1728_v38 }
 0x954   : > { %4611 = vtanh.f32 %v1730_v56 }
 0x955   : > { %v4150_v27 = vpop.f32.mrb[28].mxu0 }
 0x956   : > { %v1733_v31 = vadd.f32 %v4150_v27, %v706_v23  ;;  %v1712_v33 = vpop.f32.mrb[29].mxu0 }
 0x957   : > { %v1731_v9 = vadd.f32 %v1712_v33, %v698_v24  ;;  %v4151_v34 = vpop.f32.mrb[30].mxu0 }
 0x958   : > { %v1734_v50 = vadd.f32 %v4151_v34, %v709_v25  ;;  %v1715_v15 = vpop.f32.mrb[31].mxu0  ;;  %v3870_v39 = vmul.f32 -1.442695, %v1733_v31 }
 0x959   : > { %v1732_v18 = vadd.f32 %v1715_v15, %v701_v28  ;;  %4613 = vtanh.f32 %v1731_v9  ;;  %v3868_v61 = vmul.f32 -1.442695, %v1731_v9 }
 0x95a   : > { %4615 = vtanh.f32 %v1733_v31  ;;  %v3871_v0 = vmul.f32 -1.442695, %v1734_v50 }
 0x95b   : > { %v4606_v20 = vpop.eup %4605  ;;  %4617 = vtanh.f32 %v1732_v18  ;;  %v3869_v5 = vmul.f32 -1.442695, %v1732_v18 }
 0x95c   : > { %1807 = vrot.lane.b32.xlu0 %v4606_v20, %s5089_s17  ;;  %v4608_v46 = vpop.eup %4607  ;;  %4619 = vtanh.f32 %v1734_v50 }
 0x95d   : > { %v4610_v29 = vpop.eup %4609  ;;  %4621 = vpow2.f32 %v3864_v48 }
 0x95e   : > { %1809 = vrot.lane.b32.xlu1 %v4610_v29, %s5089_s17  ;;  %v4612_v40 = vpop.eup %4611  ;;  %4623 = vpow2.f32 %v3866_v42 }
 0x95f   : > { %4625 = vpow2.f32 %v3865_v51 }
 0x960   : > { %1811 = vrot.lane.b32.xlu0 %v4608_v46, %s5089_s17  ;;  %4627 = vpow2.f32 %v3867_v37 }
 0x962   : > { %1813 = vrot.lane.b32.xlu1 %v4612_v40, %s5089_s17 }
 0x963   : > { %v4614_v43 = vpop.eup %4613 }
 0x964   : > { %1815 = vrot.lane.b32.xlu0 %v4614_v43, %s5089_s17  ;;  %v4616_v44 = vpop.eup %4615 }
 0x965   : > { %v4618_v45 = vpop.eup %4617 }
 0x966   : > { %1817 = vrot.lane.b32.xlu1 %v4618_v45, %s5089_s17  ;;  %v4620_v49 = vpop.eup %4619 }
 0x967   : > { %v4622_v59 = vpop.eup %4621 }
 0x968   : > { %1819 = vrot.lane.b32.xlu0 %v4616_v44, %s5089_s17  ;;  %v1759_v54 = vadd.f32 1.0, %v4622_v59  ;;  %v4624_v55 = vpop.eup %4623 }
 0x969   : > { %v4626_v57 = vpop.eup %4625  ;;  %v1761_v60 = vadd.f32 1.0, %v4624_v55 }
 0x96a   : > { %1821 = vrot.lane.b32.xlu1 %v4620_v49, %s5089_s17  ;;  %4629 = vrcp.f32 %v1759_v54  ;;  %v1760_v10 = vadd.f32 1.0, %v4626_v57  ;;  %v4628_v63 = vpop.eup %4627 }
 0x96b   : > { %4631 = vrcp.f32 %v1761_v60  ;;  %v1762_v7 = vadd.f32 1.0, %v4628_v63 }
 0x96c   : > { %4633 = vpow2.f32 %v3868_v61 }
 0x96d   : > { %4635 = vrcp.f32 %v1760_v10 }
 0x96e   : > { %4637 = vpow2.f32 %v3870_v39 }
 0x96f   : > { %4639 = vpow2.f32 %v3869_v5 }
 0x970   : > { %4641 = vrcp.f32 %v1762_v7 }
 0x971   : > { %4643 = vpow2.f32 %v3871_v0 }
 0x974   : > { %v5633_v35 = vpop.eup %4629 }
 0x975   : > { %v5637_v47 = vpop.eup %4631  ;;  %v1791_v15 = vmul.f32 %v5633_v35, %v5534_v14 }
 0x976   : > { %v4634_v3 = vpop.eup %4633  ;;  %v1793_v43 = vmul.f32 %v5637_v47, %v5541_v4 }
 0x977   : > { %v5640_v8 = vpop.eup %4635  ;;  %v1763_v30 = vadd.f32 1.0, %v4634_v3  ;;  %v370_v3 = vld [vmem:[%s5202_s29 + $0x118] sm:$0xff] }
 0x978   : > { %v4638_v32 = vpop.eup %4637  ;;  %v1792_v45 = vmul.f32 %v5640_v8, %v5543_v2 }
 0x979   : > { %v4640_v16 = vpop.eup %4639  ;;  %v1765_v52 = vadd.f32 1.0, %v4638_v32  ;;  %4645 = vrcp.f32 %v1763_v30 }
 0x97a   : > { %v5645_v22 = vpop.eup %4641  ;;  %v1764_v19 = vadd.f32 1.0, %v4640_v16 }
 0x97b   : > { %v4644_v38 = vpop.eup %4643  ;;  %4647 = vrcp.f32 %v1765_v52  ;;  %v1794_v14 = vmul.f32 %v5645_v22, %v5549_v62 }
 0x97c   : > { %v1766_v20 = vadd.f32 1.0, %v4644_v38  ;;  %4649 = vrcp.f32 %v1764_v19 }
 0x97e   : > { %4651 = vrcp.f32 %v1766_v20 }
 0x983   : > { %v5649_v23 = vpop.eup %4645 }
 0x984   : > { %v1795_v54 = vmul.f32 %v5649_v23, %v5557_v6 }
 0x985   : > { %v5652_v25 = vpop.eup %4647 }
 0x986   : > { %v5655_v27 = vpop.eup %4649  ;;  %v1797_v61 = vmul.f32 %v5652_v25, %v5567_v13  ;;  %v367_v13 = vld [vmem:[%s5202_s29 + $0x100] sm:$0xff] }
 0x987   : > { %v1796_v60 = vmul.f32 %v5655_v27, %v5565_v12 }
 0x988   : > { %v5661_v9 = vpop.eup %4651 }
 0x989   : > { %v1798_v5 = vmul.f32 %v5661_v9, %v5573_v41 }
 0x9ce   : > { %v1808_v21 = vpop.permute.xlu0 %1807 }
 0x9cf   : > { %v1831_v36 = vmul.f32 %v5633_v35, %v1808_v21  ;;  %v368_v21 = vld [vmem:[%s5202_s29 + $0x108] sm:$0xff] }
 0x9d0   : > { %v1810_v58 = vpop.permute.xlu1 %1809 }
 0x9d1   : > { %1847 = vrot.lane.b32.xlu0 %v1831_v36, %s5089_s17  ;;  %v1832_v53 = vmul.f32 %v5640_v8, %v1810_v58  ;;  %v369_v36 = vld [vmem:[%s5202_s29 + $0x110] sm:$0xff] }
 0x9d2   : > { %v1812_v1 = vpop.permute.xlu0 %1811 }
 0x9d3   : > { %v1833_v11 = vmul.f32 %v5637_v47, %v1812_v1  ;;  %1849 = vrot.lane.b32.xlu1 %v1832_v53, %s5089_s17  ;;  %v415_v1 = vpack.c.bf16 %v368_v21, %v367_v13 }
 0x9d4   : > { %v1814_v17 = vpop.permute.xlu1 %1813 }
 0x9d5   : > { %1851 = vrot.lane.b32.xlu0 %v1833_v11, %s5089_s17  ;;  %v1834_v56 = vmul.f32 %v5645_v22, %v1814_v17  ;;  %v416_v11 = vpack.c.bf16 %v370_v3, %v369_v36  ;;  %4084 = vmatprep.mubr.msk.bf16.mxu1 %vm454_vm0, %v415_v1 }
 0x9d6   : > { %v1816_v24 = vpop.permute.xlu0 %1815 }
 0x9d7   : > { %1853 = vrot.lane.b32.xlu1 %v1834_v56, %s5089_s17  ;;  %v1835_v46 = vmul.f32 %v5649_v23, %v1816_v24  ;;  %4085 = vmatmul.mubr.msk.bf16.gmra.mrb[16].mxu1 %vm454_vm0, %v416_v11 }
 0x9d8   : > { %v1818_v28 = vpop.permute.xlu1 %1817 }
 0x9d9   : > { %1855 = vrot.lane.b32.xlu0 %v1835_v46, %s5089_s17  ;;  %v1836_v31 = vmul.f32 %v5655_v27, %v1818_v28  ;;  %v371_v46 = vld [vmem:[%s5202_s29 + $0x120] sm:$0xff]  ;;  %v372_v28 = vld [vmem:[%s5202_s29 + $0x128] sm:$0xff] }
 0x9da   : > { %v1820_v29 = vpop.permute.xlu0 %1819 }
 0x9db   : > { %v1837_v33 = vmul.f32 %v5652_v25, %v1820_v29  ;;  %1857 = vrot.lane.b32.xlu1 %v1836_v31, %s5089_s17  ;;  %v417_v29 = vpack.c.bf16 %v372_v28, %v371_v46  ;;  %v373_v31 = vld [vmem:[%s5202_s29 + $0x130] sm:$0xff] }
 0x9dc   : > { %v1822_v34 = vpop.permute.xlu1 %1821 }
 0x9dd   : > { %1859 = vrot.lane.b32.xlu0 %v1837_v33, %s5089_s17  ;;  %v1838_v50 = vmul.f32 %v5661_v9, %v1822_v34  ;;  %v374_v33 = vld [vmem:[%s5202_s29 + $0x138] sm:$0xff]  ;;  %4088 = vmatprep.mubr.msk.bf16.mxu1 %vm454_vm0, %v417_v29 }
 0x9df   : > { %1861 = vrot.lane.b32.xlu1 %v1838_v50, %s5089_s17 }
 0xa43   : > { %v1848_v18 = vpop.permute.xlu0 %1847 }
 0xa44   : > { %v5667_v40 = vadd.f32 %v1848_v18, %v1791_v15 }
 0xa45   : > { %v1850_v48 = vpop.permute.xlu1 %1849 }
 0xa46   : > { %4653 = vtanh.f32 %v5667_v40  ;;  %v5676_v42 = vadd.f32 %v1850_v48, %v1792_v45 }
 0xa47   : > { %v1852_v44 = vpop.permute.xlu0 %1851 }
 0xa48   : > { %v5674_v49 = vadd.f32 %v1852_v44, %v1793_v43 }
 0xa49   : > { %v1854_v51 = vpop.permute.xlu1 %1853 }
 0xa4a   : > { %4655 = vtanh.f32 %v5674_v49  ;;  %v5682_v37 = vadd.f32 %v1854_v51, %v1794_v14 }
 0xa4b   : > { %4657 = vtanh.f32 %v5676_v42  ;;  %v1856_v55 = vpop.permute.xlu0 %1855 }
 0xa4c   : > { %4659 = vtanh.f32 %v5682_v37  ;;  %v5690_v62 = vadd.f32 %v1856_v55, %v1795_v54 }
 0xa4d   : > { %v1858_v10 = vpop.permute.xlu1 %1857 }
 0xa4e   : > { %4661 = vtanh.f32 %v5690_v62  ;;  %v5698_v63 = vadd.f32 %v1858_v10, %v1796_v60 }
 0xa4f   : > { %v1860_v6 = vpop.permute.xlu0 %1859 }
 0xa50   : > { %v4654_v4 = vpop.eup %4653  ;;  %v5700_v39 = vadd.f32 %v1860_v6, %v1797_v61  ;;  %4663 = vtanh.f32 %v5698_v63 }
 0xa51   : > { %1895 = vrot.lane.b32.xlu0 %v4654_v4, %s5089_s17  ;;  %v1862_v7 = vpop.permute.xlu1 %1861 }
 0xa52   : > { %4665 = vtanh.f32 %v5700_v39  ;;  %v5706_v0 = vadd.f32 %v1862_v7, %v1798_v5 }
 0xa54   : > { %v4656_v2 = vpop.eup %4655  ;;  %4667 = vtanh.f32 %v5706_v0 }
 0xa55   : > { %1899 = vrot.lane.b32.xlu0 %v4656_v2, %s5089_s17  ;;  %v4658_v59 = vpop.eup %4657 }
 0xa56   : > { %1897 = vrot.lane.b32.xlu1 %v4658_v59, %s5089_s17  ;;  %v4660_v57 = vpop.eup %4659 }
 0xa58   : > { %v4662_v12 = vpop.eup %4661 }
 0xa59   : > { %1903 = vrot.lane.b32.xlu0 %v4662_v12, %s5089_s17 }
 0xa5a   : > { %1901 = vrot.lane.b32.xlu1 %v4660_v57, %s5089_s17  ;;  %v4664_v58 = vpop.eup %4663 }
 0xa5c   : > { %v4666_v41 = vpop.eup %4665 }
 0xa5d   : > { %1907 = vrot.lane.b32.xlu0 %v4666_v41, %s5089_s17 }
 0xa5e   : > { %1905 = vrot.lane.b32.xlu1 %v4664_v58, %s5089_s17  ;;  %v4668_v53 = vpop.eup %4667 }
 0xa62   : > { %1909 = vrot.lane.b32.xlu1 %v4668_v53, %s5089_s17 }
 0xaaa   : > { %v4086_v48 = vpop.f32.mrb[16].mxu1 }
 0xaab   : > { %v713_v14 = vpop.f32.mrb[17].mxu1  ;;  %v722_v61 = vadd.f32 %v5615_v26, %v4086_v48 }
 0xaac   : > { %v4087_v51 = vpop.f32.mrb[18].mxu1  ;;  %v714_v10 = vadd.f32 %v5615_v26, %v713_v14 }
 0xaad   : > { %v716_v2 = vpop.f32.mrb[19].mxu1  ;;  %v725_v5 = vadd.f32 %v5615_v26, %v4087_v51 }
 0xaae   : > { %v717_v13 = vadd.f32 %v5615_v26, %v716_v2 }
 0xac3   : > { %v1896_v32 = vpop.permute.xlu0 %1895 }
 0xac4   : > { %v1919_v16 = vmul.f32 %v5633_v35, %v1896_v32  ;;  %v418_v35 = vpack.c.bf16 %v374_v33, %v373_v31 }
 0xac6   : > { %4089 = vmatmul.mubr.msk.bf16.gmra.mrb[20].mxu1 %vm454_vm0, %v418_v35 }
 0xac7   : > { %v1900_v52 = vpop.permute.xlu0 %1899 }
 0xac8   : > { %v1898_v30 = vpop.permute.xlu1 %1897  ;;  %v1921_v38 = vmul.f32 %v5637_v47, %v1900_v52 }
 0xac9   : > { %v1920_v17 = vmul.f32 %v5640_v8, %v1898_v30 }
 0xacb   : > { %v1927_v56 = vpack.c.bf16 %v1920_v17, %v1919_v16  ;;  %v1904_v8 = vpop.permute.xlu0 %1903 }
 0xacc   : > { %v1902_v19 = vpop.permute.xlu1 %1901  ;;  %v1923_v47 = vmul.f32 %v5649_v23, %v1904_v8 }
 0xacd   : > { %v1922_v20 = vmul.f32 %v5645_v22, %v1902_v19  ;;  %1935 = vrot.lane.b32.xlu0 %v1927_v56, %s5090_s25 }
 0xacf   : > { %v1928_v24 = vpack.c.bf16 %v1922_v20, %v1921_v38  ;;  %v1908_v50 = vpop.permute.xlu0 %1907 }
 0xad0   : > { %v1906_v34 = vpop.permute.xlu1 %1905  ;;  %v1925_v43 = vmul.f32 %v5652_v25, %v1908_v50  ;;  %v5742_v25 = vld [vmem:[%s6529_s5] sm:$0xff]  }
 0xad1   : > { %1937 = vrot.lane.b32.xlu1 %v1928_v24, %s5090_s25  ;;  %v1924_v22 = vmul.f32 %v5655_v27, %v1906_v34  ;;  %v5748_v27 = vld [vmem:[%s6529_s5 + $0x8] sm:$0xff]  }
 0xad3   : > { %v1929_v15 = vpack.c.bf16 %v1924_v22, %v1923_v47 }
 0xad4   : > { %v1910_v18 = vpop.permute.xlu1 %1909 }
 0xad5   : > { %v1926_v44 = vmul.f32 %v5661_v9, %v1910_v18  ;;  %1939 = vrot.lane.b32.xlu0 %v1929_v15, %s5090_s25 }
 0xad7   : > { %v1930_v45 = vpack.c.bf16 %v1926_v44, %v1925_v43 }
 0xad9   : > { %1941 = vrot.lane.b32.xlu1 %v1930_v45, %s5090_s25 }
 0xb3f   : > { %v1936_v4 = vpop.permute.xlu0 %1935 }
 0xb40   : > { %4156 = vmatprep.mubr.msk.bf16.mxu0 %vm454_vm0, %v1936_v4 }
 0xb43   : > { %v1938_v23 = vpop.permute.xlu1 %1937 }
 0xb44   : > { %4157 = vmatmul.mubr.msk.bf16.vlgmr.msra.gmra.mrb[32].mxu0 %vm454_vm0, %v1938_v23 }
 0xb45   : > { %4165 = vmatpush3.bf16.msra.mxu0 %v5742_v25 }
 0xb46   : > { %4166 = vmatprep.subr.bf16.mxu0 %v5748_v27 }
 0xb47   : > { %v1940_v9 = vpop.permute.xlu0 %1939 }
 0xb48   : > { %4160 = vmatprep.mubr.msk.bf16.mxu0 %vm454_vm0, %v1940_v9 }
 0xb49   : > { %4167 = vmatpush3.bf16.msra.mxu0 %v5748_v27 }
 0xb4a   : > { %4176 = vmatprep.subr.bf16.mxu0 %v5742_v25 }
 0xb4b   : > { %v1942_v59 = vpop.permute.xlu1 %1941 }
 0xb4c   : > { %4161 = vmatmul.mubr.msk.bf16.gmra.mrb[36].mxu0 %vm454_vm0, %v1942_v59 }
 0xb99   : > { %v4090_v54 = vpop.f32.mrb[20].mxu1 }
 0xb9a   : > { %v729_v55 = vpop.f32.mrb[21].mxu1  ;;  %v738_v41 = vadd.f32 %v5615_v26, %v4090_v54 }
 0xb9b   : > { %v4091_v57 = vpop.f32.mrb[22].mxu1  ;;  %v730_v32 = vadd.f32 %v5615_v26, %v729_v55 }
 0xb9c   : > { %v732_v60 = vpop.f32.mrb[23].mxu1  ;;  %v741_v30 = vadd.f32 %v5615_v26, %v4091_v57 }
 0xb9d   : > { %v733_v52 = vadd.f32 %v5615_v26, %v732_v60 }
 0xc17   : > { %v4158_v6 = vpop.f32.mrb[32].mxu0 }
 0xc18   : > { %v2022_v7 = vadd.f32 %v4158_v6, %v722_v61  ;;  %v1989_v12 = vpop.f32.mrb[33].mxu0 }
 0xc19   : > { %v2020_v21 = vadd.f32 %v1989_v12, %v714_v10  ;;  %v4159_v36 = vpop.f32.mrb[34].mxu0 }
 0xc1a   : > { %v2023_v1 = vadd.f32 %v4159_v36, %v725_v5  ;;  %v1992_v3 = vpop.f32.mrb[35].mxu0  ;;  %v3878_v47 = vmul.f32 -1.442695, %v2022_v7 }
 0xc1b   : > { %4669 = vtanh.f32 %v2020_v21  ;;  %v2021_v11 = vadd.f32 %v1992_v3, %v717_v13  ;;  %v3876_v34 = vmul.f32 -1.442695, %v2020_v21 }
 0xc1c   : > { %4671 = vtanh.f32 %v2022_v7  ;;  %v3879_v50 = vmul.f32 -1.442695, %v2023_v1 }
 0xc1d   : > { %4673 = vtanh.f32 %v2021_v11  ;;  %v3877_v22 = vmul.f32 -1.442695, %v2021_v11 }
 0xc1e   : > { %4675 = vtanh.f32 %v2023_v1 }
 0xc1f   : > { %v4162_v17 = vpop.f32.mrb[36].mxu0 }
 0xc20   : > { %v2026_v56 = vadd.f32 %v4162_v17, %v738_v41  ;;  %v2005_v19 = vpop.f32.mrb[37].mxu0 }
 0xc21   : > { %v2024_v38 = vadd.f32 %v2005_v19, %v730_v32  ;;  %v4163_v20 = vpop.f32.mrb[38].mxu0 }
 0xc22   : > { %v2027_v24 = vadd.f32 %v4163_v20, %v741_v30  ;;  %v2008_v46 = vpop.f32.mrb[39].mxu0  ;;  %v3882_v4 = vmul.f32 -1.442695, %v2026_v56 }
 0xc23   : > { %4677 = vtanh.f32 %v2024_v38  ;;  %v2025_v29 = vadd.f32 %v2008_v46, %v733_v52  ;;  %v3880_v45 = vmul.f32 -1.442695, %v2024_v38 }
 0xc24   : > { %4679 = vtanh.f32 %v2026_v56  ;;  %v3883_v9 = vmul.f32 -1.442695, %v2027_v24 }
 0xc25   : > { %v4670_v58 = vpop.eup %4669  ;;  %4681 = vtanh.f32 %v2025_v29  ;;  %v3881_v2 = vmul.f32 -1.442695, %v2025_v29 }
 0xc26   : > { %2100 = vrot.lane.b32.xlu0 %v4670_v58, %s5089_s17  ;;  %v4672_v53 = vpop.eup %4671  ;;  %4683 = vtanh.f32 %v2027_v24 }
 0xc27   : > { %v4674_v16 = vpop.eup %4673  ;;  %4685 = vpow2.f32 %v3876_v34 }
 0xc28   : > { %2102 = vrot.lane.b32.xlu1 %v4674_v16, %s5089_s17  ;;  %v4676_v28 = vpop.eup %4675  ;;  %4687 = vpow2.f32 %v3878_v47 }
 0xc29   : > { %4689 = vpow2.f32 %v3877_v22 }
 0xc2a   : > { %2104 = vrot.lane.b32.xlu0 %v4672_v53, %s5089_s17  ;;  %4691 = vpow2.f32 %v3879_v50 }
 0xc2c   : > { %2106 = vrot.lane.b32.xlu1 %v4676_v28, %s5089_s17 }
 0xc2d   : > { %v4678_v31 = vpop.eup %4677 }
 0xc2e   : > { %2108 = vrot.lane.b32.xlu0 %v4678_v31, %s5089_s17  ;;  %v4680_v33 = vpop.eup %4679 }
 0xc2f   : > { %v4682_v35 = vpop.eup %4681 }
 0xc30   : > { %2110 = vrot.lane.b32.xlu1 %v4682_v35, %s5089_s17  ;;  %v4684_v8 = vpop.eup %4683 }
 0xc31   : > { %v4686_v15 = vpop.eup %4685 }
 0xc32   : > { %2112 = vrot.lane.b32.xlu0 %v4680_v33, %s5089_s17  ;;  %v2052_v18 = vadd.f32 1.0, %v4686_v15  ;;  %v4688_v43 = vpop.eup %4687 }
 0xc33   : > { %v4690_v44 = vpop.eup %4689  ;;  %v2054_v48 = vadd.f32 1.0, %v4688_v43 }
 0xc34   : > { %2114 = vrot.lane.b32.xlu1 %v4684_v8, %s5089_s17  ;;  %4693 = vrcp.f32 %v2052_v18  ;;  %v2053_v14 = vadd.f32 1.0, %v4690_v44  ;;  %v4692_v51 = vpop.eup %4691 }
 0xc35   : > { %4695 = vpow2.f32 %v3880_v45  ;;  %v2055_v23 = vadd.f32 1.0, %v4692_v51 }
 0xc36   : > { %4697 = vrcp.f32 %v2054_v48 }
 0xc37   : > { %4699 = vrcp.f32 %v2053_v14 }
 0xc38   : > { %4701 = vpow2.f32 %v3882_v4 }
 0xc39   : > { %4703 = vpow2.f32 %v3881_v2 }
 0xc3a   : > { %4705 = vrcp.f32 %v2055_v23 }
 0xc3b   : > { %4707 = vpow2.f32 %v3883_v9 }
 0xc3e   : > { %v5771_v59 = vpop.eup %4693 }
 0xc3f   : > { %v4696_v57 = vpop.eup %4695  ;;  %v2084_v29 = vmul.f32 %v5771_v59, %v5667_v40 }
 0xc40   : > { %v5775_v60 = vpop.eup %4697  ;;  %v2056_v5 = vadd.f32 1.0, %v4696_v57  ;;  %v376_v57 = vld [vmem:[%s5202_s29 + $0x148] sm:$0xff] }
 0xc41   : > { %v5778_v6 = vpop.eup %4699  ;;  %v2086_v35 = vmul.f32 %v5775_v60, %v5674_v49 }
 0xc42   : > { %v4702_v12 = vpop.eup %4701  ;;  %4709 = vrcp.f32 %v2056_v5  ;;  %v2085_v34 = vmul.f32 %v5778_v6, %v5676_v42  ;;  %v378_v5 = vld [vmem:[%s5202_s29 + $0x158] sm:$0xff] }
 0xc43   : > { %v4704_v21 = vpop.eup %4703  ;;  %v2058_v1 = vadd.f32 1.0, %v4702_v12 }
 0xc44   : > { %v5783_v36 = vpop.eup %4705  ;;  %v2057_v58 = vadd.f32 1.0, %v4704_v21 }
 0xc45   : > { %v4708_v41 = vpop.eup %4707  ;;  %4711 = vrcp.f32 %v2058_v1  ;;  %v2087_v40 = vmul.f32 %v5783_v36, %v5682_v37 }
 0xc46   : > { %v2059_v53 = vadd.f32 1.0, %v4708_v41  ;;  %4713 = vrcp.f32 %v2057_v58 }
 0xc48   : > { %4715 = vrcp.f32 %v2059_v53 }
 0xc4c   : > { %v5787_v32 = vpop.eup %4709 }
 0xc4d   : > { %v2088_v44 = vmul.f32 %v5787_v32, %v5690_v62 }
 0xc4f   : > { %v5791_v17 = vpop.eup %4711 }
 0xc50   : > { %v5794_v19 = vpop.eup %4713  ;;  %v2090_v14 = vmul.f32 %v5791_v17, %v5700_v39 }
 0xc51   : > { %v2089_v62 = vmul.f32 %v5794_v19, %v5698_v63  ;;  %v375_v63 = vld [vmem:[%s5202_s29 + $0x140] sm:$0xff] }
 0xc52   : > { %v5799_v24 = vpop.eup %4715 }
 0xc53   : > { %v2091_v39 = vmul.f32 %v5799_v24, %v5706_v0 }
 0xc98   : > { %v2101_v54 = vpop.permute.xlu0 %2100 }
 0xc99   : > { %v2124_v55 = vmul.f32 %v5771_v59, %v2101_v54 }
 0xc9a   : > { %v2103_v7 = vpop.permute.xlu1 %2102 }
 0xc9b   : > { %2140 = vrot.lane.b32.xlu0 %v2124_v55, %s5089_s17  ;;  %v2125_v13 = vmul.f32 %v5778_v6, %v2103_v7 }
 0xc9c   : > { %v2105_v61 = vpop.permute.xlu0 %2104 }
 0xc9d   : > { %v2126_v10 = vmul.f32 %v5775_v60, %v2105_v61  ;;  %2142 = vrot.lane.b32.xlu1 %v2125_v13, %s5089_s17  ;;  %v377_v61 = vld [vmem:[%s5202_s29 + $0x150] sm:$0xff] }
 0xc9e   : > { %v2107_v3 = vpop.permute.xlu1 %2106  ;;  %v420_v12 = vpack.c.bf16 %v378_v5, %v377_v61 }
 0xc9f   : > { %2144 = vrot.lane.b32.xlu0 %v2126_v10, %s5089_s17  ;;  %v2127_v11 = vmul.f32 %v5783_v36, %v2107_v3  ;;  %v419_v10 = vpack.c.bf16 %v376_v57, %v375_v63 }
 0xca0   : > { %v2109_v30 = vpop.permute.xlu0 %2108 }
 0xca1   : > { %2146 = vrot.lane.b32.xlu1 %v2127_v11, %s5089_s17  ;;  %v2128_v16 = vmul.f32 %v5787_v32, %v2109_v30  ;;  %4092 = vmatprep.mubr.msk.bf16.mxu1 %vm454_vm0, %v419_v10 }
 0xca2   : > { %v2111_v38 = vpop.permute.xlu1 %2110  ;;  %4093 = vmatmul.mubr.msk.bf16.gmra.mrb[24].mxu1 %vm454_vm0, %v420_v12 }
 0xca3   : > { %2148 = vrot.lane.b32.xlu0 %v2128_v16, %s5089_s17  ;;  %v2129_v20 = vmul.f32 %v5794_v19, %v2111_v38  ;;  %v380_v38 = vld [vmem:[%s5202_s29 + $0x168] sm:$0xff] }
 0xca4   : > { %v2113_v52 = vpop.permute.xlu0 %2112 }
 0xca5   : > { %v2130_v56 = vmul.f32 %v5791_v17, %v2113_v52  ;;  %2150 = vrot.lane.b32.xlu1 %v2129_v20, %s5089_s17 }
 0xca6   : > { %v2115_v46 = vpop.permute.xlu1 %2114 }
 0xca7   : > { %2152 = vrot.lane.b32.xlu0 %v2130_v56, %s5089_s17  ;;  %v2131_v28 = vmul.f32 %v5799_v24, %v2115_v46  ;;  %v379_v56 = vld [vmem:[%s5202_s29 + $0x160] sm:$0xff]  ;;  %v381_v46 = vld [vmem:[%s5202_s29 + $0x170] sm:$0xff] }
 0xca8   : > { %v421_v20 = vpack.c.bf16 %v380_v38, %v379_v56 }
 0xca9   : > { %2154 = vrot.lane.b32.xlu1 %v2131_v28, %s5089_s17  ;;  %v382_v28 = vld [vmem:[%s5202_s29 + $0x178] sm:$0xff] }
 0xcaa   : > { %4096 = vmatprep.mubr.msk.bf16.mxu1 %vm454_vm0, %v421_v20 }
 0xd0d   : > { %v2141_v31 = vpop.permute.xlu0 %2140 }
 0xd0e   : > { %v5805_v33 = vadd.f32 %v2141_v31, %v2084_v29 }
 0xd0f   : > { %v2143_v22 = vpop.permute.xlu1 %2142 }
 0xd10   : > { %4717 = vtanh.f32 %v5805_v33  ;;  %v5814_v50 = vadd.f32 %v2143_v22, %v2085_v34 }
 0xd11   : > { %v2145_v8 = vpop.permute.xlu0 %2144 }
 0xd12   : > { %v5812_v47 = vadd.f32 %v2145_v8, %v2086_v35 }
 0xd13   : > { %v2147_v15 = vpop.permute.xlu1 %2146 }
 0xd14   : > { %4719 = vtanh.f32 %v5812_v47  ;;  %v5820_v18 = vadd.f32 %v2147_v15, %v2087_v40 }
 0xd15   : > { %4721 = vtanh.f32 %v5814_v50  ;;  %v2149_v45 = vpop.permute.xlu0 %2148 }
 0xd16   : > { %4723 = vtanh.f32 %v5820_v18  ;;  %v5828_v48 = vadd.f32 %v2149_v45, %v2088_v44 }
 0xd17   : > { %v2151_v2 = vpop.permute.xlu1 %2150 }
 0xd18   : > { %4725 = vtanh.f32 %v5828_v48  ;;  %v5838_v23 = vadd.f32 %v2151_v2, %v2089_v62 }
 0xd19   : > { %v2153_v51 = vpop.permute.xlu0 %2152 }
 0xd1a   : > { %v4718_v49 = vpop.eup %4717  ;;  %v5836_v4 = vadd.f32 %v2153_v51, %v2090_v14 }
 0xd1b   : > { %2188 = vrot.lane.b32.xlu0 %v4718_v49, %s5089_s17  ;;  %v2155_v9 = vpop.permute.xlu1 %2154 }
 0xd1c   : > { %4727 = vtanh.f32 %v5836_v4  ;;  %v5844_v54 = vadd.f32 %v2155_v9, %v2091_v39 }
 0xd1d   : > { %4729 = vtanh.f32 %v5838_v23 }
 0xd1e   : > { %v4720_v42 = vpop.eup %4719  ;;  %4731 = vtanh.f32 %v5844_v54 }
 0xd1f   : > { %2192 = vrot.lane.b32.xlu0 %v4720_v42, %s5089_s17  ;;  %v4722_v43 = vpop.eup %4721 }
 0xd20   : > { %2190 = vrot.lane.b32.xlu1 %v4722_v43, %s5089_s17  ;;  %v4724_v37 = vpop.eup %4723 }
 0xd22   : > { %v4726_v55 = vpop.eup %4725 }
 0xd23   : > { %2196 = vrot.lane.b32.xlu0 %v4726_v55, %s5089_s17 }
 0xd24   : > { %2194 = vrot.lane.b32.xlu1 %v4724_v37, %s5089_s17 }
 0xd26   : > { %v4728_v7 = vpop.eup %4727 }
 0xd27   : > { %2200 = vrot.lane.b32.xlu0 %v4728_v7, %s5089_s17  ;;  %v4730_v0 = vpop.eup %4729 }
 0xd28   : > { %2198 = vrot.lane.b32.xlu1 %v4730_v0, %s5089_s17  ;;  %v4732_v13 = vpop.eup %4731 }
 0xd2c   : > { %2202 = vrot.lane.b32.xlu1 %v4732_v13, %s5089_s17 }
 0xd75   : > { %v4094_v15 = vpop.f32.mrb[24].mxu1 }
 0xd76   : > { %v745_v49 = vpop.f32.mrb[25].mxu1  ;;  %v754_v51 = vadd.f32 %v5615_v26, %v4094_v15 }
 0xd77   : > { %v4095_v42 = vpop.f32.mrb[26].mxu1  ;;  %v746_v62 = vadd.f32 %v5615_v26, %v745_v49 }
 0xd78   : > { %v748_v44 = vpop.f32.mrb[27].mxu1  ;;  %v757_v39 = vadd.f32 %v5615_v26, %v4095_v42 }
 0xd79   : > { %v749_v63 = vadd.f32 %v5615_v26, %v748_v44 }
 0xd8d   : > { %v2189_v21 = vpop.permute.xlu0 %2188 }
 0xd8e   : > { %v2212_v3 = vmul.f32 %v5771_v59, %v2189_v21  ;;  %v422_v59 = vpack.c.bf16 %v382_v28, %v381_v46 }
 0xd90   : > { %4097 = vmatmul.mubr.msk.bf16.gmra.mrb[28].mxu1 %vm454_vm0, %v422_v59 }
 0xd91   : > { %v2193_v58 = vpop.permute.xlu0 %2192 }
 0xd92   : > { %v2191_v1 = vpop.permute.xlu1 %2190  ;;  %v2214_v30 = vmul.f32 %v5775_v60, %v2193_v58 }
 0xd93   : > { %v2213_v11 = vmul.f32 %v5778_v6, %v2191_v1 }
 0xd95   : > { %v2220_v41 = vpack.c.bf16 %v2213_v11, %v2212_v3  ;;  %v2197_v6 = vpop.permute.xlu0 %2196 }
 0xd96   : > { %v2195_v53 = vpop.permute.xlu1 %2194  ;;  %v2216_v60 = vmul.f32 %v5787_v32, %v2197_v6 }
 0xd97   : > { %v2215_v16 = vmul.f32 %v5783_v36, %v2195_v53  ;;  %2228 = vrot.lane.b32.xlu0 %v2220_v41, %s5090_s25 }
 0xd99   : > { %v2221_v52 = vpack.c.bf16 %v2215_v16, %v2214_v30  ;;  %v2201_v31 = vpop.permute.xlu0 %2200 }
 0xd9a   : > { %v2199_v29 = vpop.permute.xlu1 %2198  ;;  %v2218_v34 = vmul.f32 %v5791_v17, %v2201_v31 }
 0xd9b   : > { %2230 = vrot.lane.b32.xlu1 %v2221_v52, %s5090_s25  ;;  %v2217_v36 = vmul.f32 %v5794_v19, %v2199_v29 }
 0xd9d   : > { %v2222_v35 = vpack.c.bf16 %v2217_v36, %v2216_v60 }
 0xd9e   : > { %v2203_v8 = vpop.permute.xlu1 %2202 }
 0xd9f   : > { %v2219_v22 = vmul.f32 %v5799_v24, %v2203_v8  ;;  %2232 = vrot.lane.b32.xlu0 %v2222_v35, %s5090_s25 }
 0xda1   : > { %v2223_v40 = vpack.c.bf16 %v2219_v22, %v2218_v34 }
 0xda3   : > { %2234 = vrot.lane.b32.xlu1 %v2223_v40, %s5090_s25 }
 0xe09   : > { %v2229_v43 = vpop.permute.xlu0 %2228 }
 0xe0a   : > { %4168 = vmatprep.mubr.msk.bf16.mxu0 %vm454_vm0, %v2229_v43 }
 0xe0d   : > { %v2231_v32 = vpop.permute.xlu1 %2230 }
 0xe0e   : > { %4169 = vmatmul.mubr.msk.bf16.vlgmr.msra.gmra.mrb[40].mxu0 %vm454_vm0, %v2231_v32 }
 0xe0f   : > { %4177 = vmatpush3.bf16.msra.mxu0 %v5742_v25 }
 0xe10   : > { %4178 = vmatprep.subr.bf16.mxu0 %v5748_v27 }
 0xe11   : > { %v2233_v17 = vpop.permute.xlu0 %2232 }
 0xe12   : > { %4172 = vmatprep.mubr.msk.bf16.mxu0 %vm454_vm0, %v2233_v17 }
 0xe13   : > { %4179 = vmatpush3.bf16.msra.mxu0 %v5748_v27 }
 0xe14   : > { %4188 = vmatprep.subr.bf16.mxu0 %v5742_v25 }
 0xe15   : > { %v2235_v19 = vpop.permute.xlu1 %2234 }
 0xe16   : > { %4173 = vmatmul.mubr.msk.bf16.gmra.mrb[44].mxu0 %vm454_vm0, %v2235_v19 }
 0xe63   : > { %v4098_v24 = vpop.f32.mrb[28].mxu1 }
 0xe64   : > { %v761_v45 = vpop.f32.mrb[29].mxu1  ;;  %v770_v0 = vadd.f32 %v5615_v26, %v4098_v24 }
 0xe65   : > { %v4099_v37 = vpop.f32.mrb[30].mxu1  ;;  %v762_v21 = vadd.f32 %v5615_v26, %v761_v45 }
 0xe66   : > { %v764_v14 = vpop.f32.mrb[31].mxu1  ;;  %v773_v1 = vadd.f32 %v5615_v26, %v4099_v37 }
 0xe67   : > { %v765_v58 = vadd.f32 %v5615_v26, %v764_v14 }
 0xee1   : > { %v4170_v2 = vpop.f32.mrb[40].mxu0 }
 0xee2   : > { %v2315_v9 = vadd.f32 %v4170_v2, %v754_v51  ;;  %v2282_v55 = vpop.f32.mrb[41].mxu0 }
 0xee3   : > { %v2313_v57 = vadd.f32 %v2282_v55, %v746_v62  ;;  %v4171_v61 = vpop.f32.mrb[42].mxu0 }
 0xee4   : > { %v2316_v10 = vadd.f32 %v4171_v61, %v757_v39  ;;  %v2285_v5 = vpop.f32.mrb[43].mxu0  ;;  %v3890_v29 = vmul.f32 -1.442695, %v2315_v9 }
 0xee5   : > { %4733 = vtanh.f32 %v2313_v57  ;;  %v2314_v7 = vadd.f32 %v2285_v5, %v749_v63  ;;  %v3888_v6 = vmul.f32 -1.442695, %v2313_v57 }
 0xee6   : > { %4735 = vtanh.f32 %v2315_v9  ;;  %v3891_v36 = vmul.f32 -1.442695, %v2316_v10 }
 0xee7   : > { %4737 = vtanh.f32 %v2314_v7  ;;  %v3889_v60 = vmul.f32 -1.442695, %v2314_v7 }
 0xee8   : > { %4739 = vtanh.f32 %v2316_v10 }
 0xee9   : > { %v4174_v11 = vpop.f32.mrb[44].mxu0 }
 0xeea   : > { %v2319_v41 = vadd.f32 %v4174_v11, %v770_v0  ;;  %v2298_v53 = vpop.f32.mrb[45].mxu0 }
 0xeeb   : > { %v2317_v30 = vadd.f32 %v2298_v53, %v762_v21  ;;  %v4175_v16 = vpop.f32.mrb[46].mxu0 }
 0xeec   : > { %v2320_v52 = vadd.f32 %v4175_v16, %v773_v1  ;;  %v2301_v56 = vpop.f32.mrb[47].mxu0  ;;  %v3894_v42 = vmul.f32 -1.442695, %v2319_v41 }
 0xeed   : > { %4741 = vtanh.f32 %v2317_v30  ;;  %v2318_v20 = vadd.f32 %v2301_v56, %v765_v58  ;;  %v3892_v22 = vmul.f32 -1.442695, %v2317_v30 }
 0xeee   : > { %4743 = vtanh.f32 %v2319_v41  ;;  %v3895_v32 = vmul.f32 -1.442695, %v2320_v52 }
 0xeef   : > { %v4734_v12 = vpop.eup %4733  ;;  %4745 = vtanh.f32 %v2318_v20  ;;  %v3893_v43 = vmul.f32 -1.442695, %v2318_v20 }
 0xef0   : > { %2393 = vrot.lane.b32.xlu0 %v4734_v12, %s5089_s17  ;;  %v4736_v13 = vpop.eup %4735  ;;  %4747 = vtanh.f32 %v2320_v52 }
 0xef1   : > { %v4738_v3 = vpop.eup %4737  ;;  %4749 = vpow2.f32 %v3888_v6 }
 0xef2   : > { %2395 = vrot.lane.b32.xlu1 %v4738_v3, %s5089_s17  ;;  %v4740_v38 = vpop.eup %4739  ;;  %4751 = vpow2.f32 %v3890_v29 }
 0xef3   : > { %4753 = vpow2.f32 %v3889_v60 }
 0xef4   : > { %2397 = vrot.lane.b32.xlu0 %v4736_v13, %s5089_s17  ;;  %4755 = vpow2.f32 %v3891_v36 }
 0xef6   : > { %2399 = vrot.lane.b32.xlu1 %v4740_v38, %s5089_s17 }
 0xef7   : > { %v4742_v46 = vpop.eup %4741 }
 0xef8   : > { %2401 = vrot.lane.b32.xlu0 %v4742_v46, %s5089_s17  ;;  %v4744_v26 = vpop.eup %4743 }
 0xef9   : > { %v4746_v28 = vpop.eup %4745 }
 0xefa   : > { %2403 = vrot.lane.b32.xlu1 %v4746_v28, %s5089_s17  ;;  %v4748_v59 = vpop.eup %4747 }
 0xefb   : > { %v4750_v31 = vpop.eup %4749 }
 0xefc   : > { %2405 = vrot.lane.b32.xlu0 %v4744_v26, %s5089_s17  ;;  %v2345_v35 = vadd.f32 1.0, %v4750_v31  ;;  %v4752_v8 = vpop.eup %4751 }
 0xefd   : > { %v4754_v34 = vpop.eup %4753  ;;  %v2347_v40 = vadd.f32 1.0, %v4752_v8 }
 0xefe   : > { %2407 = vrot.lane.b32.xlu1 %v4748_v59, %s5089_s17  ;;  %4757 = vrcp.f32 %v2345_v35  ;;  %v2346_v15 = vadd.f32 1.0, %v4754_v34  ;;  %v4756_v49 = vpop.eup %4755 }
 0xeff   : > { %4759 = vpow2.f32 %v3892_v22  ;;  %v2348_v44 = vadd.f32 1.0, %v4756_v49 }
 0xf00   : > { %4761 = vrcp.f32 %v2347_v40 }
 0xf01   : > { %4763 = vrcp.f32 %v2346_v15 }
 0xf02   : > { %4765 = vpow2.f32 %v3894_v42 }
 0xf03   : > { %4767 = vpow2.f32 %v3893_v43 }
 0xf04   : > { %4769 = vrcp.f32 %v2348_v44 }
 0xf05   : > { %4771 = vpow2.f32 %v3895_v32 }
 0xf08   : > { %v5899_v17 = vpop.eup %4757 }
 0xf09   : > { %v4760_v45 = vpop.eup %4759  ;;  %v2377_v38 = vmul.f32 %v5899_v17, %v5805_v33 }
 0xf0a   : > { %v5903_v37 = vpop.eup %4761  ;;  %v2349_v2 = vadd.f32 1.0, %v4760_v45  ;;  %v385_v45 = vld [vmem:[%s5202_s29 + $0x190] sm:$0xff] }
 0xf0b   : > { %v5906_v62 = vpop.eup %4763  ;;  %v2379_v26 = vmul.f32 %v5903_v37, %v5812_v47 }
 0xf0c   : > { %v4766_v9 = vpop.eup %4765  ;;  %4773 = vrcp.f32 %v2349_v2  ;;  %v2378_v59 = vmul.f32 %v5906_v62, %v5814_v50 }
 0xf0d   : > { %v4768_v63 = vpop.eup %4767  ;;  %v2351_v61 = vadd.f32 1.0, %v4766_v9 }
 0xf0e   : > { %v5911_v57 = vpop.eup %4769  ;;  %v2350_v7 = vadd.f32 1.0, %v4768_v63 }
 0xf0f   : > { %v4772_v12 = vpop.eup %4771  ;;  %4775 = vrcp.f32 %v2351_v61  ;;  %v2380_v33 = vmul.f32 %v5911_v57, %v5820_v18 }
 0xf10   : > { %v2352_v0 = vadd.f32 1.0, %v4772_v12  ;;  %4777 = vrcp.f32 %v2350_v7 }
 0xf12   : > { %4779 = vrcp.f32 %v2352_v0 }
 0xf16   : > { %v5915_v13 = vpop.eup %4773 }
 0xf17   : > { %v2381_v8 = vmul.f32 %v5915_v13, %v5828_v48 }
 0xf19   : > { %v5919_v3 = vpop.eup %4775 }
 0xf1a   : > { %v5922_v41 = vpop.eup %4777  ;;  %v2383_v40 = vmul.f32 %v5919_v3, %v5836_v4 }
 0xf1b   : > { %v2382_v48 = vmul.f32 %v5922_v41, %v5838_v23  ;;  %v383_v23 = vld [vmem:[%s5202_s29 + $0x180] sm:$0xff] }
 0xf1c   : > { %v5927_v16 = vpop.eup %4779 }
 0xf1d   : > { %v2384_v4 = vmul.f32 %v5927_v16, %v5844_v54 }
 0xf62   : > { %v2394_v19 = vpop.permute.xlu0 %2393 }
 0xf63   : > { %v2417_v24 = vmul.f32 %v5899_v17, %v2394_v19 }
 0xf64   : > { %v2396_v39 = vpop.permute.xlu1 %2395 }
 0xf65   : > { %2433 = vrot.lane.b32.xlu0 %v2417_v24, %s5089_s17  ;;  %v2418_v55 = vmul.f32 %v5906_v62, %v2396_v39  ;;  %v384_v24 = vld [vmem:[%s5202_s29 + $0x188] sm:$0xff] }
 0xf66   : > { %v2398_v14 = vpop.permute.xlu0 %2397 }
 0xf67   : > { %v2419_v51 = vmul.f32 %v5903_v37, %v2398_v14  ;;  %2435 = vrot.lane.b32.xlu1 %v2418_v55, %s5089_s17  ;;  %v423_v14 = vpack.c.bf16 %v384_v24, %v383_v23 }
 0xf68   : > { %v2400_v10 = vpop.permute.xlu1 %2399 }
 0xf69   : > { %2437 = vrot.lane.b32.xlu0 %v2419_v51, %s5089_s17  ;;  %v2420_v5 = vmul.f32 %v5911_v57, %v2400_v10  ;;  %v386_v51 = vld [vmem:[%s5202_s29 + $0x198] sm:$0xff]  ;;  %4100 = vmatprep.mubr.msk.bf16.mxu1 %vm454_vm0, %v423_v14 }
 0xf6a   : > { %v2402_v21 = vpop.permute.xlu0 %2401  ;;  %v424_v39 = vpack.c.bf16 %v386_v51, %v385_v45 }
 0xf6b   : > { %2439 = vrot.lane.b32.xlu1 %v2420_v5, %s5089_s17  ;;  %v2421_v1 = vmul.f32 %v5915_v13, %v2402_v21 }
 0xf6c   : > { %v2404_v53 = vpop.permute.xlu1 %2403  ;;  %4101 = vmatmul.mubr.msk.bf16.gmra.mrb[32].mxu1 %vm454_vm0, %v424_v39 }
 0xf6d   : > { %2441 = vrot.lane.b32.xlu0 %v2421_v1, %s5089_s17  ;;  %v2422_v30 = vmul.f32 %v5922_v41, %v2404_v53 }
 0xf6e   : > { %v2406_v11 = vpop.permute.xlu0 %2405 }
 0xf6f   : > { %v2423_v58 = vmul.f32 %v5919_v3, %v2406_v11  ;;  %2443 = vrot.lane.b32.xlu1 %v2422_v30, %s5089_s17  ;;  %v387_v11 = vld [vmem:[%s5202_s29 + $0x1a0] sm:$0xff]  ;;  %v389_v30 = vld [vmem:[%s5202_s29 + $0x1b0] sm:$0xff] }
 0xf70   : > { %v2408_v52 = vpop.permute.xlu1 %2407 }
 0xf71   : > { %2445 = vrot.lane.b32.xlu0 %v2423_v58, %s5089_s17  ;;  %v2424_v56 = vmul.f32 %v5927_v16, %v2408_v52  ;;  %v388_v58 = vld [vmem:[%s5202_s29 + $0x1a8] sm:$0xff]  ;;  %v390_v52 = vld [vmem:[%s5202_s29 + $0x1b8] sm:$0xff] }
 0xf72   : > { %v425_v53 = vpack.c.bf16 %v388_v58, %v387_v11 }
 0xf73   : > { %2447 = vrot.lane.b32.xlu1 %v2424_v56, %s5089_s17 }
 0xf74   : > { %4104 = vmatprep.mubr.msk.bf16.mxu1 %vm454_vm0, %v425_v53 }
 0xfd7   : > { %v2434_v20 = vpop.permute.xlu0 %2433 }
 0xfd8   : > { %v5933_v46 = vadd.f32 %v2434_v20, %v2377_v38 }
 0xfd9   : > { %v2436_v29 = vpop.permute.xlu1 %2435 }
 0xfda   : > { %4781 = vtanh.f32 %v5933_v46  ;;  %v5942_v60 = vadd.f32 %v2436_v29, %v2378_v59 }
 0xfdb   : > { %v2438_v28 = vpop.permute.xlu0 %2437 }
 0xfdc   : > { %v5940_v6 = vadd.f32 %v2438_v28, %v2379_v26 }
 0xfdd   : > { %v2440_v36 = vpop.permute.xlu1 %2439 }
 0xfde   : > { %4783 = vtanh.f32 %v5940_v6  ;;  %v5948_v31 = vadd.f32 %v2440_v36, %v2380_v33 }
 0xfdf   : > { %4785 = vtanh.f32 %v5942_v60  ;;  %v2442_v34 = vpop.permute.xlu0 %2441 }
 0xfe0   : > { %4787 = vtanh.f32 %v5948_v31  ;;  %v5956_v22 = vadd.f32 %v2442_v34, %v2381_v8 }
 0xfe1   : > { %v2444_v42 = vpop.permute.xlu1 %2443 }
 0xfe2   : > { %4789 = vtanh.f32 %v5956_v22  ;;  %v5966_v43 = vadd.f32 %v2444_v42, %v2382_v48 }
 0xfe3   : > { %v2446_v15 = vpop.permute.xlu0 %2445 }
 0xfe4   : > { %v4782_v47 = vpop.eup %4781  ;;  %v5964_v49 = vadd.f32 %v2446_v15, %v2383_v40  ;;  %v6013_v40 = vld [vmem:[%s6526_s2] ss:$0 sm:$0xff] }
 0xfe5   : > { %2481 = vrot.lane.b32.xlu0 %v4782_v47, %s5089_s17  ;;  %v2448_v44 = vpop.permute.xlu1 %2447 }
 0xfe6   : > { %4791 = vtanh.f32 %v5964_v49  ;;  %v5972_v32 = vadd.f32 %v2448_v44, %v2384_v4 }
 0xfe7   : > { %4793 = vtanh.f32 %v5966_v43 }
 0xfe8   : > { %v4784_v50 = vpop.eup %4783  ;;  %4795 = vtanh.f32 %v5972_v32 }
 0xfe9   : > { %2485 = vrot.lane.b32.xlu0 %v4784_v50, %s5089_s17  ;;  %v4786_v35 = vpop.eup %4785 }
 0xfea   : > { %2483 = vrot.lane.b32.xlu1 %v4786_v35, %s5089_s17  ;;  %v4788_v18 = vpop.eup %4787 }
 0xfec   : > { %v4790_v19 = vpop.eup %4789 }
 0xfed   : > { %2489 = vrot.lane.b32.xlu0 %v4790_v19, %s5089_s17 }
 0xfee   : > { %2487 = vrot.lane.b32.xlu1 %v4788_v18, %s5089_s17 }
 0xff0   : > { %v4792_v2 = vpop.eup %4791 }
 0xff1   : > { %2493 = vrot.lane.b32.xlu0 %v4792_v2, %s5089_s17  ;;  %v4794_v54 = vpop.eup %4793 }
 0xff2   : > { %2491 = vrot.lane.b32.xlu1 %v4794_v54, %s5089_s17  ;;  %v4796_v9 = vpop.eup %4795 }
 0xff6   : > { %2495 = vrot.lane.b32.xlu1 %v4796_v9, %s5089_s17 }
0x103f   : > { %v4102_v33 = vpop.f32.mrb[32].mxu1 }
0x1040   : > { %v777_v36 = vpop.f32.mrb[33].mxu1 }
0x1041   : > { %v4103_v47 = vpop.f32.mrb[34].mxu1  ;;  %v778_v15 = vadd.f32 %v6013_v40, %v777_v36 }
0x1042   : > { %v780_v35 = vpop.f32.mrb[35].mxu1  ;;  %v789_v48 = vadd.f32 %v6013_v40, %v4103_v47 }
0x1043   : > { %v781_v44 = vadd.f32 %v6013_v40, %v780_v35 }
0x1057   : > { %v2482_v55 = vpop.permute.xlu0 %2481 }
0x1058   : > { %v2505_v61 = vmul.f32 %v5899_v17, %v2482_v55  ;;  %v426_v17 = vpack.c.bf16 %v390_v52, %v389_v30 }
0x105a   : > { %4105 = vmatmul.mubr.msk.bf16.gmra.mrb[36].mxu1 %vm454_vm0, %v426_v17 }
0x105b   : > { %v2486_v5 = vpop.permute.xlu0 %2485 }
0x105c   : > { %v2484_v63 = vpop.permute.xlu1 %2483  ;;  %v2507_v0 = vmul.f32 %v5903_v37, %v2486_v5 }
0x105d   : > { %v2506_v10 = vmul.f32 %v5906_v62, %v2484_v63 }
0x105f   : > { %v2513_v7 = vpack.c.bf16 %v2506_v10, %v2505_v61  ;;  %v2490_v62 = vpop.permute.xlu0 %2489 }
0x1060   : > { %v2488_v12 = vpop.permute.xlu1 %2487  ;;  %v2509_v37 = vmul.f32 %v5915_v13, %v2490_v62 }
0x1061   : > { %v2508_v21 = vmul.f32 %v5911_v57, %v2488_v12  ;;  %2521 = vrot.lane.b32.xlu0 %v2513_v7, %s5090_s25 }
0x1063   : > { %v2514_v1 = vpack.c.bf16 %v2508_v21, %v2507_v0  ;;  %v2494_v38 = vpop.permute.xlu0 %2493 }
0x1064   : > { %v2492_v56 = vpop.permute.xlu1 %2491  ;;  %v2511_v28 = vmul.f32 %v5919_v3, %v2494_v38 }
0x1065   : > { %2523 = vrot.lane.b32.xlu1 %v2514_v1, %s5090_s25  ;;  %v2510_v57 = vmul.f32 %v5922_v41, %v2492_v56 }
0x1067   : > { %v2515_v20 = vpack.c.bf16 %v2510_v57, %v2509_v37 }
0x1068   : > { %v2496_v26 = vpop.permute.xlu1 %2495 }
0x1069   : > { %v2512_v59 = vmul.f32 %v5927_v16, %v2496_v26  ;;  %2525 = vrot.lane.b32.xlu0 %v2515_v20, %s5090_s25 }
0x106b   : > { %v2516_v29 = vpack.c.bf16 %v2512_v59, %v2511_v28 }
0x106d   : > { %2527 = vrot.lane.b32.xlu1 %v2516_v29, %s5090_s25 }
0x10d3   : > { %v2522_v50 = vpop.permute.xlu0 %2521 }
0x10d4   : > { %4180 = vmatprep.mubr.msk.bf16.mxu0 %vm454_vm0, %v2522_v50 }
0x10d7   : > { %v2524_v13 = vpop.permute.xlu1 %2523 }
0x10d8   : > { %4181 = vmatmul.mubr.msk.bf16.vlgmr.msra.gmra.mrb[48].mxu0 %vm454_vm0, %v2524_v13 }
0x10d9   : > { %4189 = vmatpush3.bf16.msra.mxu0 %v5742_v25  ;;  %v786_v25 = vadd.f32 %v6013_v40, %v4102_v33 }
0x10da   : > { %4190 = vmatprep.subr.bf16.mxu0 %v5748_v27 }
0x10db   : > { %v2526_v3 = vpop.permute.xlu0 %2525 }
0x10dc   : > { %4184 = vmatprep.mubr.msk.bf16.mxu0 %vm454_vm0, %v2526_v3 }
0x10dd   : > { %4191 = vmatpush3.bf16.msra.mxu0 %v5748_v27 }
0x10df   : > { %v2528_v41 = vpop.permute.xlu1 %2527 }
0x10e0   : > { %4185 = vmatmul.mubr.msk.bf16.gmra.mrb[52].mxu0 %vm454_vm0, %v2528_v41 }
0x112d   : > { %v4106_v16 = vpop.f32.mrb[36].mxu1 }
0x112e   : > { %v793_v8 = vpop.f32.mrb[37].mxu1  ;;  %v802_v2 = vadd.f32 %v6013_v40, %v4106_v16 }
0x112f   : > { %v4107_v34 = vpop.f32.mrb[38].mxu1  ;;  %v794_v54 = vadd.f32 %v6013_v40, %v793_v8 }
0x1130   : > { %v796_v18 = vpop.f32.mrb[39].mxu1  ;;  %v805_v9 = vadd.f32 %v6013_v40, %v4107_v34 }
0x1131   : > { %v797_v61 = vadd.f32 %v6013_v40, %v796_v18 }
0x11ab   : > { %v4182_v27 = vpop.f32.mrb[48].mxu0 }
0x11ac   : > { %v2608_v42 = vadd.f32 %v4182_v27, %v786_v25  ;;  %v2575_v4 = vpop.f32.mrb[49].mxu0 }
0x11ad   : > { %v2606_v19 = vadd.f32 %v2575_v4, %v778_v15  ;;  %v4183_v23 = vpop.f32.mrb[50].mxu0 }
0x11ae   : > { %v2609_v24 = vadd.f32 %v4183_v23, %v789_v48  ;;  %v2578_v45 = vpop.f32.mrb[51].mxu0  ;;  %v3902_v62 = vmul.f32 -1.442695, %v2608_v42 }
0x11af   : > { %4797 = vtanh.f32 %v2606_v19  ;;  %v2607_v14 = vadd.f32 %v2578_v45, %v781_v44  ;;  %v3900_v17 = vmul.f32 -1.442695, %v2606_v19 }
0x11b0   : > { %4799 = vtanh.f32 %v2608_v42  ;;  %v3903_v37 = vmul.f32 -1.442695, %v2609_v24 }
0x11b1   : > { %4801 = vtanh.f32 %v2607_v14  ;;  %v3901_v56 = vmul.f32 -1.442695, %v2607_v14 }
0x11b2   : > { %4803 = vtanh.f32 %v2609_v24 }
0x11b3   : > { %v4186_v63 = vpop.f32.mrb[52].mxu0 }
0x11b4   : > { %v2612_v10 = vadd.f32 %v4186_v63, %v802_v2  ;;  %v2591_v5 = vpop.f32.mrb[53].mxu0 }
0x11b5   : > { %v2610_v7 = vadd.f32 %v2591_v5, %v794_v54  ;;  %v4187_v12 = vpop.f32.mrb[54].mxu0 }
0x11b6   : > { %v2613_v0 = vadd.f32 %v4187_v12, %v805_v9  ;;  %v2594_v21 = vpop.f32.mrb[55].mxu0  ;;  %v3906_v36 = vmul.f32 -1.442695, %v2612_v10 }
0x11b7   : > { %4805 = vtanh.f32 %v2610_v7  ;;  %v2611_v11 = vadd.f32 %v2594_v21, %v797_v61  ;;  %v3904_v28 = vmul.f32 -1.442695, %v2610_v7  ;;  %v391_v21 = vld [vmem:[%s5202_s29 + $0x1c0] sm:$0xff] }
0x11b8   : > { %4807 = vtanh.f32 %v2612_v10  ;;  %v3907_v35 = vmul.f32 -1.442695, %v2613_v0 }
0x11b9   : > { %v4798_v51 = vpop.eup %4797  ;;  %4809 = vtanh.f32 %v2611_v11  ;;  %v3905_v47 = vmul.f32 -1.442695, %v2611_v11  ;;  %v393_v11 = vld [vmem:[%s5202_s29 + $0x1d0] sm:$0xff] }
0x11ba   : > { %2686 = vrot.lane.b32.xlu0 %v4798_v51, %s5089_s17  ;;  %v4800_v39 = vpop.eup %4799  ;;  %4811 = vtanh.f32 %v2613_v0 }
0x11bb   : > { %v4802_v55 = vpop.eup %4801  ;;  %4813 = vpow2.f32 %v3900_v17 }
0x11bc   : > { %2688 = vrot.lane.b32.xlu1 %v4802_v55, %s5089_s17  ;;  %v4804_v1 = vpop.eup %4803  ;;  %4815 = vpow2.f32 %v3902_v62 }
0x11bd   : > { %4817 = vpow2.f32 %v3901_v56  ;;  %v4407_v56 = vld [vmem:[%s6527_s3] sm:$0xff]  }
0x11be   : > { %2690 = vrot.lane.b32.xlu0 %v4800_v39, %s5089_s17  ;;  %4819 = vpow2.f32 %v3903_v37  ;;  %v4408_v37 = vld [vmem:[%s6527_s3 + $0x8] sm:$0xff]   ;;  %4200 = vmatprep.subr.bf16.mxu1 %v4407_v56 }
0x11bf   : > { %4201 = vmatpush3.bf16.msra.mxu1 %v4407_v56 }
0x11c0   : > { %2692 = vrot.lane.b32.xlu1 %v4804_v1, %s5089_s17  ;;  %v392_v1 = vld [vmem:[%s5202_s29 + $0x1c8] sm:$0xff]  ;;  %4202 = vmatprep.subr.bf16.mxu1 %v4408_v37 }
0x11c1   : > { %v4806_v58 = vpop.eup %4805 }
0x11c2   : > { %2694 = vrot.lane.b32.xlu0 %v4806_v58, %s5089_s17  ;;  %v4808_v53 = vpop.eup %4807  ;;  %v427_v58 = vpack.c.bf16 %v392_v1, %v391_v21 }
0x11c3   : > { %v4810_v30 = vpop.eup %4809  ;;  %4203 = vmatpush3.bf16.msra.mxu1 %v4408_v37 }
0x11c4   : > { %2696 = vrot.lane.b32.xlu1 %v4810_v30, %s5089_s17  ;;  %v4812_v52 = vpop.eup %4811  ;;  %v395_v30 = vld [vmem:[%s5202_s29 + $0x1e0] sm:$0xff]  ;;  %4108 = vmatprep.mubr.msk.bf16.mxu1 %vm454_vm0, %v427_v58 }
0x11c5   : > { %v4814_v57 = vpop.eup %4813 }
0x11c6   : > { %2698 = vrot.lane.b32.xlu0 %v4808_v53, %s5089_s17  ;;  %v2638_v38 = vadd.f32 1.0, %v4814_v57  ;;  %v4816_v20 = vpop.eup %4815  ;;  %v394_v53 = vld [vmem:[%s5202_s29 + $0x1d8] sm:$0xff]  ;;  %v397_v57 = vld [vmem:[%s5202_s29 + $0x1f0] sm:$0xff] }
0x11c7   : > { %v4818_v26 = vpop.eup %4817  ;;  %v2640_v59 = vadd.f32 1.0, %v4816_v20  ;;  %v428_v17 = vpack.c.bf16 %v394_v53, %v393_v11 }
0x11c8   : > { %2700 = vrot.lane.b32.xlu1 %v4812_v52, %s5089_s17  ;;  %4821 = vrcp.f32 %v2638_v38  ;;  %v2639_v29 = vadd.f32 1.0, %v4818_v26  ;;  %v4820_v33 = vpop.eup %4819  ;;  %v396_v52 = vld [vmem:[%s5202_s29 + $0x1e8] sm:$0xff]  ;;  %v398_v38 = vld [vmem:[%s5202_s29 + $0x1f8] sm:$0xff]  ;;  %s324_s29 = sand.u32 1, %s5079_s10  }
0x11c9   : > { %4823 = vpow2.f32 %v3904_v28  ;;  %v2641_v50 = vadd.f32 1.0, %v4820_v33  ;;  %v429_v62 = vpack.c.bf16 %v396_v52, %v395_v30  ;;  %4109 = vmatmul.mubr.msk.bf16.gmra.mrb[40].mxu1 %vm454_vm0, %v428_v17  ;;  %v430_v20 = vpack.c.bf16 %v398_v38, %v397_v57  ;;  %v3920_v57 = vld [vmem:[%s6528_s4] ss:$0 sm:$0xff]  ;;  %s3788_s14 = sshll.u32 %s324_s29, 6  ;;  %s6483_s13 = scalar_lea.sflag [#allocation3], %s324_s29 }
0x11ca   : > { %4825 = vrcp.f32 %v2640_v59  ;;  %s6448_s16 = scalar_lea.vmem [#allocation2], %s3788_s14 }
0x11cb   : > { %4827 = vrcp.f32 %v2639_v29  ;;  %4112 = vmatprep.mubr.msk.bf16.mxu1 %vm454_vm0, %v429_v62  ;;  %s3722_s22 = sshll.u32 %s6448_s16, 4  ;;  %s6476_s22 = int_to_ptr.vmem [resolvable:$true] %s3722_s22 }
0x11cc   : > { %4829 = vpow2.f32 %v3906_v36 }
0x11cd   : > { %4831 = vpow2.f32 %v3905_v47 }
0x11ce   : > { %4833 = vrcp.f32 %v2641_v50 }
0x11cf   : > { %4835 = vpow2.f32 %v3907_v35 }
0x11d1   : > { %4113 = vmatmul.mubr.msk.bf16.gmra.mrb[44].mxu1 %vm454_vm0, %v430_v20 }
0x11d2   : > { %v6031_v13 = vpop.eup %4821  ;;  %4204 = vmatprep.mubr.msk.bf16.mxu1 %vm454_vm0, %v427_v58 }
0x11d3   : > { %v4824_v16 = vpop.eup %4823  ;;  %v2670_v26 = vmul.f32 %v6031_v13, %v5933_v46 }
0x11d4   : > { %v6035_v8 = vpop.eup %4825  ;;  %v2642_v15 = vadd.f32 1.0, %v4824_v16 }
0x11d5   : > { %v6038_v25 = vpop.eup %4827  ;;  %v2672_v29 = vmul.f32 %v6035_v8, %v5940_v6 }
0x11d6   : > { %v4830_v48 = vpop.eup %4829  ;;  %4837 = vrcp.f32 %v2642_v15  ;;  %v2671_v36 = vmul.f32 %v6038_v25, %v5942_v60 }
0x11d7   : > { %v4832_v4 = vpop.eup %4831  ;;  %v2644_v19 = vadd.f32 1.0, %v4830_v48 }
0x11d8   : > { %v6043_v44 = vpop.eup %4833  ;;  %v2643_v45 = vadd.f32 1.0, %v4832_v4 }
0x11d9   : > { %v4836_v14 = vpop.eup %4835  ;;  %4839 = vrcp.f32 %v2644_v19  ;;  %4205 = vmatmul.mubr.msk.bf16.vlgmr.msra.gmra.mrb[48].mxu1 %vm454_vm0, %v428_v17  ;;  %v2673_v46 = vmul.f32 %v6043_v44, %v5948_v31 }
0x11da   : > { %v2645_v51 = vadd.f32 1.0, %v4836_v14  ;;  %4841 = vrcp.f32 %v2643_v45  ;;  %4208 = vmatprep.mubr.msk.bf16.mxu1 %vm454_vm0, %v429_v62 }
0x11dc   : > { %4843 = vrcp.f32 %v2645_v51 }
0x11e0   : > { %v6047_v2 = vpop.eup %4837 }
0x11e1   : > { %4209 = vmatmul.mubr.msk.bf16.gmra.mrb[52].mxu1 %vm454_vm0, %v430_v20 }
0x11e3   : > { %v6051_v9 = vpop.eup %4839 }
0x11e4   : > { %v6054_v61 = vpop.eup %4841 }
0x11e6   : > { %v6059_v7 = vpop.eup %4843 }
0x122c   : > { %v2687_v3 = vpop.permute.xlu0 %2686 }
0x122d   : > { %v2710_v41 = vmul.f32 %v6031_v13, %v2687_v3 }
0x122e   : > { %v2689_v27 = vpop.permute.xlu1 %2688 }
0x122f   : > { %2726 = vrot.lane.b32.xlu0 %v2710_v41, %s5089_s17  ;;  %v2711_v42 = vmul.f32 %v6038_v25, %v2689_v27  ;;  %v2676_v27 = vmul.f32 %v6051_v9, %v5964_v49 }
0x1230   : > { %v2691_v34 = vpop.permute.xlu0 %2690 }
0x1231   : > { %v2712_v18 = vmul.f32 %v6035_v8, %v2691_v34  ;;  %2728 = vrot.lane.b32.xlu1 %v2711_v42, %s5089_s17  ;;  %v2674_v34 = vmul.f32 %v6047_v2, %v5956_v22  ;;  %v2675_v42 = vmul.f32 %v6054_v61, %v5966_v43 }
0x1232   : > { %v2693_v23 = vpop.permute.xlu1 %2692 }
0x1233   : > { %2730 = vrot.lane.b32.xlu0 %v2712_v18, %s5089_s17  ;;  %v2713_v24 = vmul.f32 %v6043_v44, %v2693_v23  ;;  %v2677_v23 = vmul.f32 %v6059_v7, %v5972_v32 }
0x1234   : > { %v2695_v39 = vpop.permute.xlu0 %2694 }
0x1235   : > { %2732 = vrot.lane.b32.xlu1 %v2713_v24, %s5089_s17  ;;  %v2714_v54 = vmul.f32 %v6047_v2, %v2695_v39 }
0x1236   : > { %v2697_v10 = vpop.permute.xlu1 %2696 }
0x1237   : > { %2734 = vrot.lane.b32.xlu0 %v2714_v54, %s5089_s17  ;;  %v2715_v5 = vmul.f32 %v6054_v61, %v2697_v10 }
0x1238   : > { %v2699_v55 = vpop.permute.xlu0 %2698 }
0x1239   : > { %v2716_v63 = vmul.f32 %v6051_v9, %v2699_v55  ;;  %2736 = vrot.lane.b32.xlu1 %v2715_v5, %s5089_s17 }
0x123a   : > { %v2701_v12 = vpop.permute.xlu1 %2700 }
0x123b   : > { %2738 = vrot.lane.b32.xlu0 %v2716_v63, %s5089_s17  ;;  %v2717_v0 = vmul.f32 %v6059_v7, %v2701_v12 }
0x123d   : > { %2740 = vrot.lane.b32.xlu1 %v2717_v0, %s5089_s17 }
0x129c   : > { %v6139_v11 = vpop.f32.mrb[40].mxu1 }
0x129d   : > { %v6141_v58 = vpop.f32.mrb[41].mxu1 }
0x12a1   : > { %v2727_v28 = vpop.permute.xlu0 %2726 }
0x12a2   : > { %v6087_v59 = vadd.f32 %v2727_v28, %v2670_v26 }
0x12a3   : > { %v2729_v50 = vpop.permute.xlu1 %2728 }
0x12a4   : > { %4845 = vtanh.f32 %v6087_v59  ;;  %v6096_v35 = vadd.f32 %v2729_v50, %v2671_v36 }
0x12a5   : > { %v2731_v33 = vpop.permute.xlu0 %2730 }
0x12a6   : > { %v6094_v47 = vadd.f32 %v2731_v33, %v2672_v29 }
0x12a7   : > { %v2733_v3 = vpop.permute.xlu1 %2732 }
0x12a8   : > { %4847 = vtanh.f32 %v6094_v47  ;;  %v6102_v41 = vadd.f32 %v2733_v3, %v2673_v46 }
0x12a9   : > { %4849 = vtanh.f32 %v6096_v35  ;;  %v2735_v18 = vpop.permute.xlu0 %2734 }
0x12aa   : > { %4851 = vtanh.f32 %v6102_v41  ;;  %v6110_v15 = vadd.f32 %v2735_v18, %v2674_v34 }
0x12ab   : > { %v2737_v22 = vpop.permute.xlu1 %2736 }
0x12ac   : > { %4853 = vtanh.f32 %v6110_v15  ;;  %v6120_v19 = vadd.f32 %v2737_v22, %v2675_v42 }
0x12ad   : > { %v2739_v48 = vpop.permute.xlu0 %2738 }
0x12ae   : > { %v4846_v6 = vpop.eup %4845  ;;  %v6118_v4 = vadd.f32 %v2739_v48, %v2676_v27 }
0x12af   : > { %2774 = vrot.lane.b32.xlu0 %v4846_v6, %s5089_s17  ;;  %v2741_v24 = vpop.permute.xlu1 %2740 }
0x12b0   : > { %4855 = vtanh.f32 %v6118_v4  ;;  %v6126_v49 = vadd.f32 %v2741_v24, %v2677_v23 }
0x12b1   : > { %4857 = vtanh.f32 %v6120_v19 }
0x12b2   : > { %v4848_v60 = vpop.eup %4847  ;;  %4859 = vtanh.f32 %v6126_v49 }
0x12b3   : > { %2778 = vrot.lane.b32.xlu0 %v4848_v60, %s5089_s17  ;;  %v4850_v16 = vpop.eup %4849 }
0x12b4   : > { %2776 = vrot.lane.b32.xlu1 %v4850_v16, %s5089_s17  ;;  %v4852_v31 = vpop.eup %4851 }
0x12b6   : > { %v4854_v45 = vpop.eup %4853 }
0x12b7   : > { %2782 = vrot.lane.b32.xlu0 %v4854_v45, %s5089_s17 }
0x12b8   : > { %2780 = vrot.lane.b32.xlu1 %v4852_v31, %s5089_s17 }
0x12ba   : > { %v4856_v43 = vpop.eup %4855 }
0x12bb   : > { %2786 = vrot.lane.b32.xlu0 %v4856_v43, %s5089_s17  ;;  %v4858_v14 = vpop.eup %4857 }
0x12bc   : > { %2784 = vrot.lane.b32.xlu1 %v4858_v14, %s5089_s17  ;;  %v4860_v51 = vpop.eup %4859 }
0x12c0   : > { %2788 = vrot.lane.b32.xlu1 %v4860_v51, %s5089_s17 }
0x1321   : > { %v2775_v39 = vpop.permute.xlu0 %2774 }
0x1322   : > { %v2798_v32 = vmul.f32 %v6031_v13, %v2775_v39  ;;  %v6143_v13 = vpop.f32.mrb[42].mxu1 }
0x1325   : > { %v2779_v63 = vpop.permute.xlu0 %2778 }
0x1326   : > { %v2777_v54 = vpop.permute.xlu1 %2776  ;;  %v2800_v12 = vmul.f32 %v6035_v8, %v2779_v63 }
0x1327   : > { %v2799_v55 = vmul.f32 %v6038_v25, %v2777_v54  ;;  %v6145_v25 = vpop.f32.mrb[43].mxu1 }
0x1328   : > { %v6147_v30 = vpop.f32.mrb[44].mxu1 }
0x1329   : > { %v2806_v10 = vpack.c.bf16 %v2799_v55, %v2798_v32  ;;  %v2783_v1 = vpop.permute.xlu0 %2782  ;;  %v6151_v52 = vpop.f32.mrb[45].mxu1  ;;  %v818_v32 = vadd.f32 %v6013_v40, %v6139_v11  ;;  %v810_v55 = vadd.f32 %v6013_v40, %v6141_v58 }
0x132a   : > { %v2781_v5 = vpop.permute.xlu1 %2780  ;;  %v2802_v8 = vmul.f32 %v6047_v2, %v2783_v1  ;;  %v6153_v62 = vpop.f32.mrb[46].mxu1 }
0x132b   : > { %v2801_v0 = vmul.f32 %v6043_v44, %v2781_v5  ;;  %2814 = vrot.lane.b32.xlu0 %v2806_v10, %s5090_s25  ;;  %v6155_v37 = vpop.f32.mrb[47].mxu1  ;;  %v821_v10 = vadd.f32 %v6013_v40, %v6143_v13 }
0x132c   : > { %v4206_v20 = vpop.f32.mrb[48].mxu1 }
0x132d   : > { %v2807_v21 = vpack.c.bf16 %v2801_v0, %v2800_v12  ;;  %v2787_v17 = vpop.permute.xlu0 %2786  ;;  %v6163_v28 = vadd.f32 %v4206_v20, %v3920_v57  ;;  %v813_v0 = vadd.f32 %v6013_v40, %v6145_v25  ;;  %v834_v20 = vadd.f32 %v6013_v40, %v6147_v30 }
0x132e   : > { %v2785_v53 = vpop.permute.xlu1 %2784  ;;  %v2804_v26 = vmul.f32 %v6051_v9, %v2787_v17  ;;  %v829_v30 = vadd.f32 %v6013_v40, %v6155_v37 }
0x132f   : > { %2816 = vrot.lane.b32.xlu1 %v2807_v21, %s5090_s25  ;;  %v2803_v44 = vmul.f32 %v6054_v61, %v2785_v53  ;;  %v3156_v61 = vpop.f32.mrb[49].mxu1  ;;  %v3929_v13 = vmul.f32 -1.442695, %v6163_v28 }
0x1330   : > { %v3157_v29 = vadd.f32 %v3920_v57, %v3156_v61  ;;  %v4207_v33 = vpop.f32.mrb[50].mxu1  ;;  %v826_v61 = vadd.f32 %v6013_v40, %v6151_v52 }
0x1331   : > { %v2808_v56 = vpack.c.bf16 %v2803_v44, %v2802_v8  ;;  %v3159_v50 = vpop.f32.mrb[51].mxu1 }
0x1332   : > { %v2789_v38 = vpop.permute.xlu1 %2788  ;;  %4861 = vtanh.f32 %v3157_v29  ;;  %v4210_v46 = vpop.f32.mrb[52].mxu1  ;;  %v3160_v6 = vadd.f32 %v3920_v57, %v3159_v50  ;;  %v3927_v58 = vmul.f32 -1.442695, %v3157_v29  ;;  %v837_v29 = vadd.f32 %v6013_v40, %v6153_v62 }
0x1333   : > { %v2805_v2 = vmul.f32 %v6059_v7, %v2789_v38  ;;  %2818 = vrot.lane.b32.xlu0 %v2808_v56, %s5090_s25  ;;  %v3172_v3 = vpop.f32.mrb[53].mxu1  ;;  %4863 = vtanh.f32 %v6163_v28  ;;  %v3168_v7 = vadd.f32 %v4207_v33, %v3920_v57  ;;  %v3181_v34 = vadd.f32 %v4210_v46, %v3920_v57 }
0x1334   : > { %v4211_v9 = vpop.f32.mrb[54].mxu1  ;;  %4865 = vtanh.f32 %v3160_v6  ;;  %v3173_v16 = vadd.f32 %v3920_v57, %v3172_v3  ;;  %v3928_v44 = vmul.f32 -1.442695, %v3160_v6 }
0x1335   : > { %v2809_v36 = vpack.c.bf16 %v2805_v2, %v2804_v26  ;;  %v3175_v60 = vpop.f32.mrb[55].mxu1  ;;  %4867 = vtanh.f32 %v3168_v7  ;;  %v6168_v48 = vadd.f32 %v4211_v9, %v3920_v57  ;;  %v3930_v56 = vmul.f32 -1.442695, %v3168_v7 }
0x1336   : > { %4869 = vtanh.f32 %v3173_v16  ;;  %v3176_v27 = vadd.f32 %v3920_v57, %v3175_v60  ;;  %v3931_v17 = vmul.f32 -1.442695, %v3173_v16  ;;  %v3933_v26 = vmul.f32 -1.442695, %v3181_v34 }
0x1337   : > { %2820 = vrot.lane.b32.xlu1 %v2809_v36, %s5090_s25  ;;  %4871 = vtanh.f32 %v3181_v34  ;;  %v3934_v16 = vmul.f32 -1.442695, %v6168_v48 }
0x1338   : > { %4873 = vtanh.f32 %v3176_v27  ;;  %v3932_v33 = vmul.f32 -1.442695, %v3176_v27 }
0x1339   : > { %4875 = vtanh.f32 %v6168_v48 }
0x133c   : > { %v4862_v18 = vpop.eup %4861 }
0x133d   : > { %3259 = vrot.lane.b32.xlu0 %v4862_v18, %s5089_s17  ;;  %v4864_v31 = vpop.eup %4863 }
0x133e   : > { %v4866_v42 = vpop.eup %4865 }
0x133f   : > { %3261 = vrot.lane.b32.xlu1 %v4866_v42, %s5089_s17  ;;  %v4868_v22 = vpop.eup %4867 }
0x1340   : > { %v4870_v23 = vpop.eup %4869 }
0x1341   : > { %3263 = vrot.lane.b32.xlu0 %v4864_v31, %s5089_s17  ;;  %v4872_v24 = vpop.eup %4871 }
0x1342   : > { %v4874_v45 = vpop.eup %4873 }
0x1343   : > { %3265 = vrot.lane.b32.xlu1 %v4868_v22, %s5089_s17  ;;  %v4876_v43 = vpop.eup %4875 }
0x1345   : > { %3267 = vrot.lane.b32.xlu0 %v4870_v23, %s5089_s17 }
0x1347   : > { %3269 = vrot.lane.b32.xlu1 %v4874_v45, %s5089_s17 }
0x1349   : > { %3271 = vrot.lane.b32.xlu0 %v4872_v24, %s5089_s17 }
0x134b   : > { %3273 = vrot.lane.b32.xlu1 %v4876_v43, %s5089_s17 }
0x139d   : > { %v2815_v14 = vpop.permute.xlu0 %2814 }
0x139e   : > { %4192 = vmatprep.mubr.msk.bf16.mxu0 %vm454_vm0, %v2815_v14 }
0x13a1   : > { %v2817_v51 = vpop.permute.xlu1 %2816 }
0x13a2   : > { %4193 = vmatmul.mubr.msk.bf16.vlgmr.msra.gmra.mrb[56].mxu0 %vm454_vm0, %v2817_v51 }
0x13a5   : > { %v2819_v39 = vpop.permute.xlu0 %2818 }
0x13a6   : > { %4196 = vmatprep.mubr.msk.bf16.mxu0 %vm454_vm0, %v2819_v39 }
0x13a9   : > { %v2821_v54 = vpop.permute.xlu1 %2820 }
0x13aa   : > { %4197 = vmatmul.mubr.msk.bf16.gmra.mrb[60].mxu0 %vm454_vm0, %v2821_v54 }
0x13af   : > { %v3260_v42 = vpop.permute.xlu0 %3259 }
0x13b1   : > { %v3262_v39 = vpop.permute.xlu1 %3261 }
0x13b3   : > { %v3264_v54 = vpop.permute.xlu0 %3263 }
0x1475   : > { %v4194_v63 = vpop.f32.mrb[56].mxu0 }
0x1476   : > { %v6188_v5 = vadd.f32 %v4194_v63, %v818_v32  ;;  %v2868_v12 = vpop.f32.mrb[57].mxu0 }
0x1477   : > { %v6192_v21 = vadd.f32 %v2868_v12, %v810_v55  ;;  %v4195_v1 = vpop.f32.mrb[58].mxu0 }
0x1478   : > { %v6194_v53 = vadd.f32 %v4195_v1, %v821_v10  ;;  %v2871_v8 = vpop.f32.mrb[59].mxu0 }
0x1479   : > { %4877 = vtanh.f32 %v6192_v21  ;;  %v6197_v11 = vadd.f32 %v2871_v8, %v813_v0  ;;  %v3266_v8 = vpop.permute.xlu1 %3265 }
0x147a   : > { %4879 = vtanh.f32 %v6188_v5 }
0x147b   : > { %4881 = vpow2.f32 %v3927_v58  ;;  %v3268_v58 = vpop.permute.xlu0 %3267 }
0x147c   : > { %4883 = vtanh.f32 %v6197_v11 }
0x147d   : > { %4885 = vtanh.f32 %v6194_v53  ;;  %v4198_v28 = vpop.f32.mrb[60].mxu0 }
0x147e   : > { %4887 = vpow2.f32 %v3929_v13  ;;  %v6211_v36 = vadd.f32 %v4198_v28, %v834_v20  ;;  %v2884_v50 = vpop.f32.mrb[61].mxu0 }
0x147f   : > { %4889 = vpow2.f32 %v3928_v44  ;;  %v6216_v46 = vadd.f32 %v2884_v50, %v826_v61  ;;  %v4199_v3 = vpop.f32.mrb[62].mxu0  ;;  %v3272_v20 = vpop.permute.xlu0 %3271 }
0x1480   : > { %4891 = vpow2.f32 %v3931_v17  ;;  %v6218_v52 = vadd.f32 %v4199_v3, %v837_v29  ;;  %v2887_v9 = vpop.f32.mrb[63].mxu0  ;;  %v3914_v3 = vmul.f32 -1.442695, %v6188_v5  ;;  %v3918_v5 = vmul.f32 -1.442695, %v6211_v36 }
0x1481   : > { %4893 = vpow2.f32 %v3930_v56  ;;  %v6221_v62 = vadd.f32 %v2887_v9, %v829_v30  ;;  %v3912_v30 = vmul.f32 -1.442695, %v6192_v21  ;;  %v3915_v9 = vmul.f32 -1.442695, %v6194_v53 }
0x1482   : > { %4895 = vpow2.f32 %v3933_v26  ;;  %v3919_v53 = vmul.f32 -1.442695, %v6218_v52 }
0x1483   : > { %v4878_v25 = vpop.eup %4877  ;;  %4897 = vtanh.f32 %v6216_v46 }
0x1484   : > { %2979 = vrot.lane.b32.xlu0 %v4878_v25, %s5089_s17  ;;  %v4880_v57 = vpop.eup %4879  ;;  %4899 = vpow2.f32 %v3932_v33 }
0x1485   : > { %v4882_v38 = vpop.eup %4881 }
0x1486   : > { %v4884_v2 = vpop.eup %4883  ;;  %v3211_v6 = vadd.f32 1.0, %v4882_v38  ;;  %v3270_v38 = vpop.permute.xlu1 %3269 }
0x1487   : > { %2981 = vrot.lane.b32.xlu1 %v4884_v2, %s5089_s17  ;;  %v4886_v60 = vpop.eup %4885 }
0x1488   : > { %2983 = vrot.lane.b32.xlu0 %v4880_v57, %s5089_s17  ;;  %v4888_v7 = vpop.eup %4887  ;;  %4901 = vrcp.f32 %v3211_v6  ;;  %v3913_v6 = vmul.f32 -1.442695, %v6197_v11  ;;  %v3917_v11 = vmul.f32 -1.442695, %v6221_v62 }
0x1489   : > { %v4890_v40 = vpop.eup %4889  ;;  %v3213_v37 = vadd.f32 1.0, %v4888_v7  ;;  %4903 = vtanh.f32 %v6211_v36 }
0x148a   : > { %v4892_v34 = vpop.eup %4891  ;;  %v3212_v18 = vadd.f32 1.0, %v4890_v40  ;;  %4905 = vpow2.f32 %v3934_v16  ;;  %v3274_v33 = vpop.permute.xlu1 %3273 }
0x148b   : > { %2985 = vrot.lane.b32.xlu1 %v4886_v60, %s5089_s17  ;;  %4907 = vtanh.f32 %v6221_v62  ;;  %v4894_v31 = vpop.eup %4893  ;;  %v3215_v27 = vadd.f32 1.0, %v4892_v34 }
0x148c   : > { %4909 = vrcp.f32 %v3213_v37  ;;  %v4896_v22 = vpop.eup %4895  ;;  %v3214_v23 = vadd.f32 1.0, %v4894_v31  ;;  %v3916_v37 = vmul.f32 -1.442695, %v6216_v46 }
0x148d   : > { %4911 = vrcp.f32 %v3212_v18  ;;  %v4898_v48 = vpop.eup %4897  ;;  %v3217_v45 = vadd.f32 1.0, %v4896_v22 }
0x148e   : > { %4913 = vtanh.f32 %v6218_v52  ;;  %v4900_v24 = vpop.eup %4899  ;;  %2987 = vrot.lane.b32.xlu0 %v4898_v48, %s5089_s17 }
0x148f   : > { %4915 = vrcp.f32 %v3215_v27  ;;  %v3216_v51 = vadd.f32 1.0, %v4900_v24 }
0x1490   : > { %4917 = vrcp.f32 %v3214_v23 }
0x1491   : > { %4919 = vrcp.f32 %v3217_v45 }
0x1492   : > { %v6229_v43 = vpop.eup %4901  ;;  %4921 = vrcp.f32 %v3216_v51 }
0x1493   : > { %v4904_v14 = vpop.eup %4903  ;;  %v3283_v63 = vmul.f32 %v6229_v43, %v3260_v42 }
0x1494   : > { %v4906_v32 = vpop.eup %4905  ;;  %2991 = vrot.lane.b32.xlu0 %v4904_v14, %s5089_s17 }
0x1495   : > { %v4908_v55 = vpop.eup %4907  ;;  %v3218_v12 = vadd.f32 1.0, %v4906_v32 }
0x1496   : > { %2989 = vrot.lane.b32.xlu1 %v4908_v55, %s5089_s17  ;;  %v6234_v10 = vpop.eup %4909 }
0x1497   : > { %v6236_v0 = vpop.eup %4911  ;;  %v3285_v13 = vmul.f32 %v6234_v10, %v3264_v54  ;;  %4923 = vrcp.f32 %v3218_v12 }
0x1498   : > { %3299 = vrot.lane.b32.xlu0 %v3283_v63, %s5089_s17  ;;  %v4914_v1 = vpop.eup %4913  ;;  %v3284_v25 = vmul.f32 %v6236_v0, %v3262_v39  ;;  %4925 = vpow2.f32 %v3912_v30 }
0x1499   : > { %v6241_v44 = vpop.eup %4915  ;;  %4927 = vpow2.f32 %v3914_v3 }
0x149a   : > { %2993 = vrot.lane.b32.xlu1 %v4914_v1, %s5089_s17  ;;  %v6245_v17 = vpop.eup %4917  ;;  %v3287_v56 = vmul.f32 %v6241_v44, %v3268_v58  ;;  %4929 = vpow2.f32 %v3913_v6 }
0x149b   : > { %v6249_v57 = vpop.eup %4919  ;;  %v3286_v26 = vmul.f32 %v6245_v17, %v3266_v8  ;;  %4931 = vpow2.f32 %v3915_v9  ;;  %v3245_v9 = vmul.f32 0.0, %v6234_v10 }
0x149c   : > { %3303 = vrot.lane.b32.xlu0 %v3285_v13, %s5089_s17  ;;  %v6253_v2 = vpop.eup %4921  ;;  %v3289_v61 = vmul.f32 %v6249_v57, %v3272_v20 }
0x149d   : > { %v3288_v28 = vmul.f32 %v6253_v2, %v3270_v38 }
0x149e   : > { %3301 = vrot.lane.b32.xlu1 %v3284_v25, %s5089_s17 }
0x14a0   : > { %3307 = vrot.lane.b32.xlu0 %v3287_v56, %s5089_s17 }
0x14a1   : > { %v6259_v29 = vpop.eup %4923 }
0x14a2   : > { %3305 = vrot.lane.b32.xlu1 %v3286_v26, %s5089_s17  ;;  %v3290_v50 = vmul.f32 %v6259_v29, %v3274_v33  ;;  %v4926_v60 = vpop.eup %4925 }
0x14a3   : > { %v2931_v7 = vadd.f32 1.0, %v4926_v60  ;;  %v4928_v16 = vpop.eup %4927 }
0x14a4   : > { %3311 = vrot.lane.b32.xlu0 %v3289_v61, %s5089_s17  ;;  %v4930_v40 = vpop.eup %4929  ;;  %v2933_v34 = vadd.f32 1.0, %v4928_v16 }
0x14a5   : > { %4933 = vrcp.f32 %v2931_v7  ;;  %v2932_v18 = vadd.f32 1.0, %v4930_v40  ;;  %v4932_v21 = vpop.eup %4931  ;;  %v3244_v7 = vmul.f32 0.0, %v6236_v0 }
0x14a6   : > { %3309 = vrot.lane.b32.xlu1 %v3288_v28, %s5089_s17  ;;  %4935 = vpow2.f32 %v3916_v37  ;;  %v2934_v31 = vadd.f32 1.0, %v4932_v21  ;;  %v3243_v28 = vmul.f32 0.0, %v6229_v43  ;;  %v3246_v21 = vmul.f32 0.0, %v6245_v17 }
0x14a7   : > { %4937 = vrcp.f32 %v2933_v34  ;;  %v3247_v34 = vmul.f32 0.0, %v6241_v44 }
0x14a8   : > { %4939 = vrcp.f32 %v2932_v18 }
0x14a9   : > { %4941 = vpow2.f32 %v3918_v5 }
0x14aa   : > { %3313 = vrot.lane.b32.xlu1 %v3290_v50, %s5089_s17  ;;  %4943 = vpow2.f32 %v3917_v11 }
0x14ab   : > { %4945 = vrcp.f32 %v2934_v31 }
0x14ac   : > { %4947 = vpow2.f32 %v3919_v53  ;;  %v3249_v53 = vmul.f32 0.0, %v6249_v57 }
0x14af   : > { %v6272_v27 = vpop.eup %4933 }
0x14b0   : > { %v4936_v22 = vpop.eup %4935 }
0x14b1   : > { %v6276_v36 = vpop.eup %4937  ;;  %v2935_v24 = vadd.f32 1.0, %v4936_v22  ;;  %v3248_v22 = vmul.f32 0.0, %v6253_v2 }
0x14b2   : > { %v6279_v23 = vpop.eup %4939 }
0x14b3   : > { %v4942_v45 = vpop.eup %4941  ;;  %4949 = vrcp.f32 %v2935_v24 }
0x14b4   : > { %v4944_v51 = vpop.eup %4943  ;;  %v2937_v54 = vadd.f32 1.0, %v4942_v45  ;;  %v3250_v45 = vmul.f32 0.0, %v6259_v29 }
0x14b5   : > { %v6284_v39 = vpop.eup %4945  ;;  %v2936_v63 = vadd.f32 1.0, %v4944_v51 }
0x14b6   : > { %v4948_v12 = vpop.eup %4947  ;;  %4951 = vrcp.f32 %v2937_v54 }
0x14b7   : > { %v2938_v1 = vadd.f32 1.0, %v4948_v12  ;;  %4953 = vrcp.f32 %v2936_v63 }
0x14b9   : > { %4955 = vrcp.f32 %v2938_v1 }
0x14bd   : > { %v6288_v8 = vpop.eup %4949 }
0x14c0   : > { %v6292_v25 = vpop.eup %4951 }
0x14c1   : > { %v6295_v20 = vpop.eup %4953 }
0x14c3   : > { %v6301_v30 = vpop.eup %4955 }
0x14f6   : > { %v2980_v46 = vpop.permute.xlu0 %2979 }
0x14f7   : > { %v3003_v42 = vmul.f32 %v6272_v27, %v2980_v46 }
0x14f9   : > { %3019 = vrot.lane.b32.xlu0 %v3003_v42, %s5089_s17  ;;  %v2982_v52 = vpop.permute.xlu1 %2981 }
0x14fa   : > { %v2984_v48 = vpop.permute.xlu0 %2983  ;;  %v3004_v14 = vmul.f32 %v6279_v23, %v2982_v52 }
0x14fb   : > { %v3005_v62 = vmul.f32 %v6276_v36, %v2984_v48 }
0x14fc   : > { %3021 = vrot.lane.b32.xlu1 %v3004_v14, %s5089_s17 }
0x14fd   : > { %3023 = vrot.lane.b32.xlu0 %v3005_v62, %s5089_s17  ;;  %v2986_v32 = vpop.permute.xlu1 %2985 }
0x14fe   : > { %v3006_v55 = vmul.f32 %v6284_v39, %v2986_v32 }
0x1500   : > { %3025 = vrot.lane.b32.xlu1 %v3006_v55, %s5089_s17  ;;  %v2988_v58 = vpop.permute.xlu0 %2987 }
0x1501   : > { %v3007_v13 = vmul.f32 %v6288_v8, %v2988_v58  ;;  %v2963_v58 = vmul.f32 %v6272_v27, %v6087_v59 }
0x1503   : > { %3027 = vrot.lane.b32.xlu0 %v3007_v13, %s5089_s17 }
0x1506   : > { %v2992_v56 = vpop.permute.xlu0 %2991 }
0x1507   : > { %v3009_v38 = vmul.f32 %v6292_v25, %v2992_v56 }
0x1508   : > { %v2990_v26 = vpop.permute.xlu1 %2989 }
0x1509   : > { %v3008_v61 = vmul.f32 %v6295_v20, %v2990_v26  ;;  %3031 = vrot.lane.b32.xlu0 %v3009_v38, %s5089_s17  ;;  %v2965_v38 = vmul.f32 %v6276_v36, %v6094_v47 }
0x150a   : > { %v3300_v33 = vpop.permute.xlu0 %3299 }
0x150b   : > { %3029 = vrot.lane.b32.xlu1 %v3008_v61, %s5089_s17  ;;  %v3323_v50 = vadd.f32 %v3300_v33, %v3243_v28  ;;  %v2964_v61 = vmul.f32 %v6279_v23, %v6096_v35  ;;  %v2967_v35 = vmul.f32 %v6288_v8, %v6110_v15  ;;  %v2970_v15 = vmul.f32 %v6301_v30, %v6126_v49 }
0x150c   : > { %v2994_v3 = vpop.permute.xlu1 %2993 }
0x150d   : > { %v3010_v6 = vmul.f32 %v6301_v30, %v2994_v3  ;;  %4957 = vtanh.f32 %v3323_v50  ;;  %v2966_v3 = vmul.f32 %v6284_v39, %v6102_v41  ;;  %v2969_v41 = vmul.f32 %v6292_v25, %v6118_v4  ;;  %v4409_v4 = vld [vmem:[%s6531_s7] sm:$0xff]  }
0x150e   : > { %v3304_v60 = vpop.permute.xlu0 %3303  ;;  %4212 = vmatprep.subr.bf16.mxu1 %v4409_v4 }
0x150f   : > { %3033 = vrot.lane.b32.xlu1 %v3010_v6, %s5089_s17  ;;  %v3325_v16 = vadd.f32 %v3304_v60, %v3245_v9  ;;  %4213 = vmatpush3.bf16.msra.mxu1 %v4409_v4 }
0x1510   : > { %v3302_v40 = vpop.permute.xlu1 %3301 }
0x1511   : > { %v3324_v37 = vadd.f32 %v3302_v40, %v3244_v7  ;;  %4959 = vtanh.f32 %v3325_v16 }
0x1512   : > { %v3308_v18 = vpop.permute.xlu0 %3307 }
0x1513   : > { %4961 = vtanh.f32 %v3324_v37  ;;  %v3327_v5 = vadd.f32 %v3308_v18, %v3247_v34  ;;  %v2968_v34 = vmul.f32 %v6295_v20, %v6120_v19  ;;  %v4410_v19 = vld [vmem:[%s6531_s7 + $0x8] sm:$0xff]  }
0x1514   : > { %v3306_v11 = vpop.permute.xlu1 %3305  ;;  %4214 = vmatprep.subr.bf16.mxu1 %v4410_v19 }
0x1515   : > { %v3326_v31 = vadd.f32 %v3306_v11, %v3246_v21  ;;  %4963 = vtanh.f32 %v3327_v5  ;;  %4215 = vmatpush3.bf16.msra.mxu1 %v4410_v19 }
0x1516   : > { %v3312_v46 = vpop.permute.xlu0 %3311 }
0x1517   : > { %v4958_v42 = vpop.eup %4957  ;;  %4965 = vtanh.f32 %v3326_v31  ;;  %v3329_v48 = vadd.f32 %v3312_v46, %v3249_v53 }
0x1518   : > { %v3310_v62 = vpop.permute.xlu1 %3309  ;;  %3347 = vrot.lane.b32.xlu0 %v4958_v42, %s5089_s17 }
0x1519   : > { %v3328_v24 = vadd.f32 %v3310_v62, %v3248_v22  ;;  %4967 = vtanh.f32 %v3329_v48 }
0x151b   : > { %v4960_v52 = vpop.eup %4959  ;;  %4969 = vtanh.f32 %v3328_v24 }
0x151c   : > { %v3314_v14 = vpop.permute.xlu1 %3313  ;;  %3351 = vrot.lane.b32.xlu0 %v4960_v52, %s5089_s17 }
0x151d   : > { %v4962_v51 = vpop.eup %4961  ;;  %v3330_v54 = vadd.f32 %v3314_v14, %v3250_v45 }
0x151e   : > { %3349 = vrot.lane.b32.xlu1 %v4962_v51, %s5089_s17 }
0x151f   : > { %v4964_v32 = vpop.eup %4963  ;;  %4971 = vtanh.f32 %v3330_v54  ;;  %v4411_v54 = vld [vmem:[%s6530_s6] sm:$0xff]  }
0x1520   : > { %3355 = vrot.lane.b32.xlu0 %v4964_v32, %s5089_s17  ;;  %4224 = vmatprep.subr.bf16.mxu1 %v4411_v54 }
0x1521   : > { %v4966_v55 = vpop.eup %4965 }
0x1522   : > { %3353 = vrot.lane.b32.xlu1 %v4966_v55, %s5089_s17 }
0x1523   : > { %v4968_v63 = vpop.eup %4967 }
0x1524   : > { %3359 = vrot.lane.b32.xlu0 %v4968_v63, %s5089_s17 }
0x1525   : > { %v4970_v12 = vpop.eup %4969 }
0x1526   : > { %3357 = vrot.lane.b32.xlu1 %v4970_v12, %s5089_s17 }
0x1529   : > { %v4972_v1 = vpop.eup %4971 }
0x152a   : > { %3361 = vrot.lane.b32.xlu1 %v4972_v1, %s5089_s17 }
0x156b   : > { %v3020_v13 = vpop.permute.xlu0 %3019 }
0x156c   : > { %v3043_v56 = vadd.f32 %v3020_v13, %v2963_v58 }
0x156e   : > { %4973 = vtanh.f32 %v3043_v56  ;;  %v3022_v33 = vpop.permute.xlu1 %3021 }
0x156f   : > { %v3024_v26 = vpop.permute.xlu0 %3023  ;;  %v3044_v50 = vadd.f32 %v3022_v33, %v2964_v61 }
0x1570   : > { %v3045_v28 = vadd.f32 %v3024_v26, %v2965_v38 }
0x1572   : > { %4975 = vtanh.f32 %v3045_v28  ;;  %v3026_v6 = vpop.permute.xlu1 %3025 }
0x1573   : > { %4977 = vtanh.f32 %v3044_v50  ;;  %v3046_v59 = vadd.f32 %v3026_v6, %v2966_v3 }
0x1575   : > { %4979 = vtanh.f32 %v3046_v59  ;;  %v3028_v7 = vpop.permute.xlu0 %3027 }
0x1576   : > { %v3047_v16 = vadd.f32 %v3028_v7, %v2967_v35 }
0x1578   : > { %v4974_v9 = vpop.eup %4973  ;;  %4981 = vtanh.f32 %v3047_v16 }
0x1579   : > { %3067 = vrot.lane.b32.xlu0 %v4974_v9, %s5089_s17 }
0x157b   : > { %v3032_v37 = vpop.permute.xlu0 %3031 }
0x157c   : > { %v4976_v60 = vpop.eup %4975  ;;  %v3049_v18 = vadd.f32 %v3032_v37, %v2969_v41  ;;  %v3947_v37 = vld [vmem:[%s6532_s8] ss:$0 sm:$0xff] }
0x157d   : > { %3071 = vrot.lane.b32.xlu0 %v4976_v60, %s5089_s17  ;;  %v4978_v47 = vpop.eup %4977  ;;  %v3030_v21 = vpop.permute.xlu1 %3029 }
0x157e   : > { %3069 = vrot.lane.b32.xlu1 %v4978_v47, %s5089_s17  ;;  %v3048_v5 = vadd.f32 %v3030_v21, %v2968_v34  ;;  %4983 = vtanh.f32 %v3049_v18 }
0x157f   : > { %v4980_v40 = vpop.eup %4979 }
0x1580   : > { %4985 = vtanh.f32 %v3048_v5 }
0x1581   : > { %v3034_v11 = vpop.permute.xlu1 %3033 }
0x1582   : > { %3073 = vrot.lane.b32.xlu1 %v4980_v40, %s5089_s17  ;;  %v3050_v31 = vadd.f32 %v3034_v11, %v2970_v15  ;;  %v4982_v53 = vpop.eup %4981 }
0x1583   : > { %3075 = vrot.lane.b32.xlu0 %v4982_v53, %s5089_s17 }
0x1584   : > { %4987 = vtanh.f32 %v3050_v31 }
0x1588   : > { %v4984_v46 = vpop.eup %4983 }
0x1589   : > { %3079 = vrot.lane.b32.xlu0 %v4984_v46, %s5089_s17 }
0x158a   : > { %v4986_v49 = vpop.eup %4985  ;;  %v3348_v42 = vpop.permute.xlu0 %3347 }
0x158b   : > { %3077 = vrot.lane.b32.xlu1 %v4986_v49, %s5089_s17  ;;  %v3371_v24 = vmul.f32 %v6229_v43, %v3348_v42 }
0x158e   : > { %v4988_v22 = vpop.eup %4987  ;;  %v3352_v48 = vpop.permute.xlu0 %3351 }
0x158f   : > { %3081 = vrot.lane.b32.xlu1 %v4988_v22, %s5089_s17  ;;  %v3373_v32 = vmul.f32 %v6234_v10, %v3352_v48  ;;  %s5025_s17 = scalar_lea.vmem %s6476_s22, 1024 }
0x1590   : > { %v3350_v62 = vpop.permute.xlu1 %3349  ;;  %p5026_p11 = scmp.ne.s32.totalorder %s6476_s22, %s5025_s17 }
0x1591   : > { %v3372_v52 = vmul.f32 %v6236_v0, %v3350_v62 }
0x1592   : > { %v3356_v51 = vpop.permute.xlu0 %3355  ;;  %p5027_p12 = pnand %p5026_p11, %p5182_p5 }
0x1593   : > { %v3387_v45 = vpack.c.bf16 %v3372_v52, %v3371_v24  ;;  %v3375_v43 = vmul.f32 %v6241_v44, %v3356_v51 }
0x1594   : > { %v3354_v14 = vpop.permute.xlu1 %3353  ;;  %p5028_p13 = pneg %p5027_p12 }
0x1595   : > { %v3374_v55 = vmul.f32 %v6245_v17, %v3354_v14  ;;  %3399 = vrot.lane.b32.xlu0 %v3387_v45, %s5090_s25 }
0x1596   : > { %v3360_v1 = vpop.permute.xlu0 %3359 }
0x1597   : > { %v3388_v63 = vpack.c.bf16 %v3374_v55, %v3373_v32  ;;  %v3377_v56 = vmul.f32 %v6249_v57, %v3360_v1 }
0x1598   : > { %v3358_v12 = vpop.permute.xlu1 %3357 }
0x1599   : > { %v3376_v0 = vmul.f32 %v6253_v2, %v3358_v12  ;;  %3401 = vrot.lane.b32.xlu1 %v3388_v63, %s5090_s25 }
0x159b   : > { %v3389_v58 = vpack.c.bf16 %v3376_v0, %v3375_v43 }
0x159c   : > { %v3362_v13 = vpop.permute.xlu1 %3361 }
0x159d   : > { %v3378_v10 = vmul.f32 %v6259_v29, %v3362_v13  ;;  %3403 = vrot.lane.b32.xlu0 %v3389_v58, %s5090_s25 }
0x159f   : > { %v3390_v17 = vpack.c.bf16 %v3378_v10, %v3377_v56 }
0x15a1   : > { %3405 = vrot.lane.b32.xlu1 %v3390_v17, %s5090_s25 }
0x15eb   : > { %v3068_v38 = vpop.permute.xlu0 %3067 }
0x15ec   : > { %v3091_v44 = vmul.f32 %v6272_v27, %v3068_v38 }
0x15ef   : > { %v3072_v61 = vpop.permute.xlu0 %3071 }
0x15f0   : > { %v3070_v26 = vpop.permute.xlu1 %3069  ;;  %v3093_v50 = vmul.f32 %v6276_v36, %v3072_v61 }
0x15f1   : > { %v3092_v2 = vmul.f32 %v6279_v23, %v3070_v26 }
0x15f3   : > { %v3379_v28 = vpack.c.bf16 %v3092_v2, %v3091_v44 }
0x15f4   : > { %v3074_v33 = vpop.permute.xlu1 %3073 }
0x15f5   : > { %v3094_v57 = vmul.f32 %v6284_v39, %v3074_v33  ;;  %3500 = vrot.lane.b32.xlu0 %v3379_v28, %s5090_s25  ;;  %v3076_v3 = vpop.permute.xlu0 %3075 }
0x15f6   : > { %v3095_v59 = vmul.f32 %v6288_v8, %v3076_v3  ;;  %v4412_v8 = vld [vmem:[%s6530_s6 + $0x8] sm:$0xff]  }
0x15f7   : > { %v3380_v29 = vpack.c.bf16 %v3094_v57, %v3093_v50 }
0x15f9   : > { %3502 = vrot.lane.b32.xlu1 %v3380_v29, %s5090_s25 }
0x15fb   : > { %v3080_v9 = vpop.permute.xlu0 %3079 }
0x15fc   : > { %v3097_v47 = vmul.f32 %v6292_v25, %v3080_v9 }
0x15fd   : > { %v3078_v6 = vpop.permute.xlu1 %3077 }
0x15fe   : > { %v3096_v27 = vmul.f32 %v6295_v20, %v3078_v6 }
0x1600   : > { %v3381_v23 = vpack.c.bf16 %v3096_v27, %v3095_v59 }
0x1601   : > { %v3082_v60 = vpop.permute.xlu1 %3081 }
0x1602   : > { %v3098_v36 = vmul.f32 %v6301_v30, %v3082_v60  ;;  %3504 = vrot.lane.b32.xlu0 %v3381_v23, %s5090_s25 }
0x1604   : > { %v3382_v39 = vpack.c.bf16 %v3098_v36, %v3097_v47 }
0x1606   : > { %3506 = vrot.lane.b32.xlu1 %v3382_v39, %s5090_s25  ;;  %s5029_s25 = sshll.u32 %s5091_s27, 4  ;;  %s5030_s25 = int_to_ptr.vmem [resolvable:$false] %s5029_s25 }
0x1607   : > { %v3400_v35 = vpop.permute.xlu0 %3399  ;;  %s5031_s28 = scalar_lea.vmem %s5030_s25, 2048  ;;  %p5032_p0 = scmp.lt.s32.totalorder %s6476_s22, %s5030_s25 }
0x1608   : > { %4216 = vmatprep.mubr.msk.bf16.mxu1 %vm454_vm0, %v3400_v35  ;;  %p5033_p1 = scmp.lt.s32.totalorder %s5031_s28, %s5025_s17 }
0x160a   : > { %p5034_p2 = por %p5033_p1, %p5032_p0 }
0x160b   : > { %v3402_v20 = vpop.permute.xlu1 %3401 }
0x160c   : > { %4217 = vmatmul.mubr.msk.bf16.vlgmr.msra.gmra.mrb[56].mxu1 %vm454_vm0, %v3402_v20  ;;  %p5035_p3 = pnand %p5034_p2, %p5028_p13 }
0x160d   : > { %4225 = vmatpush3.bf16.msra.mxu1 %v4411_v54 }
0x160e   : > { %4226 = vmatprep.subr.bf16.mxu1 %v4412_v8 }
0x160f   : > { %v3404_v25 = vpop.permute.xlu0 %3403 }
0x1610   : > { %4220 = vmatprep.mubr.msk.bf16.mxu1 %vm454_vm0, %v3404_v25 }
0x1611   : > { %4227 = vmatpush3.bf16.msra.mxu1 %v4412_v8 }
0x1613   : > { %v3406_v30 = vpop.permute.xlu1 %3405 }
0x1614   : > { %4221 = vmatmul.mubr.msk.bf16.gmra.mrb[60].mxu1 %vm454_vm0, %v3406_v30 }
0x1667   : > { %v3501_v7 = vpop.permute.xlu0 %3500 }
0x1668   : > { %4228 = vmatprep.mubr.msk.bf16.mxu1 %vm454_vm0, %v3501_v7 }
0x166b   : > { %v3503_v16 = vpop.permute.xlu1 %3502 }
0x166c   : > { %4229 = vmatmul.mubr.msk.bf16.vlgmr.msra.gmra.mrb[56].mxu1 %vm454_vm0, %v3503_v16 }
0x1674   : > { %v3505_v40 = vpop.permute.xlu0 %3504 }
0x1675   : > { %4232 = vmatprep.mubr.msk.bf16.mxu1 %vm454_vm0, %v3505_v40 }
0x1678   : > { %v3507_v41 = vpop.permute.xlu1 %3506 }
0x1679   : > { %4233 = vmatmul.mubr.msk.bf16.gmra.mrb[60].mxu1 %vm454_vm0, %v3507_v41 }
0x173f   : > { %v4230_v34 = vpop.f32.mrb[56].mxu1 }
0x1740   : > { %v6391_v18 = vadd.f32 %v4230_v34, %v3947_v37  ;;  %v3566_v21 = vpop.f32.mrb[57].mxu1 }
0x1741   : > { %v4231_v5 = vpop.f32.mrb[58].mxu1  ;;  %v6396_v31 = vadd.f32 %v3947_v37, %v3566_v21 }
0x1742   : > { %3616 = vmax.xlane.f32.xlu0 %v6391_v18  ;;  %v3569_v15 = vpop.f32.mrb[59].mxu1  ;;  %v6400_v4 = vadd.f32 %v4231_v5, %v3947_v37 }
0x1743   : > { %v6394_v11 = vadd.f32 %v3947_v37, %v3569_v15 }
0x1745   : > { %3614 = vmax.xlane.f32.xlu1 %v6394_v11 }
0x1746   : > { %3612 = vmax.xlane.f32.xlu0 %v6396_v31 }
0x174a   : > { %3618 = vmax.xlane.f32.xlu0 %v6400_v4 }
0x174c   : > { %v4234_v53 = vpop.f32.mrb[60].mxu1 }
0x174d   : > { %v3582_v19 = vpop.f32.mrb[61].mxu1  ;;  %v6408_v48 = vadd.f32 %v4234_v53, %v3947_v37 }
0x174e   : > { %v6403_v46 = vadd.f32 %v3947_v37, %v3582_v19  ;;  %v4235_v49 = vpop.f32.mrb[62].mxu1 }
0x174f   : > { %v3585_v42 = vpop.f32.mrb[63].mxu1  ;;  %v6411_v62 = vadd.f32 %v4235_v49, %v3947_v37 }
0x1750   : > { %v6405_v22 = vadd.f32 %v3947_v37, %v3585_v42  ;;  %3620 = vmax.xlane.f32.xlu1 %v6403_v46 }
0x1752   : > { %3622 = vmax.xlane.f32.xlu0 %v6405_v22 }
0x1754   : > { %3624 = vmax.xlane.f32.xlu1 %v6408_v48 }
0x1756   : > { %3626 = vmax.xlane.f32.xlu0 %v6411_v62 }
0x17cf   : > { %v3617_v24 = vpop.xlane.xlu0 %3616 }
0x17d0   : > { %v3630_v52 = vsub.f32 %v6391_v18, %v3617_v24 }
0x17d2   : > { %v3640_v45 = vmul.f32 1.442695, %v3630_v52  ;;  %v6420_v54 = vpop.xlane.xlu1 %3614 }
0x17d3   : > { %v6416_v14 = vpop.xlane.xlu0 %3612  ;;  %v3629_v63 = vsub.f32 %v6394_v11, %v6420_v54 }
0x17d4   : > { %4989 = vpow2.f32 %v3640_v45  ;;  %v3628_v51 = vsub.f32 %v6396_v31, %v6416_v14 }
0x17d5   : > { %v3638_v0 = vmul.f32 1.442695, %v3629_v63 }
0x17d6   : > { %v3636_v32 = vmul.f32 1.442695, %v3628_v51 }
0x17d7   : > { %v6422_v55 = vpop.xlane.xlu0 %3618 }
0x17d8   : > { %4991 = vpow2.f32 %v3636_v32  ;;  %v3631_v12 = vsub.f32 %v6400_v4, %v6422_v55 }
0x17da   : > { %v3642_v43 = vmul.f32 1.442695, %v3631_v12 }
0x17dc   : > { %4993 = vpow2.f32 %v3642_v43 }
0x17dd   : > { %4995 = vpow2.f32 %v3638_v0  ;;  %v6428_v13 = vpop.xlane.xlu1 %3620 }
0x17de   : > { %v4990_v1 = vpop.eup %4989  ;;  %v3632_v56 = vsub.f32 %v6403_v46, %v6428_v13 }
0x17df   : > { %3656 = vadd.xlane.f32.xlu1 %v4990_v1  ;;  %v6432_v17 = vpop.xlane.xlu0 %3622 }
0x17e0   : > { %v3644_v38 = vmul.f32 1.442695, %v3632_v56  ;;  %v3633_v26 = vsub.f32 %v6405_v22, %v6432_v17 }
0x17e1   : > { %v6436_v44 = vpop.xlane.xlu1 %3624 }
0x17e2   : > { %v4992_v58 = vpop.eup %4991  ;;  %4997 = vpow2.f32 %v3644_v38  ;;  %v3646_v2 = vmul.f32 1.442695, %v3633_v26  ;;  %v3634_v61 = vsub.f32 %v6408_v48, %v6436_v44 }
0x17e3   : > { %3652 = vadd.xlane.f32.xlu1 %v4992_v58  ;;  %v6440_v33 = vpop.xlane.xlu0 %3626 }
0x17e4   : > { %4999 = vpow2.f32 %v3646_v2  ;;  %v3648_v50 = vmul.f32 1.442695, %v3634_v61  ;;  %v3635_v57 = vsub.f32 %v6411_v62, %v6440_v33 }
0x17e6   : > { %v4994_v10 = vpop.eup %4993  ;;  %5001 = vpow2.f32 %v3648_v50  ;;  %v3650_v29 = vmul.f32 1.442695, %v3635_v57 }
0x17e7   : > { %3658 = vadd.xlane.f32.xlu0 %v4994_v10  ;;  %v4996_v28 = vpop.eup %4995 }
0x17e8   : > { %5003 = vpow2.f32 %v3650_v29 }
0x17eb   : > { %3654 = vadd.xlane.f32.xlu0 %v4996_v28 }
0x17ec   : > { %v4998_v3 = vpop.eup %4997 }
0x17ed   : > { %3660 = vadd.xlane.f32.xlu1 %v4998_v3 }
0x17ee   : > { %v5000_v6 = vpop.eup %4999 }
0x17ef   : > { %3662 = vadd.xlane.f32.xlu0 %v5000_v6 }
0x17f0   : > { %v5002_v59 = vpop.eup %5001 }
0x17f1   : > { %3664 = vadd.xlane.f32.xlu1 %v5002_v59 }
0x17f2   : > { %v5004_v27 = vpop.eup %5003 }
0x17f3   : > { %3666 = vadd.xlane.f32.xlu0 %v5004_v27 }
0x186c   : > { %v3657_v9 = vpop.xlane.xlu1 %3656 }
0x186d   : > { %5005 = vlog2.f32 %v3657_v9 }
0x1870   : > { %v3653_v23 = vpop.xlane.xlu1 %3652 }
0x1871   : > { %5007 = vlog2.f32 %v3653_v23 }
0x1874   : > { %v3659_v60 = vpop.xlane.xlu0 %3658 }
0x1875   : > { %5009 = vlog2.f32 %v3659_v60 }
0x1877   : > { %v5006_v47 = vpop.eup %5005 }
0x1878   : > { %v3673_v36 = vmul.f32 0.6931472, %v5006_v47  ;;  %v3655_v39 = vpop.xlane.xlu0 %3654 }
0x1879   : > { %5011 = vlog2.f32 %v3655_v39 }
0x187a   : > { %v3686_v35 = vadd.f32 %v3673_v36, %v3617_v24  ;;  %v3661_v41 = vpop.xlane.xlu1 %3660 }
0x187b   : > { %v5008_v8 = vpop.eup %5007  ;;  %5013 = vlog2.f32 %v3661_v41 }
0x187c   : > { %v3694_v20 = vsub.f32 %v6391_v18, %v3686_v35  ;;  %v3669_v25 = vmul.f32 0.6931472, %v5008_v8  ;;  %v3663_v18 = vpop.xlane.xlu0 %3662 }
0x187d   : > { %5015 = vlog2.f32 %v3663_v18 }
0x187e   : > { %3702 = vst [vmem:[%s6448_s16 + $0x10] sm:$0xff] %v3694_v20  ;;  %v3684_v30 = vadd.f32 %v3669_v25, %v6416_v14  ;;  %v3665_v15 = vpop.xlane.xlu1 %3664 }
0x187f   : > { %v5010_v7 = vpop.eup %5009  ;;  %5017 = vlog2.f32 %v3665_v15 }
0x1880   : > { %v3692_v16 = vsub.f32 %v6396_v31, %v3684_v30  ;;  %v3675_v40 = vmul.f32 0.6931472, %v5010_v7  ;;  %v3667_v31 = vpop.xlane.xlu0 %3666 }
0x1881   : > { %5019 = vlog2.f32 %v3667_v31 }
0x1882   : > { %3700 = vst [vmem:[%s6448_s16] sm:$0xff] %v3692_v16  ;;  %v3687_v37 = vadd.f32 %v3675_v40, %v6422_v55 }
0x1883   : > { %v5012_v34 = vpop.eup %5011 }
0x1884   : > { %v3695_v21 = vsub.f32 %v6400_v4, %v3687_v37  ;;  %v3671_v5 = vmul.f32 0.6931472, %v5012_v34 }
0x1885   : > { %v5014_v49 = vpop.eup %5013 }
0x1886   : > { %3703 = vst [vmem:[%s6448_s16 + $0x18] sm:$0xff] %v3695_v21  ;;  %v3685_v53 = vadd.f32 %v3671_v5, %v6420_v54  ;;  %v3677_v42 = vmul.f32 0.6931472, %v5014_v49 }
0x1887   : > { %v5016_v24 = vpop.eup %5015 }
0x1888   : > { %v3693_v19 = vsub.f32 %v6394_v11, %v3685_v53  ;;  %v3688_v4 = vadd.f32 %v3677_v42, %v6428_v13  ;;  %v3679_v52 = vmul.f32 0.6931472, %v5016_v24 }
0x1889   : > { %v5018_v45 = vpop.eup %5017 }
0x188a   : > { %3701 = vst [vmem:[%s6448_s16 + $0x8] sm:$0xff] %v3693_v19  ;;  %v3696_v14 = vsub.f32 %v6403_v46, %v3688_v4  ;;  %v3681_v51 = vmul.f32 0.6931472, %v5018_v45  ;;  %v3689_v54 = vadd.f32 %v3679_v52, %v6432_v17 }
0x188b   : > { %v5020_v11 = vpop.eup %5019 }
0x188c   : > { %3704 = vst [vmem:[%s6448_s16 + $0x20] sm:$0xff] %v3696_v14  ;;  %v3690_v32 = vadd.f32 %v3681_v51, %v6436_v44  ;;  %v3697_v55 = vsub.f32 %v6405_v22, %v3689_v54  ;;  %v3683_v63 = vmul.f32 0.6931472, %v5020_v11 }
0x188e   : > { %v3698_v12 = vsub.f32 %v6408_v48, %v3690_v32  ;;  %3705 = vst [vmem:[%s6448_s16 + $0x28] sm:$0xff] %v3697_v55  ;;  %v3691_v46 = vadd.f32 %v3683_v63, %v6440_v33 }
0x1890   : > { %3706 = vst [vmem:[%s6448_s16 + $0x30] sm:$0xff] %v3698_v12  ;;  %v3699_v22 = vsub.f32 %v6411_v62, %v3691_v46 }
0x1892   : > { %3707 = vst [vmem:[%s6448_s16 + $0x38] sm:$0xff] %v3699_v22 }
0x1893   : > { %5038 = shalt.err (!%p5035_p3)
}
0x1894   : > { %s5039_s29 = scalar_lea.hbm %s6474_s26, 1024  ;;  %s5043_s21 = scalar_lea.hbm %s6533_s9, 2048 }
0x1895   : > { %p5040_p4 = scmp.ne.s32.totalorder %s6474_s26, %s5039_s29  ;;  %p5044_p9 = scmp.lt.u32.totalorder %s6474_s26, %s6533_s9 }
0x1896   : > { %p5045_p10 = scmp.lt.u32.totalorder %s5043_s21, %s5039_s29  ;;  %p5047_p12 = scmp.lt.u32.totalorder %s5039_s29, %s6474_s26 }
0x1897   : > { %p5041_p7 = pnand %p5040_p4, %p5182_p5 }
0x1898   : > { %p5046_p11 = por %p5045_p10, %p5044_p9 }
0x1899   : > { %p5042_p8 = pneg %p5041_p7 }
0x189a   : > { %p5048_p13 = por %p5047_p12, %p5046_p11 }
0x189c   : > { %p5049_p0 = pnand %p5048_p13, %p5042_p8 }
0x189e   : > { %5052 = shalt.err (!%p5049_p0)
}
0x189f   : > { %s5092_s17 = smov 128   ;;  %s5093_s27 = smov 8  }
0x18a0   : > { %4360 = dma.vmem_to_hbm [thread:$0]  (%p5182_p5), %s6476_s22, 1024, %s6474_s26, %s6483_s13, %s5092_s17, %s5092_s17, %s5093_s27  }
0x18a1 PF: > { %p4366_p1 = scmp.ge.s32.totalorder %s5087_s12, 2  ;;  %s3737_s25 = sand.u32 1, %s5075_s30  }
0x18a2   : > { %s3738_s28 = scalar_lea.sflag [#allocation3], %s3737_s25 }
0x18a3   : > { %p4363_p2 = pnand %p4366_p1, %p5186_p6 }
0x18a5   : > { %5070 = dma.done.wait (!%p4363_p2), %s3738_s28, 1024  }
0x18a6   : > { %5072 = vsyncadd (!%p4363_p2), %s3738_s28, 4294966272  ;;  %p19_p3 = scmp.ge.s32.totalorder %s5169_s15, 4   ;;  %s6536_s30 = smov %s5079_s10 }
0x18a7   : > { %s6537_s10 = smov %s5083_s11  ;;  %s6538_s11 = smov %s5180_s18 }
0x18a8   : > { %s6539_s12 = smov %s5169_s15  ;;  %21 = sbr.rel (!%p19_p3) target bundleno = 3 (0x3), region = 91 }
0x18af   :  { %3743 = vsyncpa [#allocation3], 1 }
0x18b0   :  { %3745 = vsyncpa [#allocation3 + $0x1], 1 }

</bundles_post_ra>
